<compile_context>
chip_gen: v6e
topology: v6e:2x2x1
jax: 0.10.0
libtpu: 0.0.40
codegen_flags: <defaults>
</compile_context>

<pallas_src>
import functools

import jax
import jax.numpy as jnp
from jax import lax
from jax.experimental import pallas as pl
from jax.experimental.pallas import tpu as pltpu


# ---------------------------------------------------------------------------
# Init-time weight prepacking (pure JAX, runs once; never on the hot path)
# ---------------------------------------------------------------------------
def prepack_params(params):
    f32, bf16 = jnp.float32, jnp.bfloat16

    w1 = params["conv1_w"].astype(f32)        # (6, 1, 5, 5)   (Cout, Cin, KH, KW)
    w2 = params["conv2_w"].astype(f32)        # (16, 6, 5, 5)

    # conv1 as ONE K=160 matmul.  LHS lanes: i*32 + k (k = input column),
    # output lanes: c*28 + w.   A1[i*32 + w + j, c*28 + w] = w1[c, 0, i, j].
    r28 = jnp.arange(28)
    cols1 = jnp.arange(6)[:, None] * 28 + r28[None, :]                    # (6, 28)
    A1 = jnp.zeros((5 * 32, 6 * 28), f32)
    for i in range(5):
        for j in range(5):
            rows = jnp.broadcast_to((i * 32 + r28 + j)[None, :], (6, 28))
            vals = jnp.broadcast_to(w1[:, 0, i, j][:, None], (6, 28))
            A1 = A1.at[rows, cols1].set(vals)

    # conv2 as ONE K=420 matmul.  LHS lanes: i*84 + cin*14 + k,
    # output lanes: cout*10 + w.  A2[i*84 + cin*14 + w + j, cout*10 + w] = w2[cout,cin,i,j].
    cin = jnp.arange(6)[:, None, None]
    cout = jnp.arange(16)[None, :, None]
    w10 = jnp.arange(10)[None, None, :]
    rows_base = jnp.broadcast_to(cin * 14 + w10, (6, 16, 10))
    cols2 = jnp.broadcast_to(cout * 10 + w10, (6, 16, 10))
    A2 = jnp.zeros((5 * 84, 16 * 10), f32)
    for i in range(5):
        for j in range(5):
            vals = jnp.broadcast_to(w2[:, :, i, j].T[:, :, None], (6, 16, 10))
            A2 = A2.at[rows_base + (i * 84 + j), cols2].set(vals)

    # even-column selectors for the 2x2 max-pools (exact 0/1 values, exact in bf16)
    c6, w14 = jnp.arange(6)[:, None], jnp.arange(14)[None, :]
    C1 = jnp.zeros((168, 84), f32).at[c6 * 28 + 2 * w14, c6 * 14 + w14].set(1.0)
    c16, w5 = jnp.arange(16)[:, None], jnp.arange(5)[None, :]
    C2 = jnp.zeros((160, 80), f32).at[c16 * 10 + 2 * w5, c16 * 5 + w5].set(1.0)

    # fc1 with the torch.flatten (C,H,W) permutation folded in; kernel LHS lane
    # layout is h*80 + c*5 + w; output padded to 128 lanes.
    fw1 = params["fc1_w"].astype(f32)                                     # (120, 400)
    t = fw1.T.reshape(16, 5, 5, 120)                                      # [c, h, w, n]
    t = jnp.transpose(t, (1, 0, 2, 3)).reshape(400, 120)                  # [h*80+c*5+w, n]
    W1 = jnp.zeros((400, 128), f32).at[:, :120].set(t)

    # fc2 / fc3 packed together, zero-padded to (128, 128)
    W23 = jnp.zeros((2, 128, 128), f32)
    W23 = W23.at[0, :120, :84].set(params["fc2_w"].astype(f32).T)
    W23 = W23.at[1, :84, :36].set(params["fc3_w"].astype(f32).T)

    # all five biases packed into one small f32 array
    bias = jnp.zeros((5, 168), f32)
    bias = bias.at[0, :168].set(jnp.repeat(params["conv1_b"].astype(f32), 28))
    bias = bias.at[1, :160].set(jnp.repeat(params["conv2_b"].astype(f32), 10))
    bias = bias.at[2, :120].set(params["fc1_b"].astype(f32))
    bias = bias.at[3, :84].set(params["fc2_b"].astype(f32))
    bias = bias.at[4, :36].set(params["fc3_b"].astype(f32))

    return {"A1": A1.astype(bf16), "C1": C1.astype(bf16),
            "A2": A2.astype(bf16), "C2": C2.astype(bf16),
            "W1": W1.astype(bf16), "W23": W23.astype(bf16),
            "bias": bias}


# ---------------------------------------------------------------------------
# Fused Pallas kernel: one grid step = TB images, everything VMEM-resident
# ---------------------------------------------------------------------------
def _net_kernel(x_ref, a1_ref, c1_ref, a2_ref, c2_ref, w1_ref, w23_ref,
                bias_ref, o_ref):
    f32, bf16 = jnp.float32, jnp.bfloat16
    dot = functools.partial(jnp.dot, preferred_element_type=f32)

    R = x_ref.shape[1]                     # 32 * TB
    TB = R // 32
    x = x_ref[0]                           # (32*TB, 32) bf16, row = h*TB + t
    bias = bias_ref[...]                   # (5, 168) f32

    def shift_rows(a, s):
        # row r -> row r+s; wrap-around rows only land in invalid h regions,
        # which are dropped by the pools / never read by the next conv.
        return a if s == 0 else jnp.concatenate([a[s:], a[:s]], axis=0)

    def shift_lanes(a):
        # lane l -> lane l+1 (only even lanes of each channel survive the selector)
        return jnp.concatenate([a[:, 1:], a[:, :1]], axis=1)

    # conv1 (5x5, 1->6) as one (32TB,160)x(160,168) matmul + bias + ReLU
    L1 = jnp.concatenate([shift_rows(x, i * TB) for i in range(5)], axis=1)
    y1 = jnp.maximum(dot(L1, a1_ref[...]) + bias[0:1, :168], 0.0)         # (32TB, 168)

    # pool1: adjacent-lane max + even-column selector matmul, then row-pair max
    # (the tile-aligned reshape/slice also compacts rows: h' = h // 2)
    t1 = dot(jnp.maximum(y1, shift_lanes(y1)).astype(bf16), c1_ref[...])  # (32TB, 84)
    t1 = t1.reshape(16, 2 * TB, 84)
    p1 = jnp.maximum(t1[:, :TB, :], t1[:, TB:, :]).reshape(16 * TB, 84)   # row = h'*TB + t

    # conv2 (5x5, 6->16) as one (16TB,420)x(420,160) matmul + bias + ReLU
    p1 = p1.astype(bf16)
    L2 = jnp.concatenate([shift_rows(p1, i * TB) for i in range(5)], axis=1)
    y2 = jnp.maximum(dot(L2, a2_ref[...]) + bias[1:2, :160], 0.0)         # (16TB, 160)

    # pool2
    t2 = dot(jnp.maximum(y2, shift_lanes(y2)).astype(bf16), c2_ref[...])  # (16TB, 80)
    t2 = t2.reshape(8, 2 * TB, 80)
    p2 = jnp.maximum(t2[:, :TB, :], t2[:, TB:, :]).astype(bf16)           # (8, TB, 80)

    # fc1 (400->120, flatten permutation folded into w1_ref) + ReLU
    Lf = jnp.concatenate([p2[h] for h in range(5)], axis=1)               # (TB, 400)
    h1 = jnp.maximum(dot(Lf, w1_ref[...]) + bias[2:3, :128], 0.0)         # (TB, 128)

    # fc2 + ReLU, fc3 (both zero-padded to 128x128)
    h2 = jnp.maximum(dot(h1.astype(bf16), w23_ref[0]) + bias[3:4, :128], 0.0)
    h3 = dot(h2.astype(bf16), w23_ref[1]) + bias[4:5, :128]               # (TB, 128)

    o_ref[...] = h3.astype(o_ref.dtype)                                   # lane-dense write


# ---------------------------------------------------------------------------
# Wrapper
# ---------------------------------------------------------------------------
def _pick_block_b(batch):
    # Multiple of 16 (bf16 sublane packing); aim for >=2 grid steps (v7x 2 TCs).
    tb = min(64, (batch // 2) // 16 * 16)
    return max(16, tb)


def _resident(shape):
    nd = len(shape)
    return pl.BlockSpec(shape, lambda b, _nd=nd: (0,) * _nd)


@functools.partial(jax.jit, static_argnames=("block_b",))
def net_forward(packed, x_nchw, block_b=None):
    B, C, H, W = x_nchw.shape
    assert (C, H, W) == (1, 32, 32), "Net requires 1x32x32 inputs (fc1 expects 16*5*5)"
    TB = _pick_block_b(B) if block_b is None else block_b
    Bp = ((B + TB - 1) // TB) * TB
    nsteps = Bp // TB

    x = x_nchw.astype(jnp.bfloat16).reshape(B, 32, 32)
    if Bp != B:
        x = jnp.pad(x, ((0, Bp - B), (0, 0), (0, 0)))
    # Per-step slab: in-kernel row index is h*TB + t (batch lives in sublanes),
    # so conv band shifts / pool row reductions are tile-aligned slices.
    x_steps = (x.reshape(nsteps, TB, 32, 32)
                 .transpose(0, 2, 1, 3)
                 .reshape(nsteps, 32 * TB, 32))

    weights = (packed["A1"], packed["C1"], packed["A2"], packed["C2"],
               packed["W1"], packed["W23"], packed["bias"])

    in_specs = [pl.BlockSpec((1, 32 * TB, 32), lambda b: (b, 0, 0))]
    in_specs += [_resident(w.shape) for w in weights]

    out = pl.pallas_call(
        _net_kernel,
        out_shape=jax.ShapeDtypeStruct((Bp, 128), jnp.float32),   # lane-dense output
        grid=(nsteps,),
        in_specs=in_specs,
        out_specs=pl.BlockSpec((TB, 128), lambda b: (b, 0)),
        compiler_params=pltpu.CompilerParams(
            dimension_semantics=("parallel",),    # v7x: shard batch blocks over 2 TCs
            vmem_limit_bytes=32 * 1024 * 1024,
        ),
    )(x_steps, *weights)
    return out[:B, :36]


# ---------------------------------------------------------------------------
# Parameters (PyTorch-native layouts) + pure-JAX reference
# ---------------------------------------------------------------------------
def init_params(key):
    def uniform(k, shape, fan_in):
        bound = 1.0 / float(fan_in) ** 0.5            # nn.Conv2d / nn.Linear default
        return jax.random.uniform(k, shape, jnp.float32, -bound, bound)

    ks = jax.random.split(key, 10)
    return {
        "conv1_w": uniform(ks[0], (6, 1, 5, 5), 25),
        "conv1_b": uniform(ks[1], (6,), 25),
        "conv2_w": uniform(ks[2], (16, 6, 5, 5), 150),
        "conv2_b": uniform(ks[3], (16,), 150),
        "fc1_w":   uniform(ks[4], (120, 400), 400),
        "fc1_b":   uniform(ks[5], (120,), 400),
        "fc2_w":   uniform(ks[6], (84, 120), 120),
        "fc2_b":   uniform(ks[7], (84,), 120),
        "fc3_w":   uniform(ks[8], (36, 84), 84),
        "fc3_b":   uniform(ks[9], (36,), 84),
    }


def net_reference(params, x_nchw):
    """Pure-JAX reference of the same forward (NCHW, torch semantics), f32."""
    hp = lax.Precision.HIGHEST

    def conv(x, w, b):
        y = lax.conv_general_dilated(
            x, w, window_strides=(1, 1), padding="VALID",
            dimension_numbers=("NCHW", "OIHW", "NCHW"), precision=hp)
        return jax.nn.relu(y + b[None, :, None, None])

    def pool(x):
        return lax.reduce_window(
            x, -jnp.inf, lax.max, (1, 1, 2, 2), (1, 1, 2, 2), "VALID")

    x = pool(conv(x_nchw, params["conv1_w"], params["conv1_b"]))
    x = pool(conv(x, params["conv2_w"], params["conv2_b"]))
    x = x.reshape(x.shape[0], -1)                                   # torch.flatten(x, 1)
    x = jax.nn.relu(jnp.dot(x, params["fc1_w"].T, precision=hp) + params["fc1_b"])
    x = jax.nn.relu(jnp.dot(x, params["fc2_w"].T, precision=hp) + params["fc2_b"])
    return jnp.dot(x, params["fc3_w"].T, precision=hp) + params["fc3_b"]


if __name__ == "__main__":
    key = jax.random.PRNGKey(0)
    pkey, xkey, xkey2 = jax.random.split(key, 3)
    params = init_params(pkey)
    packed = prepack_params(params)               # one-time weight repacking

    # Architecture requires 32x32 single-channel input (16*5*5 = 400 flatten).
    x = jax.random.normal(xkey, (4, 1, 32, 32), jnp.float32)        # NCHW, like PyTorch
    out = jax.block_until_ready(net_forward(packed, x))
    assert out.shape == (4, 36), out.shape
    ref = net_reference(params, x)
    err = float(jnp.max(jnp.abs(out - ref)))
    # bf16 MXU operands (f32 accumulation) -> slightly looser tolerance than f32.
    assert jnp.allclose(out, ref, rtol=3e-2, atol=3e-2), err

    # Second case: batch not a multiple of the block -> padding + multi-step grid.
    x2 = jax.random.normal(xkey2, (40, 1, 32, 32), jnp.float32)
    out2 = jax.block_until_ready(net_forward(packed, x2, block_b=16))
    assert out2.shape == (40, 36), out2.shape
    ref2 = net_reference(params, x2)
    err2 = float(jnp.max(jnp.abs(out2 - ref2)))
    assert jnp.allclose(out2, ref2, rtol=3e-2, atol=3e-2), err2

    print("KERNEL_OK")
</pallas_src>

<mosaic_0001>
module attributes {stable_mosaic.version = 11 : i64} {
  func.func @_net_kernel(%arg0: i32, %arg1: memref<1x512x32xbf16, #tpu.memory_space<vmem>>, %arg2: memref<160x168xbf16, #tpu.memory_space<vmem>>, %arg3: memref<168x84xbf16, #tpu.memory_space<vmem>>, %arg4: memref<420x160xbf16, #tpu.memory_space<vmem>>, %arg5: memref<160x80xbf16, #tpu.memory_space<vmem>>, %arg6: memref<400x128xbf16, #tpu.memory_space<vmem>>, %arg7: memref<2x128x128xbf16, #tpu.memory_space<vmem>>, %arg8: memref<5x168xf32, #tpu.memory_space<vmem>>, %arg9: memref<16x128xf32, #tpu.memory_space<vmem>>) attributes {dimension_semantics = [#tpu.dimension_semantics<parallel>], iteration_bounds = array<i64: 1>, scalar_prefetch = 0 : i64, scratch_operands = 0 : i64, tpu.core_type = #tpu.core_type<tc>, window_params = [{transform_indices = @transform_0, window_bounds = array<i64: 1, 512, 32>}, {pipeline_mode = #tpu.pipeline_mode<synchronous>, transform_indices = @transform_1, window_bounds = array<i64: 160, 168>}, {pipeline_mode = #tpu.pipeline_mode<synchronous>, transform_indices = @transform_2, window_bounds = array<i64: 168, 84>}, {pipeline_mode = #tpu.pipeline_mode<synchronous>, transform_indices = @transform_3, window_bounds = array<i64: 420, 160>}, {pipeline_mode = #tpu.pipeline_mode<synchronous>, transform_indices = @transform_4, window_bounds = array<i64: 160, 80>}, {pipeline_mode = #tpu.pipeline_mode<synchronous>, transform_indices = @transform_5, window_bounds = array<i64: 400, 128>}, {pipeline_mode = #tpu.pipeline_mode<synchronous>, transform_indices = @transform_6, window_bounds = array<i64: 2, 128, 128>}, {pipeline_mode = #tpu.pipeline_mode<synchronous>, transform_indices = @transform_7, window_bounds = array<i64: 5, 168>}, {transform_indices = @transform_8, window_bounds = array<i64: 16, 128>}]} {
    %c0 = arith.constant 0 : index
    %c0_0 = arith.constant 0 : index
    %c0_1 = arith.constant 0 : index
    %0 = vector.load %arg1[%c0, %c0_0, %c0_1] : memref<1x512x32xbf16, #tpu.memory_space<vmem>>, vector<1x512x32xbf16>
    %1 = vector.shape_cast %0 : vector<1x512x32xbf16> to vector<512x32xbf16>
    %c0_2 = arith.constant 0 : index
    %c0_3 = arith.constant 0 : index
    %2 = vector.load %arg8[%c0_2, %c0_3] : memref<5x168xf32, #tpu.memory_space<vmem>>, vector<5x168xf32>
    %3 = vector.extract_strided_slice %1 {offsets = [16, 0], sizes = [496, 32], strides = [1, 1]} : vector<512x32xbf16> to vector<496x32xbf16>
    %4 = vector.extract_strided_slice %1 {offsets = [0, 0], sizes = [16, 32], strides = [1, 1]} : vector<512x32xbf16> to vector<16x32xbf16>
    %5 = tpu.concatenate %3, %4 in 0 : vector<496x32xbf16>, vector<16x32xbf16> -> vector<512x32xbf16>
    %6 = vector.extract_strided_slice %1 {offsets = [32, 0], sizes = [480, 32], strides = [1, 1]} : vector<512x32xbf16> to vector<480x32xbf16>
    %7 = vector.extract_strided_slice %1 {offsets = [0, 0], sizes = [32, 32], strides = [1, 1]} : vector<512x32xbf16> to vector<32x32xbf16>
    %8 = tpu.concatenate %6, %7 in 0 : vector<480x32xbf16>, vector<32x32xbf16> -> vector<512x32xbf16>
    %9 = vector.extract_strided_slice %1 {offsets = [48, 0], sizes = [464, 32], strides = [1, 1]} : vector<512x32xbf16> to vector<464x32xbf16>
    %10 = vector.extract_strided_slice %1 {offsets = [0, 0], sizes = [48, 32], strides = [1, 1]} : vector<512x32xbf16> to vector<48x32xbf16>
    %11 = tpu.concatenate %9, %10 in 0 : vector<464x32xbf16>, vector<48x32xbf16> -> vector<512x32xbf16>
    %12 = vector.extract_strided_slice %1 {offsets = [64, 0], sizes = [448, 32], strides = [1, 1]} : vector<512x32xbf16> to vector<448x32xbf16>
    %13 = vector.extract_strided_slice %1 {offsets = [0, 0], sizes = [64, 32], strides = [1, 1]} : vector<512x32xbf16> to vector<64x32xbf16>
    %14 = tpu.concatenate %12, %13 in 0 : vector<448x32xbf16>, vector<64x32xbf16> -> vector<512x32xbf16>
    %15 = tpu.concatenate %1, %5, %8, %11, %14 in 1 : vector<512x32xbf16>, vector<512x32xbf16>, vector<512x32xbf16>, vector<512x32xbf16>, vector<512x32xbf16> -> vector<512x160xbf16>
    %c0_4 = arith.constant 0 : index
    %c0_5 = arith.constant 0 : index
    %16 = vector.load %arg2[%c0_4, %c0_5] : memref<160x168xbf16, #tpu.memory_space<vmem>>, vector<160x168xbf16>
    %cst = arith.constant dense<0.000000e+00> : vector<512x168xf32>
    %17 = tpu.matmul %15, %16, %cst {dimension_numbers = #tpu.dot_dimension_numbers<[1], [0], [0], [1], [0, 0, 1, 1], [], []>} : vector<512x160xbf16>, vector<160x168xbf16>, vector<512x168xf32> -> vector<512x168xf32>
    %18 = vector.extract_strided_slice %2 {offsets = [0, 0], sizes = [1, 168], strides = [1, 1]} : vector<5x168xf32> to vector<1x168xf32>
    %19 = vector.broadcast %18 : vector<1x168xf32> to vector<512x168xf32>
    %20 = arith.addf %17, %19 : vector<512x168xf32>
    %cst_6 = arith.constant 0.000000e+00 : f32
    %21 = vector.broadcast %cst_6 : f32 to vector<512x168xf32>
    %22 = arith.maximumf %20, %21 : vector<512x168xf32>
    %23 = vector.extract_strided_slice %22 {offsets = [0, 1], sizes = [512, 167], strides = [1, 1]} : vector<512x168xf32> to vector<512x167xf32>
    %24 = vector.extract_strided_slice %22 {offsets = [0, 0], sizes = [512, 1], strides = [1, 1]} : vector<512x168xf32> to vector<512x1xf32>
    %25 = tpu.concatenate %23, %24 in 1 : vector<512x167xf32>, vector<512x1xf32> -> vector<512x168xf32>
    %26 = arith.maximumf %22, %25 : vector<512x168xf32>
    %27 = arith.truncf %26 : vector<512x168xf32> to vector<512x168xbf16>
    %c0_7 = arith.constant 0 : index
    %c0_8 = arith.constant 0 : index
    %28 = vector.load %arg3[%c0_7, %c0_8] : memref<168x84xbf16, #tpu.memory_space<vmem>>, vector<168x84xbf16>
    %cst_9 = arith.constant dense<0.000000e+00> : vector<512x84xf32>
    %29 = tpu.matmul %27, %28, %cst_9 {dimension_numbers = #tpu.dot_dimension_numbers<[1], [0], [0], [1], [0, 0, 1, 1], [], []>} : vector<512x168xbf16>, vector<168x84xbf16>, vector<512x84xf32> -> vector<512x84xf32>
    %30 = vector.shape_cast %29 : vector<512x84xf32> to vector<16x32x84xf32>
    %31 = vector.extract_strided_slice %30 {offsets = [0, 0, 0], sizes = [16, 16, 84], strides = [1, 1, 1]} : vector<16x32x84xf32> to vector<16x16x84xf32>
    %32 = vector.extract_strided_slice %30 {offsets = [0, 16, 0], sizes = [16, 16, 84], strides = [1, 1, 1]} : vector<16x32x84xf32> to vector<16x16x84xf32>
    %33 = arith.maximumf %31, %32 : vector<16x16x84xf32>
    %34 = vector.shape_cast %33 : vector<16x16x84xf32> to vector<256x84xf32>
    %35 = arith.truncf %34 : vector<256x84xf32> to vector<256x84xbf16>
    %36 = vector.extract_strided_slice %35 {offsets = [16, 0], sizes = [240, 84], strides = [1, 1]} : vector<256x84xbf16> to vector<240x84xbf16>
    %37 = vector.extract_strided_slice %35 {offsets = [0, 0], sizes = [16, 84], strides = [1, 1]} : vector<256x84xbf16> to vector<16x84xbf16>
    %38 = tpu.concatenate %36, %37 in 0 : vector<240x84xbf16>, vector<16x84xbf16> -> vector<256x84xbf16>
    %39 = vector.extract_strided_slice %35 {offsets = [32, 0], sizes = [224, 84], strides = [1, 1]} : vector<256x84xbf16> to vector<224x84xbf16>
    %40 = vector.extract_strided_slice %35 {offsets = [0, 0], sizes = [32, 84], strides = [1, 1]} : vector<256x84xbf16> to vector<32x84xbf16>
    %41 = tpu.concatenate %39, %40 in 0 : vector<224x84xbf16>, vector<32x84xbf16> -> vector<256x84xbf16>
    %42 = vector.extract_strided_slice %35 {offsets = [48, 0], sizes = [208, 84], strides = [1, 1]} : vector<256x84xbf16> to vector<208x84xbf16>
    %43 = vector.extract_strided_slice %35 {offsets = [0, 0], sizes = [48, 84], strides = [1, 1]} : vector<256x84xbf16> to vector<48x84xbf16>
    %44 = tpu.concatenate %42, %43 in 0 : vector<208x84xbf16>, vector<48x84xbf16> -> vector<256x84xbf16>
    %45 = vector.extract_strided_slice %35 {offsets = [64, 0], sizes = [192, 84], strides = [1, 1]} : vector<256x84xbf16> to vector<192x84xbf16>
    %46 = vector.extract_strided_slice %35 {offsets = [0, 0], sizes = [64, 84], strides = [1, 1]} : vector<256x84xbf16> to vector<64x84xbf16>
    %47 = tpu.concatenate %45, %46 in 0 : vector<192x84xbf16>, vector<64x84xbf16> -> vector<256x84xbf16>
    %48 = tpu.concatenate %35, %38, %41, %44, %47 in 1 : vector<256x84xbf16>, vector<256x84xbf16>, vector<256x84xbf16>, vector<256x84xbf16>, vector<256x84xbf16> -> vector<256x420xbf16>
    %c0_10 = arith.constant 0 : index
    %c0_11 = arith.constant 0 : index
    %49 = vector.load %arg4[%c0_10, %c0_11] : memref<420x160xbf16, #tpu.memory_space<vmem>>, vector<420x160xbf16>
    %cst_12 = arith.constant dense<0.000000e+00> : vector<256x160xf32>
    %50 = tpu.matmul %48, %49, %cst_12 {dimension_numbers = #tpu.dot_dimension_numbers<[1], [0], [0], [1], [0, 0, 1, 1], [], []>} : vector<256x420xbf16>, vector<420x160xbf16>, vector<256x160xf32> -> vector<256x160xf32>
    %51 = vector.extract_strided_slice %2 {offsets = [1, 0], sizes = [1, 160], strides = [1, 1]} : vector<5x168xf32> to vector<1x160xf32>
    %52 = vector.broadcast %51 : vector<1x160xf32> to vector<256x160xf32>
    %53 = arith.addf %50, %52 : vector<256x160xf32>
    %cst_13 = arith.constant 0.000000e+00 : f32
    %54 = vector.broadcast %cst_13 : f32 to vector<256x160xf32>
    %55 = arith.maximumf %53, %54 : vector<256x160xf32>
    %56 = vector.extract_strided_slice %55 {offsets = [0, 1], sizes = [256, 159], strides = [1, 1]} : vector<256x160xf32> to vector<256x159xf32>
    %57 = vector.extract_strided_slice %55 {offsets = [0, 0], sizes = [256, 1], strides = [1, 1]} : vector<256x160xf32> to vector<256x1xf32>
    %58 = tpu.concatenate %56, %57 in 1 : vector<256x159xf32>, vector<256x1xf32> -> vector<256x160xf32>
    %59 = arith.maximumf %55, %58 : vector<256x160xf32>
    %60 = arith.truncf %59 : vector<256x160xf32> to vector<256x160xbf16>
    %c0_14 = arith.constant 0 : index
    %c0_15 = arith.constant 0 : index
    %61 = vector.load %arg5[%c0_14, %c0_15] : memref<160x80xbf16, #tpu.memory_space<vmem>>, vector<160x80xbf16>
    %cst_16 = arith.constant dense<0.000000e+00> : vector<256x80xf32>
    %62 = tpu.matmul %60, %61, %cst_16 {dimension_numbers = #tpu.dot_dimension_numbers<[1], [0], [0], [1], [0, 0, 1, 1], [], []>} : vector<256x160xbf16>, vector<160x80xbf16>, vector<256x80xf32> -> vector<256x80xf32>
    %63 = vector.shape_cast %62 : vector<256x80xf32> to vector<8x32x80xf32>
    %64 = vector.extract_strided_slice %63 {offsets = [0, 0, 0], sizes = [8, 16, 80], strides = [1, 1, 1]} : vector<8x32x80xf32> to vector<8x16x80xf32>
    %65 = vector.extract_strided_slice %63 {offsets = [0, 16, 0], sizes = [8, 16, 80], strides = [1, 1, 1]} : vector<8x32x80xf32> to vector<8x16x80xf32>
    %66 = arith.maximumf %64, %65 : vector<8x16x80xf32>
    %67 = arith.truncf %66 : vector<8x16x80xf32> to vector<8x16x80xbf16>
    %68 = vector.extract_strided_slice %67 {offsets = [0, 0, 0], sizes = [1, 16, 80], strides = [1, 1, 1]} : vector<8x16x80xbf16> to vector<1x16x80xbf16>
    %69 = vector.shape_cast %68 : vector<1x16x80xbf16> to vector<16x80xbf16>
    %70 = vector.extract_strided_slice %67 {offsets = [1, 0, 0], sizes = [1, 16, 80], strides = [1, 1, 1]} : vector<8x16x80xbf16> to vector<1x16x80xbf16>
    %71 = vector.shape_cast %70 : vector<1x16x80xbf16> to vector<16x80xbf16>
    %72 = vector.extract_strided_slice %67 {offsets = [2, 0, 0], sizes = [1, 16, 80], strides = [1, 1, 1]} : vector<8x16x80xbf16> to vector<1x16x80xbf16>
    %73 = vector.shape_cast %72 : vector<1x16x80xbf16> to vector<16x80xbf16>
    %74 = vector.extract_strided_slice %67 {offsets = [3, 0, 0], sizes = [1, 16, 80], strides = [1, 1, 1]} : vector<8x16x80xbf16> to vector<1x16x80xbf16>
    %75 = vector.shape_cast %74 : vector<1x16x80xbf16> to vector<16x80xbf16>
    %76 = vector.extract_strided_slice %67 {offsets = [4, 0, 0], sizes = [1, 16, 80], strides = [1, 1, 1]} : vector<8x16x80xbf16> to vector<1x16x80xbf16>
    %77 = vector.shape_cast %76 : vector<1x16x80xbf16> to vector<16x80xbf16>
    %78 = tpu.concatenate %69, %71, %73, %75, %77 in 1 : vector<16x80xbf16>, vector<16x80xbf16>, vector<16x80xbf16>, vector<16x80xbf16>, vector<16x80xbf16> -> vector<16x400xbf16>
    %c0_17 = arith.constant 0 : index
    %c0_18 = arith.constant 0 : index
    %79 = vector.load %arg6[%c0_17, %c0_18] : memref<400x128xbf16, #tpu.memory_space<vmem>>, vector<400x128xbf16>
    %cst_19 = arith.constant dense<0.000000e+00> : vector<16x128xf32>
    %80 = tpu.matmul %78, %79, %cst_19 {dimension_numbers = #tpu.dot_dimension_numbers<[1], [0], [0], [1], [0, 0, 1, 1], [], []>} : vector<16x400xbf16>, vector<400x128xbf16>, vector<16x128xf32> -> vector<16x128xf32>
    %81 = vector.extract_strided_slice %2 {offsets = [2, 0], sizes = [1, 128], strides = [1, 1]} : vector<5x168xf32> to vector<1x128xf32>
    %82 = vector.broadcast %81 : vector<1x128xf32> to vector<16x128xf32>
    %83 = arith.addf %80, %82 : vector<16x128xf32>
    %cst_20 = arith.constant 0.000000e+00 : f32
    %84 = vector.broadcast %cst_20 : f32 to vector<16x128xf32>
    %85 = arith.maximumf %83, %84 : vector<16x128xf32>
    %86 = arith.truncf %85 : vector<16x128xf32> to vector<16x128xbf16>
    %c0_21 = arith.constant 0 : index
    %c0_22 = arith.constant 0 : index
    %c0_23 = arith.constant 0 : index
    %87 = vector.load %arg7[%c0_21, %c0_22, %c0_23] : memref<2x128x128xbf16, #tpu.memory_space<vmem>>, vector<1x128x128xbf16>
    %88 = vector.shape_cast %87 : vector<1x128x128xbf16> to vector<128x128xbf16>
    %cst_24 = arith.constant dense<0.000000e+00> : vector<16x128xf32>
    %89 = tpu.matmul %86, %88, %cst_24 {dimension_numbers = #tpu.dot_dimension_numbers<[1], [0], [0], [1], [0, 0, 1, 1], [], []>} : vector<16x128xbf16>, vector<128x128xbf16>, vector<16x128xf32> -> vector<16x128xf32>
    %90 = vector.extract_strided_slice %2 {offsets = [3, 0], sizes = [1, 128], strides = [1, 1]} : vector<5x168xf32> to vector<1x128xf32>
    %91 = vector.broadcast %90 : vector<1x128xf32> to vector<16x128xf32>
    %92 = arith.addf %89, %91 : vector<16x128xf32>
    %cst_25 = arith.constant 0.000000e+00 : f32
    %93 = vector.broadcast %cst_25 : f32 to vector<16x128xf32>
    %94 = arith.maximumf %92, %93 : vector<16x128xf32>
    %95 = arith.truncf %94 : vector<16x128xf32> to vector<16x128xbf16>
    %c1 = arith.constant 1 : index
    %c0_26 = arith.constant 0 : index
    %c0_27 = arith.constant 0 : index
    %96 = vector.load %arg7[%c1, %c0_26, %c0_27] : memref<2x128x128xbf16, #tpu.memory_space<vmem>>, vector<1x128x128xbf16>
    %97 = vector.shape_cast %96 : vector<1x128x128xbf16> to vector<128x128xbf16>
    %cst_28 = arith.constant dense<0.000000e+00> : vector<16x128xf32>
    %98 = tpu.matmul %95, %97, %cst_28 {dimension_numbers = #tpu.dot_dimension_numbers<[1], [0], [0], [1], [0, 0, 1, 1], [], []>} : vector<16x128xbf16>, vector<128x128xbf16>, vector<16x128xf32> -> vector<16x128xf32>
    %99 = vector.extract_strided_slice %2 {offsets = [4, 0], sizes = [1, 128], strides = [1, 1]} : vector<5x168xf32> to vector<1x128xf32>
    %100 = vector.broadcast %99 : vector<1x128xf32> to vector<16x128xf32>
    %101 = arith.addf %98, %100 : vector<16x128xf32>
    %c0_29 = arith.constant 0 : index
    %c0_30 = arith.constant 0 : index
    %102 = vector.load %arg9[%c0_29, %c0_30] : memref<16x128xf32, #tpu.memory_space<vmem>>, vector<16x128xf32>
    tpu.vector_store %arg9[%c0_29, %c0_30], %101 {strides = array<i32>} : memref<16x128xf32, #tpu.memory_space<vmem>>, vector<16x128xf32>,
    return
  }
  func.func @transform_0(%arg0: i32) -> (i32, i32, i32) {
    %c0_i32 = arith.constant 0 : i32
    %c0_i32_0 = arith.constant 0 : i32
    %c0_i32_1 = arith.constant 0 : i32
    return %arg0, %c0_i32, %c0_i32_0 : i32, i32, i32
  }
  func.func @transform_1(%arg0: i32) -> (i32, i32) {
    %c0_i32 = arith.constant 0 : i32
    %c0_i32_0 = arith.constant 0 : i32
    %c0_i32_1 = arith.constant 0 : i32
    return %c0_i32, %c0_i32_0 : i32, i32
  }
  func.func @transform_2(%arg0: i32) -> (i32, i32) {
    %c0_i32 = arith.constant 0 : i32
    %c0_i32_0 = arith.constant 0 : i32
    %c0_i32_1 = arith.constant 0 : i32
    return %c0_i32, %c0_i32_0 : i32, i32
  }
  func.func @transform_3(%arg0: i32) -> (i32, i32) {
    %c0_i32 = arith.constant 0 : i32
    %c0_i32_0 = arith.constant 0 : i32
    %c0_i32_1 = arith.constant 0 : i32
    return %c0_i32, %c0_i32_0 : i32, i32
  }
  func.func @transform_4(%arg0: i32) -> (i32, i32) {
    %c0_i32 = arith.constant 0 : i32
    %c0_i32_0 = arith.constant 0 : i32
    %c0_i32_1 = arith.constant 0 : i32
    return %c0_i32, %c0_i32_0 : i32, i32
  }
  func.func @transform_5(%arg0: i32) -> (i32, i32) {
    %c0_i32 = arith.constant 0 : i32
    %c0_i32_0 = arith.constant 0 : i32
    %c0_i32_1 = arith.constant 0 : i32
    return %c0_i32, %c0_i32_0 : i32, i32
  }
  func.func @transform_6(%arg0: i32) -> (i32, i32, i32) {
    %c0_i32 = arith.constant 0 : i32
    %c0_i32_0 = arith.constant 0 : i32
    %c0_i32_1 = arith.constant 0 : i32
    %c0_i32_2 = arith.constant 0 : i32
    return %c0_i32, %c0_i32_0, %c0_i32_1 : i32, i32, i32
  }
  func.func @transform_7(%arg0: i32) -> (i32, i32) {
    %c0_i32 = arith.constant 0 : i32
    %c0_i32_0 = arith.constant 0 : i32
    %c0_i32_1 = arith.constant 0 : i32
    return %c0_i32, %c0_i32_0 : i32, i32
  }
  func.func @transform_8(%arg0: i32) -> (i32, i32) {
    %c0_i32 = arith.constant 0 : i32
    %c0_i32_0 = arith.constant 0 : i32
    return %arg0, %c0_i32 : i32, i32
  }
}

</mosaic_0001>

<bundles_post_ra>
// kernel: net_forward.1
= control target key start
LH: loop header
LB: loop body
LE: loop exit
PB: predicated region body
PF: predicated region fallthrough
CT: control target
= control target key end

     0   :  { %s6744_s9 = smov 32   ;;  %s6745_s12 = smov 96   ;;  %vm448_vm0 = vcmask 261120   ;;  %vm545_vm1 = vcmask 523264   ;;  %vm610_vm2 = vcmask 785408   ;;  %vm2587_vm3 = vcmask 1043456   ;;  %s10187_s0 = inlined_call_operand.vmem [shape: bf16[1,512,32], index: 0, kind: input, shape index: {}]   ;;  %s10188_s1 = inlined_call_operand.vmem [shape: bf16[160,168], index: 1, kind: input, shape index: {}]   ;;  %s10189_s2 = inlined_call_operand.vmem [shape: bf16[168,84], index: 2, kind: input, shape index: {}]   ;;  %s10190_s7 = inlined_call_operand.vmem [shape: f32[5,168], index: 7, kind: input, shape index: {}]   ;;  %s10191_s3 = inlined_call_operand.vmem [shape: bf16[420,160], index: 3, kind: input, shape index: {}]   ;;  %s10192_s4 = inlined_call_operand.vmem [shape: bf16[160,80], index: 4, kind: input, shape index: {}]   ;;  %s10193_s5 = inlined_call_operand.vmem [shape: bf16[400,128], index: 5, kind: input, shape index: {}]   ;;  %s10194_s6 = inlined_call_operand.vmem [shape: bf16[2,128,128], index: 6, kind: input, shape index: {}]   ;;  %s10195_s8 = inlined_call_operand.vmem [shape: f32[16,128], index: 8, kind: output, shape index: {}]  }
   0x1   :  { %v6806_v0 = vld [vmem:[%s10187_s0 + $0x8] sm:$0xff]   ;;  %v6811_v1 = vld [vmem:[%s10187_s0 + $0x18] sm:$0xff]   ;;  %v6818_v2 = vld [vmem:[%s10187_s0 + $0x10] sm:$0xff]   ;;  %s6746_s15 = smov 64   ;;  %s6749_s18 = smov 127   ;;  %vm2149_vm4 = vcmask 318464  }
   0x2   :  { %256 = vrot.lane.b32.xlu0 %v6806_v0, %s6744_s9  ;;  %384 = vrot.lane.b32.xlu1 %v6811_v1, %s6745_s12  ;;  %v6825_v3 = vld [vmem:[%s10187_s0 + $0x20] sm:$0xff]   ;;  %v6541_v4 = vld [vmem:[%s10188_s1 + $0x74] ss:$8 sps:$4 sm:$0xff]   ;;  %vm1764_vm5 = vcmask 1039360   ;;  %vm2490_vm6 = vcmask 326656   ;;  %vm3626_vm7 = vcmask 1041408  }
   0x3   :  { %5485 = vmatprep.mubr.msk.bf16.mxu0 %vm448_vm0, %v6825_v3  ;;  %v6543_v5 = vld [vmem:[%s10188_s1 + $0x70] ss:$8 sps:$4 sm:$0xff]   ;;  %v6848_v6 = vld [vmem:[%s10187_s0 + $0x28] sm:$0xff]   ;;  %899 = vmatprep.subr.bf16.mxu0 %v6541_v4  ;;  %v6548_v9 = vld [vmem:[%s10188_s1 + $0x54] ss:$8 sps:$4 sm:$0xff]   ;;  %s6752_s17 = smov 40  }
   0x4   :  { %900 = vmatpush1.bf16.msra.mxu0 %v6543_v5  ;;  %v6545_v7 = vld [vmem:[%s10188_s1 + $0x64] ss:$8 sps:$4 sm:$0xff]   ;;  %v6547_v8 = vld [vmem:[%s10188_s1 + $0x60] ss:$8 sps:$4 sm:$0xff]   ;;  %v6866_v10 = vld [vmem:[%s10187_s0 + $0x30] sm:$0xff]   ;;  %s6753_s19 = smov 80  }
   0x5   :  { %901 = vmatprep.subr.bf16.mxu0 %v6545_v7  ;;  %v6550_v11 = vld [vmem:[%s10188_s1 + $0x50] ss:$8 sps:$4 sm:$0xff]   ;;  %v6552_v12 = vld [vmem:[%s10188_s1 + $0x44] ss:$8 sps:$4 sm:$0xff]   ;;  %v6554_v13 = vld [vmem:[%s10188_s1 + $0x40] ss:$8 sps:$4 sm:$0xff]  }
   0x6   :  { %320 = vrot.lane.b32.xlu0 %v6818_v2, %s6746_s15  ;;  %258 = vrot.lane.b32.xlu1 %v6818_v2, %s6744_s9  ;;  %v6555_v14 = vld [vmem:[%s10188_s1 + $0x34] ss:$8 sps:$4 sm:$0xff]   ;;  %v6557_v16 = vld [vmem:[%s10188_s1 + $0x30] ss:$8 sps:$4 sm:$0xff]   ;;  %vm3169_vm8 = vcmask 1014784   ;;  %vm3072_vm9 = vcmask 687104  }
   0x7   :  { %v6891_v15 = vld [vmem:[%s10187_s0 + $0x38] sm:$0xff]   ;;  %v6559_v17 = vld [vmem:[%s10188_s1 + $0x24] ss:$8 sps:$4 sm:$0xff]   ;;  %v6561_v19 = vld [vmem:[%s10188_s1 + $0x20] ss:$8 sps:$4 sm:$0xff]   ;;  %vm3593_vm10 = vcmask 293888  }
   0x8   :  { %902 = vmatpush1.bf16.msra.mxu0 %v6547_v8  ;;  %v6906_v18 = vld [vmem:[%s10187_s0 + $0x40] sm:$0xff]   ;;  %v6562_v20 = vld [vmem:[%s10188_s1 + $0x14] ss:$8 sps:$4 sm:$0xff]   ;;  %v6564_v21 = vld [vmem:[%s10188_s1 + $0x10] ss:$8 sps:$4 sm:$0xff]   ;;  %vm3218_vm11 = vcmask 654336  }
   0x9   :  { %903 = vmatprep.subr.bf16.mxu0 %v6548_v9  ;;  %v6926_v22 = vld [vmem:[%s10187_s0 + $0x48] sm:$0xff]   ;;  %v6569_v25 = vld [vmem:[%s10188_s1 + $0x94] ss:$8 sps:$4 sm:$0xff]   ;;  %v6571_v27 = vld [vmem:[%s10188_s1 + $0x90] ss:$8 sps:$4 sm:$0xff]   ;;  %s6754_s23 = smov 31  }
   0xa   :  { %322 = vrot.lane.b32.xlu0 %v6811_v1, %s6746_s15  ;;  %386 = vrot.lane.b32.xlu1 %v6825_v3, %s6745_s12  ;;  %v6565_v23 = vld [vmem:[%s10188_s1 + $0x4] ss:$8 sps:$4 sm:$0xff]   ;;  %v6568_v24 = vld [vmem:[%s10188_s1] ss:$8 sps:$4 sm:$0xff]   ;;  %vm4467_vm12 = vcmask 252928   ;;  %vm4906_vm13 = vcmask 916480  }
   0xb   :  { %v6948_v26 = vld [vmem:[%s10187_s0 + $0x50] sm:$0xff]   ;;  %v6573_v28 = vld [vmem:[%s10188_s1 + $0x84] ss:$8 sps:$4 sm:$0xff]   ;;  %v6576_v29 = vld [vmem:[%s10188_s1 + $0x80] ss:$8 sps:$4 sm:$0xff]   ;;  %vm5117_vm14 = vcmask 130048  }
   0xc   :  { %904 = vmatpush1.bf16.msra.mxu0 %v6550_v11  ;;  %v6968_v30 = vld [vmem:[%s10187_s0 + $0x58] sm:$0xff]   ;;  %v6979_v31 = vld [vmem:[%s10187_s0 + $0x60] sm:$0xff]   ;;  %v6990_v32 = vld [vmem:[%s10187_s0 + $0x68] sm:$0xff]   ;;  %vm6757_vm15 = vmmov 0  }
   0xd   :  { %905 = vmatprep.subr.bf16.mxu0 %v6552_v12  ;;  %v7001_v33 = vld [vmem:[%s10187_s0 + $0x70] sm:$0xff]   ;;  %v7012_v34 = vld [vmem:[%s10187_s0 + $0x78] sm:$0xff]   ;;  %v7023_v35 = vld [vmem:[%s10187_s0 + $0x80] sm:$0xff]  }
   0xe   :  { %260 = vrot.lane.b32.xlu0 %v6811_v1, %s6744_s9  ;;  %324 = vrot.lane.b32.xlu1 %v6825_v3, %s6746_s15  ;;  %v7034_v36 = vld [vmem:[%s10187_s0 + $0x88] sm:$0xff]   ;;  %v7045_v37 = vld [vmem:[%s10187_s0 + $0x90] sm:$0xff]  }
   0xf   :  { %v7056_v38 = vld [vmem:[%s10187_s0 + $0x98] sm:$0xff]   ;;  %v7067_v39 = vld [vmem:[%s10187_s0 + $0xa0] sm:$0xff]   ;;  %v7078_v40 = vld [vmem:[%s10187_s0 + $0xa8] sm:$0xff]  }
  0x10   :  { %906 = vmatpush1.bf16.msra.mxu0 %v6554_v13  ;;  %v7089_v41 = vld [vmem:[%s10187_s0 + $0xb0] sm:$0xff]   ;;  %v7094_v43 = vld [vmem:[%s10187_s0] sm:$0xff]   ;;  %v7109_v50 = vld [vmem:[%s10187_s0 + $0xb8] sm:$0xff]  }
  0x11   :  { %907 = vmatprep.subr.bf16.mxu0 %v6555_v14  ;;  %v7125_v55 = vld [vmem:[%s10187_s0 + $0xc0] sm:$0xff]   ;;  %v7141_v61 = vld [vmem:[%s10187_s0 + $0xc8] sm:$0xff]   ;;  %v7154_v4 = vld [vmem:[%s10187_s0 + $0xd0] sm:$0xff]  }
  0x12   :  { %388 = vrot.lane.b32.xlu0 %v6848_v6, %s6745_s12  ;;  %262 = vrot.lane.b32.xlu1 %v6825_v3, %s6744_s9 }
  0x14   :  { %908 = vmatpush1.bf16.msra.mxu0 %v6557_v16 }
  0x15   :  { %909 = vmatprep.subr.bf16.mxu0 %v6559_v17  ;;  %v7187_v17 = vld [vmem:[%s10187_s0 + $0xe0] sm:$0xff]  }
  0x16   :  { %326 = vrot.lane.b32.xlu0 %v6848_v6, %s6746_s15  ;;  %390 = vrot.lane.b32.xlu1 %v6866_v10, %s6745_s12 }
  0x18   :  { %910 = vmatpush1.bf16.msra.mxu0 %v6561_v19 }
  0x19   :  { %911 = vmatprep.subr.bf16.mxu0 %v6562_v20 }
  0x1a   :  { %264 = vrot.lane.b32.xlu0 %v6848_v6, %s6744_s9  ;;  %328 = vrot.lane.b32.xlu1 %v6866_v10, %s6746_s15 }
  0x1c   :  { %912 = vmatpush1.bf16.msra.mxu0 %v6564_v21 }
  0x1d   :  { %913 = vmatprep.subr.bf16.mxu0 %v6565_v23  ;;  %v7203_v23 = vld [vmem:[%s10187_s0 + $0xe8] sm:$0xff]  }
  0x1e   :  { %392 = vrot.lane.b32.xlu0 %v6891_v15, %s6745_s12  ;;  %266 = vrot.lane.b32.xlu1 %v6866_v10, %s6744_s9 }
  0x20   :  { %914 = vmatpush1.bf16.msra.mxu0 %v6568_v24 }
  0x21   :  { %927 = vmatprep.subr.bf16.mxu0 %v6569_v25 }
  0x22   :  { %330 = vrot.lane.b32.xlu0 %v6891_v15, %s6746_s15  ;;  %394 = vrot.lane.b32.xlu1 %v6906_v18, %s6745_s12 }
  0x24   :  { %928 = vmatpush2.bf16.msra.mxu0 %v6571_v27 }
  0x25   :  { %929 = vmatprep.subr.bf16.mxu0 %v6573_v28 }
  0x26   :  { %268 = vrot.lane.b32.xlu0 %v6891_v15, %s6744_s9  ;;  %332 = vrot.lane.b32.xlu1 %v6906_v18, %s6746_s15 }
  0x28   :  { %930 = vmatpush2.bf16.msra.mxu0 %v6576_v29  ;;  %v7216_v29 = vld [vmem:[%s10187_s0 + $0xf0] sm:$0xff]  }
  0x2a   :  { %396 = vrot.lane.b32.xlu0 %v6926_v22, %s6745_s12  ;;  %270 = vrot.lane.b32.xlu1 %v6906_v18, %s6744_s9 }
  0x2e   :  { %334 = vrot.lane.b32.xlu0 %v6926_v22, %s6746_s15  ;;  %398 = vrot.lane.b32.xlu1 %v6948_v26, %s6745_s12 }
  0x32   :  { %272 = vrot.lane.b32.xlu0 %v6926_v22, %s6744_s9  ;;  %336 = vrot.lane.b32.xlu1 %v6948_v26, %s6746_s15 }
  0x36   :  { %400 = vrot.lane.b32.xlu0 %v6968_v30, %s6745_s12  ;;  %274 = vrot.lane.b32.xlu1 %v6948_v26, %s6744_s9 }
  0x3a   :  { %338 = vrot.lane.b32.xlu0 %v6968_v30, %s6746_s15  ;;  %402 = vrot.lane.b32.xlu1 %v6979_v31, %s6745_s12 }
  0x3e   :  { %276 = vrot.lane.b32.xlu0 %v6968_v30, %s6744_s9  ;;  %340 = vrot.lane.b32.xlu1 %v6979_v31, %s6746_s15 }
  0x42   :  { %404 = vrot.lane.b32.xlu0 %v6990_v32, %s6745_s12  ;;  %278 = vrot.lane.b32.xlu1 %v6979_v31, %s6744_s9 }
  0x46   :  { %342 = vrot.lane.b32.xlu0 %v6990_v32, %s6746_s15  ;;  %406 = vrot.lane.b32.xlu1 %v7001_v33, %s6745_s12 }
  0x4a   :  { %280 = vrot.lane.b32.xlu0 %v6990_v32, %s6744_s9  ;;  %344 = vrot.lane.b32.xlu1 %v7001_v33, %s6746_s15 }
  0x4e   :  { %408 = vrot.lane.b32.xlu0 %v7012_v34, %s6745_s12  ;;  %282 = vrot.lane.b32.xlu1 %v7001_v33, %s6744_s9 }
  0x52   :  { %346 = vrot.lane.b32.xlu0 %v7012_v34, %s6746_s15  ;;  %410 = vrot.lane.b32.xlu1 %v7023_v35, %s6745_s12 }
  0x56   :  { %284 = vrot.lane.b32.xlu0 %v7012_v34, %s6744_s9  ;;  %348 = vrot.lane.b32.xlu1 %v7023_v35, %s6746_s15 }
  0x5a   :  { %412 = vrot.lane.b32.xlu0 %v7034_v36, %s6745_s12  ;;  %286 = vrot.lane.b32.xlu1 %v7023_v35, %s6744_s9 }
  0x5e   :  { %350 = vrot.lane.b32.xlu0 %v7034_v36, %s6746_s15  ;;  %414 = vrot.lane.b32.xlu1 %v7045_v37, %s6745_s12 }
  0x62   :  { %288 = vrot.lane.b32.xlu0 %v7034_v36, %s6744_s9  ;;  %352 = vrot.lane.b32.xlu1 %v7045_v37, %s6746_s15 }
  0x66   :  { %416 = vrot.lane.b32.xlu0 %v7056_v38, %s6745_s12  ;;  %290 = vrot.lane.b32.xlu1 %v7045_v37, %s6744_s9 }
  0x6a   :  { %354 = vrot.lane.b32.xlu0 %v7056_v38, %s6746_s15  ;;  %418 = vrot.lane.b32.xlu1 %v7067_v39, %s6745_s12 }
  0x6e   :  { %292 = vrot.lane.b32.xlu0 %v7056_v38, %s6744_s9  ;;  %356 = vrot.lane.b32.xlu1 %v7067_v39, %s6746_s15 }
  0x72   :  { %420 = vrot.lane.b32.xlu0 %v7078_v40, %s6745_s12  ;;  %294 = vrot.lane.b32.xlu1 %v7067_v39, %s6744_s9 }
  0x74   :  { %v257_v42 = vpop.permute.xlu0 %256  ;;  %v385_v44 = vpop.permute.xlu1 %384 }
  0x75   :  { %v451_v45 = vsel %vm448_vm0, %v7094_v43, %v257_v42 }
  0x76   :  { %358 = vrot.lane.b32.xlu0 %v7078_v40, %s6746_s15  ;;  %422 = vrot.lane.b32.xlu1 %v7089_v41, %s6745_s12 }
  0x78   :  { %v321_v46 = vpop.permute.xlu0 %320  ;;  %v259_v48 = vpop.permute.xlu1 %258 }
  0x79   :  { %v547_v47 = vsel %vm545_vm1, %v451_v45, %v321_v46  ;;  %v454_v51 = vsel %vm448_vm0, %v6806_v0, %v259_v48 }
  0x7a   :  { %v612_v49 = vsel %vm610_vm2, %v547_v47, %v385_v44  ;;  %296 = vrot.lane.b32.xlu0 %v7078_v40, %s6744_s9  ;;  %360 = vrot.lane.b32.xlu1 %v7089_v41, %s6746_s15 }
  0x7b   :  { %932 = vmatmul.mubr.bf16.vlgmr.msra.gmra.mxu0 %v612_v49 }
  0x7c   :  { %v323_v52 = vpop.permute.xlu0 %322  ;;  %5486 = vmatprep.mubr.msk.bf16.mxu0 %vm448_vm0, %v6848_v6  ;;  %v387_v54 = vpop.permute.xlu1 %386 }
  0x7d   :  { %v549_v53 = vsel %vm545_vm1, %v454_v51, %v323_v52 }
  0x7e   :  { %424 = vrot.lane.b32.xlu0 %v7109_v50, %s6745_s12  ;;  %298 = vrot.lane.b32.xlu1 %v7089_v41, %s6744_s9  ;;  %v615_v57 = vsel %vm610_vm2, %v549_v53, %v387_v54 }
  0x80   :  { %v261_v56 = vpop.permute.xlu0 %260  ;;  %v325_v58 = vpop.permute.xlu1 %324 }
  0x81   :  { %v457_v59 = vsel %vm448_vm0, %v6818_v2, %v261_v56 }
  0x82   :  { %362 = vrot.lane.b32.xlu0 %v7109_v50, %s6746_s15  ;;  %426 = vrot.lane.b32.xlu1 %v7125_v55, %s6745_s12  ;;  %v551_v62 = vsel %vm545_vm1, %v457_v59, %v325_v58 }
  0x83   :  { %942 = vmatmul.mubr.bf16.gmra.mxu0 %v615_v57 }
  0x84   :  { %5487 = vmatprep.mubr.msk.bf16.mxu0 %vm448_vm0, %v6866_v10  ;;  %v389_v60 = vpop.permute.xlu0 %388  ;;  %v263_v63 = vpop.permute.xlu1 %262 }
  0x85   :  { %v618_v2 = vsel %vm610_vm2, %v551_v62, %v389_v60  ;;  %v460_v5 = vsel %vm448_vm0, %v6811_v1, %v263_v63  ;;  %v7171_v1 = vld [vmem:[%s10187_s0 + $0xd8] sm:$0xff]  }
  0x86   :  { %300 = vrot.lane.b32.xlu0 %v7109_v50, %s6744_s9  ;;  %364 = vrot.lane.b32.xlu1 %v7125_v55, %s6746_s15 }
  0x88   :  { %v327_v0 = vpop.permute.xlu0 %326  ;;  %v391_v8 = vpop.permute.xlu1 %390 }
  0x89   :  { %v553_v7 = vsel %vm545_vm1, %v460_v5, %v327_v0 }
  0x8a   :  { %428 = vrot.lane.b32.xlu0 %v7141_v61, %s6745_s12  ;;  %302 = vrot.lane.b32.xlu1 %v7125_v55, %s6744_s9  ;;  %v621_v11 = vsel %vm610_vm2, %v553_v7, %v391_v8 }
  0x8b   :  { %952 = vmatmul.mubr.bf16.gmra.mxu0 %v618_v2 }
  0x8c   :  { %5488 = vmatprep.mubr.msk.bf16.mxu0 %vm448_vm0, %v6891_v15  ;;  %v265_v9 = vpop.permute.xlu0 %264  ;;  %v329_v12 = vpop.permute.xlu1 %328 }
  0x8d   :  { %v463_v13 = vsel %vm448_vm0, %v6825_v3, %v265_v9 }
  0x8e   :  { %366 = vrot.lane.b32.xlu0 %v7141_v61, %s6746_s15  ;;  %430 = vrot.lane.b32.xlu1 %v7154_v4, %s6745_s12  ;;  %v555_v16 = vsel %vm545_vm1, %v463_v13, %v329_v12 }
  0x90   :  { %v393_v14 = vpop.permute.xlu0 %392  ;;  %v267_v19 = vpop.permute.xlu1 %266 }
  0x91   :  { %v624_v3 = vsel %vm610_vm2, %v555_v16, %v393_v14  ;;  %v466_v21 = vsel %vm448_vm0, %v6848_v6, %v267_v19 }
  0x92   :  { %304 = vrot.lane.b32.xlu0 %v7141_v61, %s6744_s9  ;;  %368 = vrot.lane.b32.xlu1 %v7154_v4, %s6746_s15 }
  0x93   :  { %962 = vmatmul.mubr.bf16.gmra.mxu0 %v621_v11 }
  0x94   :  { %5489 = vmatprep.mubr.msk.bf16.mxu0 %vm448_vm0, %v6906_v18  ;;  %v331_v20 = vpop.permute.xlu0 %330  ;;  %v395_v25 = vpop.permute.xlu1 %394 }
  0x95   :  { %v557_v24 = vsel %vm545_vm1, %v466_v21, %v331_v20 }
  0x96   :  { %432 = vrot.lane.b32.xlu0 %v7171_v1, %s6745_s12  ;;  %306 = vrot.lane.b32.xlu1 %v7154_v4, %s6744_s9  ;;  %v627_v6 = vsel %vm610_vm2, %v557_v24, %v395_v25 }
  0x98   :  { %v269_v27 = vpop.permute.xlu0 %268  ;;  %v333_v28 = vpop.permute.xlu1 %332 }
  0x99   :  { %v469_v42 = vsel %vm448_vm0, %v6866_v10, %v269_v27 }
  0x9a   :  { %370 = vrot.lane.b32.xlu0 %v7171_v1, %s6746_s15  ;;  %434 = vrot.lane.b32.xlu1 %v7187_v17, %s6745_s12  ;;  %v559_v45 = vsel %vm545_vm1, %v469_v42, %v333_v28 }
  0x9b   :  { %972 = vmatmul.mubr.bf16.gmra.mxu0 %v624_v3 }
  0x9c   :  { %5490 = vmatprep.mubr.msk.bf16.mxu0 %vm448_vm0, %v6926_v22  ;;  %v397_v44 = vpop.permute.xlu0 %396  ;;  %v271_v46 = vpop.permute.xlu1 %270 }
  0x9d   :  { %v630_v48 = vsel %vm610_vm2, %v559_v45, %v397_v44  ;;  %v472_v10 = vsel %vm448_vm0, %v6891_v15, %v271_v46 }
  0x9e   :  { %308 = vrot.lane.b32.xlu0 %v7171_v1, %s6744_s9  ;;  %372 = vrot.lane.b32.xlu1 %v7187_v17, %s6746_s15 }
  0xa0   :  { %v335_v47 = vpop.permute.xlu0 %334  ;;  %v399_v51 = vpop.permute.xlu1 %398 }
  0xa1   :  { %v561_v49 = vsel %vm545_vm1, %v472_v10, %v335_v47 }
  0xa2   :  { %436 = vrot.lane.b32.xlu0 %v7203_v23, %s6745_s12  ;;  %310 = vrot.lane.b32.xlu1 %v7187_v17, %s6744_s9  ;;  %v633_v53 = vsel %vm610_vm2, %v561_v49, %v399_v51 }
  0xa3   :  { %982 = vmatmul.mubr.bf16.gmra.mxu0 %v627_v6 }
  0xa4   :  { %5491 = vmatprep.mubr.msk.bf16.mxu0 %vm448_vm0, %v6948_v26  ;;  %v273_v52 = vpop.permute.xlu0 %272  ;;  %v337_v54 = vpop.permute.xlu1 %336 }
  0xa5   :  { %v475_v56 = vsel %vm448_vm0, %v6906_v18, %v273_v52 }
  0xa6   :  { %374 = vrot.lane.b32.xlu0 %v7203_v23, %s6746_s15  ;;  %438 = vrot.lane.b32.xlu1 %v7216_v29, %s6745_s12  ;;  %v563_v15 = vsel %vm545_vm1, %v475_v56, %v337_v54 }
  0xa8   :  { %v401_v57 = vpop.permute.xlu0 %400  ;;  %v275_v58 = vpop.permute.xlu1 %274 }
  0xa9   :  { %v636_v60 = vsel %vm610_vm2, %v563_v15, %v401_v57  ;;  %v478_v62 = vsel %vm448_vm0, %v6926_v22, %v275_v58 }
  0xab   :  { %992 = vmatmul.mubr.bf16.gmra.mxu0 %v630_v48 }
  0xac   :  { %5492 = vmatprep.mubr.msk.bf16.mxu0 %vm448_vm0, %v6968_v30  ;;  %v339_v59 = vpop.permute.xlu0 %338  ;;  %v403_v18 = vpop.permute.xlu1 %402 }
  0xad   :  { %v565_v63 = vsel %vm545_vm1, %v478_v62, %v339_v59 }
  0xae   :  { %v639_v2 = vsel %vm610_vm2, %v565_v63, %v403_v18 }
  0xb0   :  { %v277_v0 = vpop.permute.xlu0 %276  ;;  %v341_v5 = vpop.permute.xlu1 %340 }
  0xb1   :  { %v481_v7 = vsel %vm448_vm0, %v6948_v26, %v277_v0 }
  0xb2   :  { %v567_v22 = vsel %vm545_vm1, %v481_v7, %v341_v5 }
  0xb3   :  { %1002 = vmatmul.mubr.bf16.gmra.mxu0 %v633_v53 }
  0xb4   :  { %5493 = vmatprep.mubr.msk.bf16.mxu0 %vm448_vm0, %v6979_v31  ;;  %v405_v8 = vpop.permute.xlu0 %404  ;;  %v279_v9 = vpop.permute.xlu1 %278 }
  0xb5   :  { %v642_v12 = vsel %vm610_vm2, %v567_v22, %v405_v8  ;;  %v484_v13 = vsel %vm448_vm0, %v6968_v30, %v279_v9 }
  0xb8   :  { %v343_v11 = vpop.permute.xlu0 %342  ;;  %v407_v26 = vpop.permute.xlu1 %406 }
  0xb9   :  { %v569_v14 = vsel %vm545_vm1, %v484_v13, %v343_v11 }
  0xba   :  { %v645_v19 = vsel %vm610_vm2, %v569_v14, %v407_v26 }
  0xbb   :  { %1012 = vmatmul.mubr.bf16.gmra.mxu0 %v636_v60 }
  0xbc   :  { %5494 = vmatprep.mubr.msk.bf16.mxu0 %vm448_vm0, %v6990_v32  ;;  %v281_v16 = vpop.permute.xlu0 %280  ;;  %v345_v20 = vpop.permute.xlu1 %344 }
  0xbd   :  { %v487_v3 = vsel %vm448_vm0, %v6979_v31, %v281_v16 }
  0xbe   :  { %v571_v30 = vsel %vm545_vm1, %v487_v3, %v345_v20 }
  0xc0   :  { %v409_v21 = vpop.permute.xlu0 %408  ;;  %v283_v24 = vpop.permute.xlu1 %282 }
  0xc1   :  { %v648_v27 = vsel %vm610_vm2, %v571_v30, %v409_v21  ;;  %v490_v6 = vsel %vm448_vm0, %v6990_v32, %v283_v24  ;;  %v6591_v30 = vld [vmem:[%s10189_s2 + $0x38] sm:$0xff]  }
  0xc3   :  { %1022 = vmatmul.mubr.bf16.gmra.mxu0 %v639_v2 }
  0xc4   :  { %5495 = vmatprep.mubr.msk.bf16.mxu0 %vm448_vm0, %v7001_v33  ;;  %v347_v25 = vpop.permute.xlu0 %346  ;;  %v411_v31 = vpop.permute.xlu1 %410 }
  0xc5   :  { %v573_v28 = vsel %vm545_vm1, %v490_v6, %v347_v25  ;;  %v10196_v25 = vmov 0   ;;  %v6592_v6 = vld [vmem:[%s10189_s2 + $0x30] sm:$0xff]  }
  0xc6   :  { %v651_v44 = vsel %vm610_vm2, %v573_v28, %v411_v31  ;;  %2591 = vmatprep.subr.bf16.mxu1 %v10196_v25 }
  0xc7   :  { %2592 = vmatpush1.bf16.msra.mxu1 %v6591_v30 }
  0xc8   :  { %v285_v42 = vpop.permute.xlu0 %284  ;;  %v349_v45 = vpop.permute.xlu1 %348  ;;  %2593 = vmatprep.subr.bf16.mxu1 %v10196_v25 }
  0xc9   :  { %v493_v46 = vsel %vm448_vm0, %v7001_v33, %v285_v42  ;;  %v6593_v42 = vld [vmem:[%s10189_s2 + $0x28] sm:$0xff]  }
  0xca   :  { %v575_v32 = vsel %vm545_vm1, %v493_v46, %v349_v45 }
  0xcb   :  { %1032 = vmatmul.mubr.bf16.gmra.mxu0 %v642_v12  ;;  %2594 = vmatpush1.bf16.msra.mxu1 %v6592_v6 }
  0xcc   :  { %5496 = vmatprep.mubr.msk.bf16.mxu0 %vm448_vm0, %v7012_v34  ;;  %v413_v47 = vpop.permute.xlu0 %412  ;;  %v287_v48 = vpop.permute.xlu1 %286  ;;  %2595 = vmatprep.subr.bf16.mxu1 %v10196_v25 }
  0xcd   :  { %v654_v10 = vsel %vm610_vm2, %v575_v32, %v413_v47  ;;  %v496_v51 = vsel %vm448_vm0, %v7012_v34, %v287_v48  ;;  %v6594_v32 = vld [vmem:[%s10189_s2 + $0x20] sm:$0xff]  }
  0xcf   :  { %2596 = vmatpush1.bf16.msra.mxu1 %v6593_v42 }
  0xd0   :  { %v351_v49 = vpop.permute.xlu0 %350  ;;  %v415_v52 = vpop.permute.xlu1 %414  ;;  %2597 = vmatprep.subr.bf16.mxu1 %v10196_v25 }
  0xd1   :  { %v577_v33 = vsel %vm545_vm1, %v496_v51, %v351_v49 }
  0xd2   :  { %v657_v54 = vsel %vm610_vm2, %v577_v33, %v415_v52  ;;  %v6596_v52 = vld [vmem:[%s10189_s2 + $0x10] sm:$0xff]  }
  0xd3   :  { %1042 = vmatmul.mubr.bf16.gmra.mxu0 %v645_v19  ;;  %2598 = vmatpush1.bf16.msra.mxu1 %v6594_v32 }
  0xd4   :  { %5497 = vmatprep.mubr.msk.bf16.mxu0 %vm448_vm0, %v7023_v35  ;;  %v289_v53 = vpop.permute.xlu0 %288  ;;  %v353_v56 = vpop.permute.xlu1 %352  ;;  %2599 = vmatprep.subr.bf16.mxu1 %v10196_v25 }
  0xd5   :  { %v499_v57 = vsel %vm448_vm0, %v7023_v35, %v289_v53  ;;  %v727_v53 = vlaneseq }
  0xd6   :  { %v579_v34 = vsel %vm545_vm1, %v499_v57, %v353_v56  ;;  %v6597_v57 = vld [vmem:[%s10189_s2 + $0x8] sm:$0xff]  }
  0xd8   :  { %v417_v15 = vpop.permute.xlu0 %416  ;;  %v291_v58 = vpop.permute.xlu1 %290 }
  0xd9   :  { %v660_v59 = vsel %vm610_vm2, %v579_v34, %v417_v15  ;;  %v502_v62 = vsel %vm448_vm0, %v7034_v36, %v291_v58  ;;  %v7360_v15 = vshrl.u32 %v727_v53, 7 }
  0xdb   :  { %1052 = vmatmul.mubr.bf16.gmra.mxu0 %v648_v27  ;;  %10399 = vst [vmem:[#allocation2_spill] sm:$0xff] %v7360_v15 }
  0xdc   :  { %5498 = vmatprep.mubr.msk.bf16.mxu0 %vm448_vm0, %v7034_v36  ;;  %v355_v60 = vpop.permute.xlu0 %354  ;;  %v419_v63 = vpop.permute.xlu1 %418 }
  0xdd   :  { %v581_v35 = vsel %vm545_vm1, %v502_v62, %v355_v60  ;;  %v6598_v60 = vld [vmem:[%s10189_s2] sm:$0xff]   ;;  %v729_v62 = vsub.s32 0, %v7360_v15 }
  0xde   :  { %v663_v0 = vsel %vm610_vm2, %v581_v35, %v419_v63 }
  0xe0   :  { %v293_v18 = vpop.permute.xlu0 %292  ;;  %v357_v2 = vpop.permute.xlu1 %356 }
  0xe1   :  { %v505_v5 = vsel %vm448_vm0, %v7045_v37, %v293_v18  ;;  %v95_v18 = vld [vmem:[%s10190_s7 + $0x8] sm:$0x1f] }
  0xe2   :  { %v583_v36 = vsel %vm545_vm1, %v505_v5, %v357_v2 }
  0xe3   :  { %1062 = vmatmul.mubr.bf16.gmra.mxu0 %v651_v44 }
  0xe4   :  { %5499 = vmatprep.mubr.msk.bf16.mxu0 %vm448_vm0, %v7045_v37  ;;  %v421_v7 = vpop.permute.xlu0 %420  ;;  %v295_v8 = vpop.permute.xlu1 %294 }
  0xe5   :  { %v666_v22 = vsel %vm610_vm2, %v583_v36, %v421_v7  ;;  %v508_v11 = vsel %vm448_vm0, %v7056_v38, %v295_v8  ;;  %v7385_v8 = vrot.slane %v95_v18, %v729_v62 }
  0xe7   :  { %10401 = vst [vmem:[#allocation4_spill] sm:$0xff] %v7385_v8 }
  0xe8   :  { %v359_v9 = vpop.permute.xlu0 %358  ;;  %v423_v12 = vpop.permute.xlu1 %422 }
  0xe9   :  { %v585_v37 = vsel %vm545_vm1, %v508_v11, %v359_v9 }
  0xea   :  { %v669_v14 = vsel %vm610_vm2, %v585_v37, %v423_v12  ;;  %v6600_v37 = vld [vmem:[%s10189_s2 + $0x48] sm:$0xff]  }
  0xeb   :  { %1072 = vmatmul.mubr.bf16.gmra.mxu0 %v654_v10  ;;  %v6595_v10 = vld [vmem:[%s10189_s2 + $0x18] sm:$0xff]  }
  0xec   :  { %5500 = vmatprep.mubr.msk.bf16.mxu0 %vm448_vm0, %v7056_v38  ;;  %v297_v13 = vpop.permute.xlu0 %296  ;;  %v361_v26 = vpop.permute.xlu1 %360  ;;  %2600 = vmatpush1.bf16.msra.mxu1 %v6595_v10 }
  0xed   :  { %v511_v16 = vsel %vm448_vm0, %v7067_v39, %v297_v13  ;;  %2601 = vmatprep.subr.bf16.mxu1 %v10196_v25 }
  0xee   :  { %v587_v38 = vsel %vm545_vm1, %v511_v16, %v361_v26 }
  0xf0   :  { %v425_v19 = vpop.permute.xlu0 %424  ;;  %v299_v20 = vpop.permute.xlu1 %298  ;;  %2602 = vmatpush1.bf16.msra.mxu1 %v6596_v52 }
  0xf1   :  { %v672_v3 = vsel %vm610_vm2, %v587_v38, %v425_v19  ;;  %v514_v24 = vsel %vm448_vm0, %v7078_v40, %v299_v20  ;;  %2603 = vmatprep.subr.bf16.mxu1 %v10196_v25 }
  0xf3   :  { %1082 = vmatmul.mubr.bf16.gmra.mxu0 %v657_v54 }
  0xf4   :  { %5501 = vmatprep.mubr.msk.bf16.mxu0 %vm448_vm0, %v7067_v39  ;;  %v363_v21 = vpop.permute.xlu0 %362  ;;  %v427_v27 = vpop.permute.xlu1 %426  ;;  %2604 = vmatpush1.bf16.msra.mxu1 %v6597_v57 }
  0xf5   :  { %v589_v39 = vsel %vm545_vm1, %v514_v24, %v363_v21  ;;  %2605 = vmatprep.subr.bf16.mxu1 %v10196_v25  ;;  %v6601_v24 = vld [vmem:[%s10189_s2 + $0x40] sm:$0xff]  }
  0xf8   :  { %v301_v28 = vpop.permute.xlu0 %300  ;;  %v365_v31 = vpop.permute.xlu1 %364  ;;  %2606 = vmatpush1.bf16.msra.mxu1 %v6598_v60 }
  0xf9   :  { %v517_v44 = vsel %vm448_vm0, %v7089_v41, %v301_v28  ;;  %2617 = vmatprep.subr.bf16.mxu1 %v10196_v25 }
  0xfa   :  { %v591_v45 = vsel %vm545_vm1, %v517_v44, %v365_v31 }
  0xfb   :  { %1092 = vmatmul.mubr.bf16.gmra.mxu0 %v660_v59 }
  0xfc   :  { %5502 = vmatprep.mubr.msk.bf16.mxu0 %vm448_vm0, %v7078_v40  ;;  %v675_v40 = vsel %vm610_vm2, %v589_v39, %v427_v27  ;;  %v429_v46 = vpop.permute.xlu0 %428  ;;  %v303_v47 = vpop.permute.xlu1 %302 }
  0xfd   :  { %v678_v48 = vsel %vm610_vm2, %v591_v45, %v429_v46  ;;  %v520_v49 = vsel %vm448_vm0, %v7109_v50, %v303_v47 }
 0x100   :  { %v431_v33 = vpop.permute.xlu1 %430 }
 0x103   :  { %1102 = vmatmul.mubr.bf16.gmra.mxu0 %v663_v0 }
 0x104   :  { %5503 = vmatprep.mubr.msk.bf16.mxu0 %vm448_vm0, %v7089_v41  ;;  %v367_v41 = vpop.permute.xlu0 %366 }
 0x105   :  { %v593_v51 = vsel %vm545_vm1, %v520_v49, %v367_v41  ;;  %v7443_v41 = vld [vmem:[%s10187_s0 + $0xf8] sm:$0xff]  }
 0x106   :  { %v681_v56 = vsel %vm610_vm2, %v593_v51, %v431_v33 }
 0x108   :  { %v305_v54 = vpop.permute.xlu0 %304 }
 0x109   :  { %v523_v34 = vsel %vm448_vm0, %v7125_v55, %v305_v54 }
 0x10b   :  { %1112 = vmatmul.mubr.bf16.gmra.mxu0 %v666_v22 }
 0x10c   :  { %5504 = vmatprep.mubr.msk.bf16.mxu0 %vm448_vm0, %v7109_v50  ;;  %v369_v50 = vpop.permute.xlu1 %368  ;;  %v433_v59 = vpop.permute.xlu0 %432 }
 0x10d   :  { %v595_v58 = vsel %vm545_vm1, %v523_v34, %v369_v50 }
 0x10e   :  { %v684_v63 = vsel %vm610_vm2, %v595_v58, %v433_v59 }
 0x110   :  { %v307_v35 = vpop.permute.xlu1 %306  ;;  %v371_v0 = vpop.permute.xlu0 %370 }
 0x111   :  { %v526_v5 = vsel %vm448_vm0, %v7141_v61, %v307_v35 }
 0x112   :  { %v597_v9 = vsel %vm545_vm1, %v526_v5, %v371_v0 }
 0x113   :  { %1122 = vmatmul.mubr.bf16.gmra.mxu0 %v669_v14 }
 0x114   :  { %5505 = vmatprep.mubr.msk.bf16.mxu0 %vm448_vm0, %v7125_v55  ;;  %v94_v55 = vld [vmem:[%s10190_s7] sm:$0x1f]  ;;  %v435_v11 = vpop.permute.xlu1 %434  ;;  %v309_v13 = vpop.permute.xlu0 %308 }
 0x115   :  { %v7381_v2 = vrot.slane %v94_v55, %v729_v62  ;;  %v687_v16 = vsel %vm610_vm2, %v597_v9, %v435_v11  ;;  %v529_v30 = vsel %vm448_vm0, %v7154_v4, %v309_v13 }
 0x117   :  { %10400 = vst [vmem:[#allocation3_spill] sm:$0xff] %v7381_v2 }
 0x118   :  { %v373_v19 = vpop.permute.xlu1 %372  ;;  %v437_v31 = vpop.permute.xlu0 %436 }
 0x11b   :  { %1132 = vmatmul.mubr.bf16.gmra.mxu0 %v672_v3 }
 0x11c   :  { %5506 = vmatprep.mubr.msk.bf16.mxu0 %vm448_vm0, %v7141_v61  ;;  %v311_v45 = vpop.permute.xlu1 %310  ;;  %v375_v52 = vpop.permute.xlu0 %374 }
 0x11d   :  { %v532_v33 = vsel %vm448_vm0, %v7171_v1, %v311_v45 }
 0x11e   :  { %v601_v34 = vsel %vm545_vm1, %v532_v33, %v375_v52 }
 0x120   :  { %v439_v58 = vpop.permute.xlu1 %438 }
 0x121   :  { %v693_v35 = vsel %vm610_vm2, %v601_v34, %v439_v58 }
 0x123   :  { %1142 = vmatmul.mubr.bf16.gmra.mxu0 %v675_v40  ;;  %v599_v40 = vsel %vm545_vm1, %v529_v30, %v373_v19 }
 0x124   :  { %5507 = vmatprep.mubr.msk.bf16.mxu0 %vm448_vm0, %v7154_v4 }
 0x12b   :  { %1152 = vmatmul.mubr.bf16.gmra.mxu0 %v678_v48  ;;  %v690_v48 = vsel %vm610_vm2, %v599_v40, %v437_v31 }
 0x12c   :  { %5508 = vmatprep.mubr.msk.bf16.mxu0 %vm448_vm0, %v7171_v1 }
 0x133   :  { %1162 = vmatmul.mubr.bf16.gmra.mxu0 %v681_v56 }
 0x134   :  { %5509 = vmatprep.mubr.msk.bf16.mxu0 %vm448_vm0, %v7187_v17  ;;  %v6599_v17 = vld [vmem:[%s10189_s2 + $0x50] ss:$0 sps:$4 sm:$0xff]   ;;  %s6748_s2 = smov 39  }
 0x135   :  { %v2589_v36 = vsel %vm2587_vm3, %v6599_v17, 0 }
 0x136   :  { %2618 = vmatpush2.bf16.msra.mxu1 %v2589_v36 }
 0x137   :  { %2619 = vmatprep.subr.bf16.mxu1 %v10196_v25 }
 0x13a   :  { %2620 = vmatpush2.bf16.msra.mxu1 %v6600_v37 }
 0x13b   :  { %v933_v7 = vpop.f32.mrf.mxu0  ;;  %1172 = vmatmul.mubr.bf16.gmra.mxu0 %v684_v63  ;;  %2621 = vmatprep.subr.bf16.mxu1 %v10196_v25 }
 0x13c   :  { %5510 = vmatprep.mubr.msk.bf16.mxu0 %vm448_vm0, %v7203_v23  ;;  %v7395_v61 = vadd.f32 %v933_v7, %v7381_v2 }
 0x13d   :  { %v935_v22 = vpop.f32.mrf.mxu0 }
 0x13e   :  { %v7398_v14 = vadd.f32 %v935_v22, %v7385_v8  ;;  %v10237_v20 = vmax.f32 %v7395_v61, 0.0  ;;  %2622 = vmatpush2.bf16.msra.mxu1 %v6601_v24 }
 0x13f   :  { %v937_v12 = vpop.f32.mrf.mxu0 }
 0x140   :  { %v7401_v26 = vadd.f32 %v937_v12, %v7381_v2  ;;  %v10243_v27 = vmax.f32 %v7398_v14, 0.0 }
 0x141   :  { %v939_v38 = vpop.f32.mrf.mxu0 }
 0x142   :  { %v10236_v3 = vmax.f32 %v7401_v26, 0.0  ;;  %v7408_v21 = vadd.f32 %v939_v38, %v7385_v8 }
 0x143   :  { %v943_v39 = vpop.f32.mrf.mxu0  ;;  %1182 = vmatmul.mubr.bf16.gmra.mxu0 %v687_v16 }
 0x144   :  { %v10240_v6 = vmax.f32 %v7408_v21, 0.0  ;;  %v5809_v28 = vpack.i.bf16 %v10236_v3, %v10237_v20  ;;  %5511 = vmatprep.mubr.msk.bf16.mxu0 %vm448_vm0, %v7216_v29  ;;  %v7430_v46 = vadd.f32 %v943_v39, %v7381_v2 }
 0x145   :  { %v945_v4 = vpop.f32.mrf.mxu0 }
 0x146   :  { %5810 = vrot.lane.b32.xlu1 %v5809_v28, %s6748_s2  ;;  %v5814_v42 = vpack.i.bf16 %v10240_v6, %v10243_v27  ;;  %v7433_v32 = vadd.f32 %v945_v4, %v7385_v8  ;;  %v10229_v54 = vmax.f32 %v7430_v46, 0.0 }
 0x147   :  { %v947_v44 = vpop.f32.mrf.mxu0 }
 0x148   :  { %v7436_v47 = vadd.f32 %v947_v44, %v7381_v2  ;;  %5815 = vrot.lane.b32.xlu0 %v5814_v42, %s6749_s18  ;;  %v10230_v56 = vmax.f32 %v7433_v32, 0.0 }
 0x149   :  { %v949_v10 = vpop.f32.mrf.mxu0 }
 0x14a   :  { %v10228_v49 = vmax.f32 %v7436_v47, 0.0  ;;  %v7447_v51 = vadd.f32 %v949_v10, %v7385_v8 }
 0x14b   :  { %v953_v53 = vpop.f32.mrf.mxu0  ;;  %1192 = vmatmul.mubr.bf16.gmra.mxu0 %v690_v48 }
 0x14c   :  { %v10233_v50 = vmax.f32 %v7447_v51, 0.0  ;;  %5820 = vrot.lane.b32.xlu0 %v5809_v28, %s6749_s18  ;;  %5512 = vmatprep.mubr.msk.bf16.mxu0 %vm448_vm0, %v7443_v41  ;;  %v7459_v1 = vadd.f32 %v953_v53, %v7381_v2  ;;  %v5824_v59 = vpack.i.bf16 %v10228_v49, %v10229_v54 }
 0x14d   :  { %v955_v57 = vpop.f32.mrf.mxu0 }
 0x14e   :  { %v5829_v60 = vpack.i.bf16 %v10233_v50, %v10230_v56  ;;  %v10221_v17 = vmax.f32 %v7459_v1, 0.0  ;;  %v7477_v18 = vadd.f32 %v955_v57, %v7385_v8 }
 0x14f   :  { %v957_v62 = vpop.f32.mrf.mxu0 }
 0x150   :  { %v7470_v55 = vadd.f32 %v957_v62, %v7381_v2  ;;  %5825 = vrot.lane.b32.xlu0 %v5824_v59, %s6748_s2  ;;  %5830 = vrot.lane.b32.xlu1 %v5829_v60, %s6749_s18  ;;  %v10227_v11 = vmax.f32 %v7477_v18, 0.0 }
 0x151   :  { %v959_v63 = vpop.f32.mrf.mxu0 }
 0x152   :  { %v10220_v0 = vmax.f32 %v7470_v55, 0.0  ;;  %v7481_v5 = vadd.f32 %v959_v63, %v7385_v8 }
 0x153   :  { %v963_v36 = vpop.f32.mrf.mxu0  ;;  %1202 = vmatmul.mubr.bf16.gmra.mxu0 %v693_v35 }
 0x154   :  { %v10224_v7 = vmax.f32 %v7481_v5, 0.0  ;;  %5835 = vrot.lane.b32.xlu1 %v5824_v59, %s6749_s18  ;;  %v5844_v22 = vpack.i.bf16 %v10220_v0, %v10221_v17  ;;  %5513 = vmatprep.mubr.msk.bf16.mxu0 %vm448_vm0, %v7094_v43  ;;  %v7493_v37 = vadd.f32 %v963_v36, %v7381_v2 }
 0x155   :  { %v965_v9 = vpop.f32.mrf.mxu0 }
 0x156   :  { %5845 = vrot.lane.b32.xlu0 %v5844_v22, %s6749_s18  ;;  %v5849_v16 = vpack.i.bf16 %v10224_v7, %v10227_v11  ;;  %v10213_v19 = vmax.f32 %v7493_v37, 0.0  ;;  %v7506_v30 = vadd.f32 %v965_v9, %v7385_v8 }
 0x157   :  { %v967_v12 = vpop.f32.mrf.mxu0 }
 0x158   :  { %v7497_v13 = vadd.f32 %v967_v12, %v7381_v2  ;;  %5840 = vrot.lane.b32.xlu1 %v5844_v22, %s6748_s2  ;;  %v10214_v42 = vmax.f32 %v7506_v30, 0.0 }
 0x159   :  { %v969_v38 = vpop.f32.mrf.mxu0 }
 0x15a   :  { %v10212_v24 = vmax.f32 %v7497_v13, 0.0  ;;  %v7510_v39 = vadd.f32 %v969_v38, %v7385_v8  ;;  %5850 = vrot.lane.b32.xlu0 %v5849_v16, %s6749_s18 }
 0x15b   :  { %v973_v28 = vpop.f32.mrf.mxu0 }
 0x15c   :  { %v10217_v4 = vmax.f32 %v7510_v39, 0.0  ;;  %v5859_v40 = vpack.i.bf16 %v10212_v24, %v10213_v19  ;;  %v7520_v44 = vadd.f32 %v973_v28, %v7381_v2 }
 0x15d   :  { %v975_v31 = vpop.f32.mrf.mxu0 }
 0x15e   :  { %312 = vrot.lane.b32.xlu0 %v7203_v23, %s6744_s9  ;;  %5860 = vrot.lane.b32.xlu1 %v5859_v40, %s6749_s18  ;;  %v5864_v10 = vpack.i.bf16 %v10217_v4, %v10214_v42  ;;  %v10205_v52 = vmax.f32 %v7520_v44, 0.0  ;;  %v7534_v53 = vadd.f32 %v975_v31, %v7385_v8 }
 0x15f   :  { %v977_v45 = vpop.f32.mrf.mxu0 }
 0x160   :  { %v7526_v48 = vadd.f32 %v977_v45, %v7381_v2  ;;  %v10206_v62 = vmax.f32 %v7534_v53, 0.0 }
 0x161   :  { %v979_v33 = vpop.f32.mrf.mxu0 }
 0x162   :  { %v10202_v57 = vmax.f32 %v7526_v48, 0.0  ;;  %v7538_v23 = vadd.f32 %v979_v33, %v7385_v8  ;;  %5855 = vrot.lane.b32.xlu0 %v5859_v40, %s6748_s2  ;;  %5865 = vrot.lane.b32.xlu1 %v5864_v10, %s6749_s18 }
 0x163   :  { %v983_v34 = vpop.f32.mrf.mxu0 }
 0x164   :  { %v5874_v58 = vpack.i.bf16 %v10202_v57, %v10205_v52  ;;  %v10209_v59 = vmax.f32 %v7538_v23, 0.0  ;;  %v7549_v35 = vadd.f32 %v983_v34, %v7381_v2 }
 0x165   :  { %v985_v60 = vpop.f32.mrf.mxu0 }
 0x166   :  { %5875 = vrot.lane.b32.xlu0 %v5874_v58, %s6749_s18  ;;  %376 = vrot.lane.b32.xlu1 %v7216_v29, %s6746_s15  ;;  %v5879_v36 = vpack.i.bf16 %v10209_v59, %v10206_v62  ;;  %v10199_v12 = vmax.f32 %v7549_v35, 0.0  ;;  %v7563_v16 = vadd.f32 %v985_v60, %v7385_v8 }
 0x167   :  { %v987_v63 = vpop.f32.mrf.mxu0 }
 0x168   :  { %v7559_v22 = vadd.f32 %v987_v63, %v7381_v2  ;;  %v10200_v33 = vmax.f32 %v7563_v16, 0.0 }
 0x169   :  { %v989_v9 = vpop.f32.mrf.mxu0 }
 0x16a   :  { %v10198_v38 = vmax.f32 %v7559_v22, 0.0  ;;  %v7567_v28 = vadd.f32 %v989_v9, %v7385_v8  ;;  %5880 = vrot.lane.b32.xlu0 %v5879_v36, %s6749_s18  ;;  %5870 = vrot.lane.b32.xlu1 %v5874_v58, %s6748_s2 }
 0x16b   :  { %v993_v40 = vpop.f32.mrf.mxu0 }
 0x16c   :  { %v5889_v31 = vpack.i.bf16 %v10198_v38, %v10199_v12  ;;  %v10201_v45 = vmax.f32 %v7567_v28, 0.0  ;;  %v7578_v34 = vadd.f32 %v993_v40, %v7381_v2 }
 0x16d   :  { %v995_v10 = vpop.f32.mrf.mxu0 }
 0x16e   :  { %440 = vrot.lane.b32.xlu0 %v7443_v41, %s6745_s12  ;;  %5890 = vrot.lane.b32.xlu1 %v5889_v31, %s6749_s18  ;;  %v5894_v60 = vpack.i.bf16 %v10201_v45, %v10200_v33  ;;  %v10204_v9 = vmax.f32 %v7578_v34, 0.0  ;;  %v7592_v40 = vadd.f32 %v995_v10, %v7385_v8 }
 0x16f   :  { %v997_v58 = vpop.f32.mrf.mxu0 }
 0x170   :  { %v7588_v63 = vadd.f32 %v997_v58, %v7381_v2  ;;  %v10208_v10 = vmax.f32 %v7592_v40, 0.0 }
 0x171   :  { %v999_v36 = vpop.f32.mrf.mxu0 }
 0x172   :  { %v10203_v25 = vmax.f32 %v7588_v63, 0.0  ;;  %v7596_v38 = vadd.f32 %v999_v36, %v7385_v8  ;;  %5885 = vrot.lane.b32.xlu0 %v5889_v31, %s6748_s2  ;;  %5895 = vrot.lane.b32.xlu1 %v5894_v60, %s6749_s18 }
 0x173   :  { %v1003_v12 = vpop.f32.mrf.mxu0 }
 0x174   :  { %v5904_v58 = vpack.i.bf16 %v10203_v25, %v10204_v9  ;;  %v10207_v33 = vmax.f32 %v7596_v38, 0.0  ;;  %v7607_v57 = vadd.f32 %v1003_v12, %v7381_v2 }
 0x175   :  { %v1005_v45 = vpop.f32.mrf.mxu0 }
 0x176   :  { %5905 = vrot.lane.b32.xlu0 %v5904_v58, %s6749_s18  ;;  %5900 = vrot.lane.b32.xlu1 %v5904_v58, %s6748_s2  ;;  %v5909_v60 = vpack.i.bf16 %v10207_v33, %v10208_v10  ;;  %v10211_v9 = vmax.f32 %v7607_v57, 0.0  ;;  %v7620_v52 = vadd.f32 %v1005_v45, %v7385_v8 }
 0x177   :  { %v1007_v31 = vpop.f32.mrf.mxu0 }
 0x178   :  { %v7616_v36 = vadd.f32 %v1007_v31, %v7381_v2  ;;  %v10215_v10 = vmax.f32 %v7620_v52, 0.0 }
 0x179   :  { %v1009_v25 = vpop.f32.mrf.mxu0 }
 0x17a   :  { %v10210_v12 = vmax.f32 %v7616_v36, 0.0  ;;  %v7624_v62 = vadd.f32 %v1009_v25, %v7385_v8  ;;  %5910 = vrot.lane.b32.xlu0 %v5909_v60, %s6749_s18  ;;  %378 = vrot.lane.b32.xlu1 %v7443_v41, %s6746_s15 }
 0x17b   :  { %v1013_v58 = vpop.f32.mrf.mxu0 }
 0x17c   :  { %v5919_v31 = vpack.i.bf16 %v10210_v12, %v10211_v9  ;;  %v10216_v33 = vmax.f32 %v7624_v62, 0.0  ;;  %v7636_v59 = vadd.f32 %v1013_v58, %v7381_v2 }
 0x17d   :  { %v1015_v45 = vpop.f32.mrf.mxu0 }
 0x17e   :  { %314 = vrot.lane.b32.xlu0 %v7216_v29, %s6744_s9  ;;  %5920 = vrot.lane.b32.xlu1 %v5919_v31, %s6749_s18  ;;  %v5924_v60 = vpack.i.bf16 %v10216_v33, %v10215_v10  ;;  %v10219_v24 = vmax.f32 %v7636_v59, 0.0  ;;  %v7650_v58 = vadd.f32 %v1015_v45, %v7385_v8 }
 0x17f   :  { %v1017_v25 = vpop.f32.mrf.mxu0 }
 0x180   :  { %v7646_v12 = vadd.f32 %v1017_v25, %v7381_v2  ;;  %v10223_v45 = vmax.f32 %v7650_v58, 0.0 }
 0x181   :  { %v1019_v9 = vpop.f32.mrf.mxu0 }
 0x182   :  { %v10218_v19 = vmax.f32 %v7646_v12, 0.0  ;;  %v7654_v29 = vadd.f32 %v1019_v9, %v7385_v8  ;;  %5915 = vrot.lane.b32.xlu0 %v5919_v31, %s6748_s2  ;;  %5925 = vrot.lane.b32.xlu1 %v5924_v60, %s6749_s18 }
 0x183   :  { %v1023_v42 = vpop.f32.mrf.mxu0 }
 0x184   :  { %v5934_v25 = vpack.i.bf16 %v10218_v19, %v10219_v24  ;;  %v10222_v10 = vmax.f32 %v7654_v29, 0.0  ;;  %v7665_v4 = vadd.f32 %v1023_v42, %v7381_v2 }
 0x185   :  { %v1025_v33 = vpop.f32.mrf.mxu0 }
 0x186   :  { %10402 = vst [vmem:[#allocation5_spill] sm:$0xff] %v7665_v4  ;;  %5935 = vrot.lane.b32.xlu0 %v5934_v25, %s6749_s18  ;;  %5930 = vrot.lane.b32.xlu1 %v5934_v25, %s6748_s2  ;;  %v5939_v31 = vpack.i.bf16 %v10222_v10, %v10223_v45  ;;  %v10226_v24 = vmax.f32 %v7665_v4, 0.0  ;;  %v7678_v0 = vadd.f32 %v1025_v33, %v7385_v8 }
 0x187   :  { %v1027_v9 = vpop.f32.mrf.mxu0 }
 0x188   :  { %v7674_v60 = vadd.f32 %v1027_v9, %v7381_v2  ;;  %10404 = vst [vmem:[#allocation7_spill] sm:$0xff] %v7678_v0  ;;  %v10231_v45 = vmax.f32 %v7678_v0, 0.0 }
 0x189   :  { %v1029_v19 = vpop.f32.mrf.mxu0 }
 0x18a   :  { %10403 = vst [vmem:[#allocation6_spill] sm:$0xff] %v7674_v60  ;;  %v10225_v42 = vmax.f32 %v7674_v60, 0.0  ;;  %v7682_v17 = vadd.f32 %v1029_v19, %v7385_v8  ;;  %5940 = vrot.lane.b32.xlu0 %v5939_v31, %s6749_s18  ;;  %380 = vrot.lane.b32.xlu1 %v7094_v43, %s6746_s15  ;;  %v6733_v19 = vld [vmem:[%s10187_s0] sm:$0xff]   ;;  %v10429_v60 = vmax.f32 %v7398_v14, 0.0 }
 0x18b   :  { %v1033_v25 = vpop.f32.mrf.mxu0 }
 0x18c   :  { %10405 = vst [vmem:[#allocation8_spill] sm:$0xff] %v7682_v17  ;;  %v5949_v9 = vpack.i.bf16 %v10225_v42, %v10226_v24  ;;  %v10232_v10 = vmax.f32 %v7682_v17, 0.0  ;;  %v7694_v7 = vadd.f32 %v1033_v25, %v7381_v2 }
 0x18d   :  { %v1035_v33 = vpop.f32.mrf.mxu0 }
 0x18e   :  { %10406 = vst [vmem:[#allocation9_spill] sm:$0xff] %v7694_v7  ;;  %442 = vrot.lane.b32.xlu0 %v6733_v19, %s6745_s12  ;;  %5950 = vrot.lane.b32.xlu1 %v5949_v9, %s6749_s18  ;;  %v5954_v31 = vpack.i.bf16 %v10232_v10, %v10231_v45  ;;  %v10235_v25 = vmax.f32 %v7694_v7, 0.0  ;;  %v7710_v11 = vadd.f32 %v1035_v33, %v7385_v8 }
 0x18f   :  { %v1037_v43 = vpop.f32.mrf.mxu0 }
 0x190   :  { %v7706_v42 = vadd.f32 %v1037_v43, %v7381_v2  ;;  %10408 = vst [vmem:[#allocation11_spill] sm:$0xff] %v7710_v11  ;;  %v10238_v33 = vmax.f32 %v7710_v11, 0.0 }
 0x191   :  { %v1039_v24 = vpop.f32.mrf.mxu0 }
 0x192   :  { %10407 = vst [vmem:[#allocation10_spill] sm:$0xff] %v7706_v42  ;;  %v10234_v49 = vmax.f32 %v7706_v42, 0.0  ;;  %v7714_v54 = vadd.f32 %v1039_v24, %v7385_v8  ;;  %5945 = vrot.lane.b32.xlu0 %v5949_v9, %s6748_s2  ;;  %5955 = vrot.lane.b32.xlu1 %v5954_v31, %s6749_s18 }
 0x193   :  { %v1043_v56 = vpop.f32.mrf.mxu0 }
 0x194   :  { %10409 = vst [vmem:[#allocation12_spill] sm:$0xff] %v7714_v54  ;;  %v5964_v43 = vpack.i.bf16 %v10234_v49, %v10235_v25  ;;  %v10239_v45 = vmax.f32 %v7714_v54, 0.0  ;;  %v7725_v50 = vadd.f32 %v1043_v56, %v7381_v2 }
 0x195   :  { %v1045_v10 = vpop.f32.mrf.mxu0 }
 0x196   :  { %10410 = vst [vmem:[#allocation13_spill] sm:$0xff] %v7725_v50  ;;  %316 = vrot.lane.b32.xlu0 %v7443_v41, %s6744_s9  ;;  %5965 = vrot.lane.b32.xlu1 %v5964_v43, %s6749_s18  ;;  %v5969_v9 = vpack.i.bf16 %v10239_v45, %v10238_v33  ;;  %v10242_v25 = vmax.f32 %v7725_v50, 0.0  ;;  %v7739_v56 = vadd.f32 %v1045_v10, %v7385_v8 }
 0x197   :  { %v1047_v24 = vpop.f32.mrf.mxu0 }
 0x198   :  { %v7735_v31 = vadd.f32 %v1047_v24, %v7381_v2  ;;  %10412 = vst [vmem:[#allocation15_spill] sm:$0xff] %v7739_v56  ;;  %v10248_v10 = vmax.f32 %v7739_v56, 0.0 }
 0x199   :  { %v1049_v49 = vpop.f32.mrf.mxu0 }
 0x19a   :  { %10411 = vst [vmem:[#allocation14_spill] sm:$0xff] %v7735_v31  ;;  %v10241_v3 = vmax.f32 %v7735_v31, 0.0  ;;  %v7743_v41 = vadd.f32 %v1049_v49, %v7385_v8  ;;  %5960 = vrot.lane.b32.xlu0 %v5964_v43, %s6748_s2  ;;  %5970 = vrot.lane.b32.xlu1 %v5969_v9, %s6749_s18  ;;  %v7759_v49 = vld [vmem:[%s10187_s0 + $0x8] sm:$0xff]  }
 0x19b   :  { %v1053_v20 = vpop.f32.mrf.mxu0 }
 0x19c   :  { %10413 = vst [vmem:[#allocation16_spill] sm:$0xff] %v7743_v41  ;;  %v5979_v24 = vpack.i.bf16 %v10241_v3, %v10242_v25  ;;  %v10249_v33 = vmax.f32 %v7743_v41, 0.0  ;;  %v7754_v6 = vadd.f32 %v1053_v20, %v7381_v2 }
 0x19d   :  { %v1055_v45 = vpop.f32.mrf.mxu0 }
 0x19e   :  { %10414 = vst [vmem:[#allocation17_spill] sm:$0xff] %v7754_v6  ;;  %444 = vrot.lane.b32.xlu0 %v7759_v49, %s6745_s12  ;;  %5980 = vrot.lane.b32.xlu1 %v5979_v24, %s6749_s18  ;;  %v5984_v9 = vpack.i.bf16 %v10249_v33, %v10248_v10  ;;  %v10252_v25 = vmax.f32 %v7754_v6, 0.0  ;;  %v7773_v27 = vadd.f32 %v1055_v45, %v7385_v8 }
 0x19f   :  { %v1057_v43 = vpop.f32.mrf.mxu0 }
 0x1a0   :  { %v7769_v3 = vadd.f32 %v1057_v43, %v7381_v2  ;;  %10416 = vst [vmem:[#allocation19_spill] sm:$0xff] %v7773_v27  ;;  %v10254_v45 = vmax.f32 %v7773_v27, 0.0 }
 0x1a1   :  { %v1059_v20 = vpop.f32.mrf.mxu0 }
 0x1a2   :  { %10415 = vst [vmem:[#allocation18_spill] sm:$0xff] %v7769_v3  ;;  %v10251_v15 = vmax.f32 %v7769_v3, 0.0  ;;  %v7777_v31 = vadd.f32 %v1059_v20, %v7385_v8  ;;  %5975 = vrot.lane.b32.xlu0 %v5979_v24, %s6748_s2  ;;  %5985 = vrot.lane.b32.xlu1 %v5984_v9, %s6749_s18 }
 0x1a3   :  { %v1063_v50 = vpop.f32.mrf.mxu0 }
 0x1a4   :  { %10417 = vst [vmem:[#allocation20_spill] sm:$0xff] %v7777_v31  ;;  %v5994_v43 = vpack.i.bf16 %v10251_v15, %v10252_v25  ;;  %v10255_v10 = vmax.f32 %v7777_v31, 0.0  ;;  %v7797_v15 = vadd.f32 %v1063_v50, %v7381_v2 }
 0x1a5   :  { %v1065_v33 = vpop.f32.mrf.mxu0 }
 0x1a6   :  { %318 = vrot.lane.b32.xlu0 %v6733_v19, %s6744_s9  ;;  %5995 = vrot.lane.b32.xlu1 %v5994_v43, %s6749_s18  ;;  %v5999_v24 = vpack.i.bf16 %v10255_v10, %v10254_v45  ;;  %10419 = vst [vmem:[#allocation22_spill] sm:$0xff] %v7797_v15  ;;  %v7800_v25 = vadd.f32 %v1065_v33, %v7385_v8  ;;  %v10263_v27 = vmax.f32 %v7797_v15, 0.0  ;;  %v7814_v33 = vld [vmem:[%s10187_s0 + $0x10] sm:$0xff]  }
 0x1a7   :  { %v1067_v20 = vpop.f32.mrf.mxu0 }
 0x1a8   :  { %v7794_v9 = vadd.f32 %v1067_v20, %v7381_v2  ;;  %10420 = vst [vmem:[#allocation23_spill] sm:$0xff] %v7800_v25  ;;  %v10264_v50 = vmax.f32 %v7800_v25, 0.0 }
 0x1a9   :  { %v1069_v3 = vpop.f32.mrf.mxu0 }
 0x1aa   :  { %10418 = vst [vmem:[#allocation21_spill] sm:$0xff] %v7794_v9  ;;  %v7803_v19 = vadd.f32 %v1069_v3, %v7385_v8  ;;  %5990 = vrot.lane.b32.xlu0 %v5994_v43, %s6748_s2  ;;  %6000 = vrot.lane.b32.xlu1 %v5999_v24, %s6749_s18  ;;  %v10262_v45 = vmax.f32 %v7794_v9, 0.0 }
 0x1ab   :  { %v1073_v6 = vpop.f32.mrf.mxu0 }
 0x1ac   :  { %10421 = vst [vmem:[#allocation24_spill] sm:$0xff] %v7803_v19  ;;  %v10265_v20 = vmax.f32 %v7803_v19, 0.0  ;;  %v6004_v43 = vpack.i.bf16 %v10262_v45, %v10263_v27  ;;  %v7835_v42 = vadd.f32 %v1073_v6, %v7381_v2 }
 0x1ad   :  { %v1075_v10 = vpop.f32.mrf.mxu0 }
 0x1ae   :  { %446 = vrot.lane.b32.xlu0 %v7814_v33, %s6745_s12  ;;  %382 = vrot.lane.b32.xlu1 %v7759_v49, %s6746_s15  ;;  %v6009_v24 = vpack.i.bf16 %v10265_v20, %v10264_v50  ;;  %v7829_v31 = vadd.f32 %v1075_v10, %v7385_v8  ;;  %10424 = vst [vmem:[#allocation27_spill] sm:$0xff] %v7835_v42  ;;  %v10274_v20 = vmax.f32 %v7835_v42, 0.0 }
 0x1af   :  { %v1077_v3 = vpop.f32.mrf.mxu0 }
 0x1b0   :  { %10422 = vst [vmem:[#allocation25_spill] sm:$0xff] %v7829_v31  ;;  %v7832_v56 = vadd.f32 %v1077_v3, %v7381_v2  ;;  %v10269_v27 = vmax.f32 %v7829_v31, 0.0 }
 0x1b1   :  { %v1079_v41 = vpop.f32.mrf.mxu0 }
 0x1b2   :  { %10423 = vst [vmem:[#allocation26_spill] sm:$0xff] %v7832_v56  ;;  %v7838_v15 = vadd.f32 %v1079_v41, %v7385_v8  ;;  %6005 = vrot.lane.b32.xlu0 %v6004_v43, %s6748_s2  ;;  %6010 = vrot.lane.b32.xlu1 %v6009_v24, %s6749_s18  ;;  %v10273_v10 = vmax.f32 %v7832_v56, 0.0 }
 0x1b3   :  { %v1083_v45 = vpop.f32.mrf.mxu0 }
 0x1b4   :  { %10425 = vst [vmem:[#allocation28_spill] sm:$0xff] %v7838_v15  ;;  %v10270_v50 = vmax.f32 %v7838_v15, 0.0  ;;  %v6019_v24 = vpack.i.bf16 %v10273_v10, %v10274_v20  ;;  %v7856_v9 = vadd.f32 %v1083_v45, %v7381_v2 }
 0x1b5   :  { %v1085_v3 = vpop.f32.mrf.mxu0 }
 0x1b6   :  { %v6024_v6 = vpack.i.bf16 %v10270_v50, %v10269_v27  ;;  %6015 = vrot.lane.b32.xlu1 %v6004_v43, %s6749_s18  ;;  %10426 = vst [vmem:[#allocation29_spill] sm:$0xff] %v7856_v9  ;;  %v7859_v25 = vadd.f32 %v1085_v3, %v7385_v8 }
 0x1b7   :  { %v1087_v41 = vpop.f32.mrf.mxu0 }
 0x1b8   :  { %v7862_v19 = vadd.f32 %v1087_v41, %v7381_v2  ;;  %6025 = vrot.lane.b32.xlu0 %v6024_v6, %s6749_s18  ;;  %v5811_v27 = vpop.permute.xlu1 %5810  ;;  %v10285_v41 = vmax.f32 %v7856_v9, 0.0  ;;  %v10286_v6 = vmax.f32 %v7859_v25, 0.0 }
 0x1b9   :  { %v1089_v50 = vpop.f32.mrf.mxu0  ;;  %v5813_v45 = vunpack.i.h.bf16 %v5811_v27  ;;  %v5812_v10 = vunpack.i.l.bf16 %v5811_v27 }
 0x1ba   :  { %10427 = vst [vmem:[#allocation30_spill] sm:$0xff] %v7862_v19  ;;  %v7867_v42 = vadd.f32 %v1089_v50, %v7385_v8  ;;  %v5816_v56 = vpop.permute.xlu0 %5815  ;;  %6020 = vrot.lane.b32.xlu1 %v6019_v24, %s6748_s2  ;;  %v10428_v27 = vmax.f32 %v7862_v19, 0.0 }
 0x1bb   :  { %v5818_v3 = vunpack.i.h.bf16 %v5816_v56  ;;  %v5817_v20 = vunpack.i.l.bf16 %v5816_v56  ;;  %v1093_v31 = vpop.f32.mrf.mxu0 }
 0x1bc   :  { %v10287_v15 = vmax.f32 %v7867_v42, 0.0  ;;  %6030 = vrot.lane.b32.xlu0 %v6019_v24, %s6749_s18  ;;  %v6034_v11 = vpack.i.bf16 %v10428_v27, %v10285_v41  ;;  %v7889_v9 = vadd.f32 %v1093_v31, %v7381_v2 }
 0x1bd   :  { %v1095_v43 = vpop.f32.mrf.mxu0  ;;  %v2150_v50 = vsel %vm2149_vm4, %v5817_v20, %v5812_v10  ;;  %v2151_v7 = vsel %vm2149_vm4, %v5818_v3, %v5813_v45  ;;  %v10430_v45 = vmax.f32 %v7408_v21, 0.0 }
 0x1be   :  { %v6039_v56 = vpack.i.bf16 %v10287_v15, %v10286_v6  ;;  %v5821_v54 = vpop.permute.xlu0 %5820  ;;  %v2215_v4 = vmax.f32 %v10429_v60, %v2150_v50  ;;  %v7892_v27 = vadd.f32 %v1095_v43, %v7385_v8  ;;  %v10432_v6 = vmax.f32 %v7401_v26, 0.0 }
 0x1bf   :  { %v5823_v24 = vunpack.i.h.bf16 %v5821_v54  ;;  %v5822_v0 = vunpack.i.l.bf16 %v5821_v54  ;;  %v1097_v10 = vpop.f32.mrf.mxu0  ;;  %v2217_v17 = vmax.f32 %v10430_v45, %v2151_v7 }
 0x1c0   :  { %v7895_v41 = vadd.f32 %v1097_v10, %v7381_v2  ;;  %6035 = vrot.lane.b32.xlu0 %v6034_v11, %s6748_s2  ;;  %6040 = vrot.lane.b32.xlu1 %v6039_v56, %s6749_s18  ;;  %v10431_v10 = vmax.f32 %v7395_v61, 0.0 }
 0x1c1   :  { %v1099_v14 = vpop.f32.mrf.mxu0  ;;  %v2343_v54 = vpack.c.bf16 %v2217_v17, %v2215_v4  ;;  %v1765_v60 = vsel %vm1764_vm5, %v5822_v0, %v5817_v20  ;;  %v1766_v21 = vsel %vm1764_vm5, %v5823_v24, %v5818_v3  ;;  %v10290_v20 = vmax.f32 %v7889_v9, 0.0 }
 0x1c2   :  { %v10289_v7 = vmax.f32 %v7895_v41, 0.0  ;;  %v7903_v31 = vadd.f32 %v1099_v14, %v7385_v8  ;;  %v5826_v43 = vpop.permute.xlu0 %5825  ;;  %v5831_v50 = vpop.permute.xlu1 %5830  ;;  %v2214_v45 = vmax.f32 %v10431_v10, %v1765_v60  ;;  %v2216_v56 = vmax.f32 %v10432_v6, %v1766_v21 }
 0x1c3   :  { %v5828_v15 = vunpack.i.h.bf16 %v5826_v43  ;;  %v5827_v19 = vunpack.i.l.bf16 %v5826_v43  ;;  %v5833_v17 = vunpack.i.h.bf16 %v5831_v50  ;;  %v5832_v4 = vunpack.i.l.bf16 %v5831_v50  ;;  %5528 = vmatprep.mubr.msk.bf16.mxu1 %vm2490_vm6, %v2343_v54  ;;  %v1103_v0 = vpop.f32.mrf.mxu0 }
 0x1c4   :  { %v10291_v3 = vmax.f32 %v7892_v27, 0.0  ;;  %v10292_v24 = vmax.f32 %v7903_v31, 0.0  ;;  %6045 = vrot.lane.b32.xlu1 %v6034_v11, %s6749_s18  ;;  %v2342_v14 = vpack.c.bf16 %v2216_v56, %v2214_v45  ;;  %v6049_v54 = vpack.i.bf16 %v10289_v7, %v10290_v20 }
 0x1c5   :  { %v2153_v61 = vsel %vm2149_vm4, %v5833_v17, %v5828_v15  ;;  %v2152_v26 = vsel %vm2149_vm4, %v5832_v4, %v5827_v19  ;;  %v1105_v6 = vpop.f32.mrf.mxu0  ;;  %v10433_v21 = vmax.f32 %v7447_v51, 0.0  ;;  %v10434_v11 = vmax.f32 %v7433_v32, 0.0 }
 0x1c6   :  { %v6054_v60 = vpack.i.bf16 %v10292_v24, %v10291_v3  ;;  %v5836_v50 = vpop.permute.xlu1 %5835  ;;  %v7929_v19 = vadd.f32 %v1103_v0, %v7381_v2  ;;  %v7932_v10 = vadd.f32 %v1105_v6, %v7385_v8  ;;  %2624 = vmatmul.mubr.bf16.vlgmr.msra.gmra.mxu1 %v2342_v14  ;;  %v10436_v14 = vmax.f32 %v7430_v46, 0.0 }
 0x1c7   :  { %v2221_v43 = vmax.f32 %v10433_v21, %v2153_v61  ;;  %v2219_v15 = vmax.f32 %v10434_v11, %v2152_v26  ;;  %v5838_v45 = vunpack.i.h.bf16 %v5836_v50  ;;  %v5837_v56 = vunpack.i.l.bf16 %v5836_v50  ;;  %v1107_v7 = vpop.f32.mrf.mxu0 }
 0x1c8   :  { %v7935_v20 = vadd.f32 %v1107_v7, %v7381_v2  ;;  %6055 = vrot.lane.b32.xlu0 %v6054_v60, %s6749_s18  ;;  %v5846_v51 = vpop.permute.xlu0 %5845  ;;  %6050 = vrot.lane.b32.xlu1 %v6049_v54, %s6748_s2  ;;  %v10293_v11 = vmax.f32 %v7929_v19, 0.0 }
 0x1c9   :  { %v2345_v32 = vpack.c.bf16 %v2221_v43, %v2219_v15  ;;  %v1109_v61 = vpop.f32.mrf.mxu0  ;;  %v1767_v0 = vsel %vm1764_vm5, %v5837_v56, %v5832_v4  ;;  %v1768_v7 = vsel %vm1764_vm5, %v5838_v45, %v5833_v17  ;;  %v10295_v43 = vmax.f32 %v7932_v10, 0.0 }
 0x1ca   :  { %10435 = vst [vmem:[#allocation31_spill] sm:$0xff] %v7935_v20  ;;  %v7942_v6 = vadd.f32 %v1109_v61, %v7385_v8  ;;  %v5841_v21 = vpop.permute.xlu1 %5840  ;;  %v2218_v60 = vmax.f32 %v10436_v14, %v1767_v0  ;;  %v5848_v15 = vunpack.i.h.bf16 %v5846_v51  ;;  %v10437_v4 = vmax.f32 %v7436_v47, 0.0 }
 0x1cb   :  { %5529 = vmatprep.mubr.msk.bf16.mxu1 %vm2490_vm6, %v2345_v32  ;;  %v1113_v50 = vpop.f32.mrf.mxu0  ;;  %v5847_v3 = vunpack.i.l.bf16 %v5846_v51  ;;  %v5843_v24 = vunpack.i.h.bf16 %v5841_v21  ;;  %v5842_v26 = vunpack.i.l.bf16 %v5841_v21  ;;  %v10439_v47 = vmax.f32 %v7935_v20, 0.0 }
 0x1cc   :  { %v2220_v56 = vmax.f32 %v10437_v4, %v1768_v7  ;;  %v10298_v61 = vmax.f32 %v7942_v6, 0.0  ;;  %6060 = vrot.lane.b32.xlu0 %v6049_v54, %s6749_s18  ;;  %v5851_v17 = vpop.permute.xlu0 %5850  ;;  %v7955_v46 = vadd.f32 %v1113_v50, %v7381_v2 }
 0x1cd   :  { %v5853_v45 = vunpack.i.h.bf16 %v5851_v17  ;;  %v5852_v32 = vunpack.i.l.bf16 %v5851_v17  ;;  %v1115_v0 = vpop.f32.mrf.mxu0  ;;  %v6064_v7 = vpack.i.bf16 %v10439_v47, %v10293_v11  ;;  %v10440_v17 = vmax.f32 %v7477_v18, 0.0 }
 0x1ce   :  { %10438 = vst [vmem:[#allocation32_spill] sm:$0xff] %v7955_v46  ;;  %v2344_v14 = vpack.c.bf16 %v2220_v56, %v2218_v60  ;;  %v6069_v51 = vpack.i.bf16 %v10298_v61, %v10295_v43  ;;  %v7966_v54 = vadd.f32 %v1115_v0, %v7385_v8  ;;  %v10441_v11 = vmax.f32 %v7481_v5, 0.0 }
 0x1cf   :  { %v2154_v21 = vsel %vm2149_vm4, %v5852_v32, %v5842_v26  ;;  %v2155_v50 = vsel %vm2149_vm4, %v5853_v45, %v5843_v24  ;;  %v1117_v4 = vpop.f32.mrf.mxu0  ;;  %v1769_v60 = vsel %vm1764_vm5, %v5847_v3, %v5852_v32  ;;  %v1770_v56 = vsel %vm1764_vm5, %v5848_v15, %v5853_v45 }
 0x1d0   :  { %2632 = vmatmul.mubr.bf16.gmra.mxu1 %v2344_v14  ;;  %v2223_v47 = vmax.f32 %v10440_v17, %v2154_v21  ;;  %v2225_v20 = vmax.f32 %v10441_v11, %v2155_v50  ;;  %v7977_v43 = vadd.f32 %v1117_v4, %v7381_v2  ;;  %6065 = vrot.lane.b32.xlu0 %v6064_v7, %s6748_s2  ;;  %v313_v26 = vpop.permute.xlu0 %312  ;;  %v5861_v24 = vpop.permute.xlu1 %5860  ;;  %v10297_v0 = vmax.f32 %v7955_v46, 0.0 }
 0x1d1   :  { %6070 = vrot.lane.b32.xlu1 %v6069_v51, %s6749_s18  ;;  %v1119_v3 = vpop.f32.mrf.mxu0  ;;  %v10443_v15 = vmax.f32 %v7459_v1, 0.0  ;;  %v10444_v32 = vmax.f32 %v7470_v55, 0.0  ;;  %v10301_v21 = vmax.f32 %v7966_v54, 0.0  ;;  %v5863_v4 = vunpack.i.h.bf16 %v5861_v24 }
 0x1d2   :  { %10442 = vst [vmem:[#allocation33_spill] sm:$0xff] %v7977_v43  ;;  %v10296_v18 = vmax.f32 %v7977_v43, 0.0  ;;  %v7986_v5 = vadd.f32 %v1119_v3, %v7385_v8  ;;  %v2347_v11 = vpack.c.bf16 %v2225_v20, %v2223_v47  ;;  %v5862_v1 = vunpack.i.l.bf16 %v5861_v24 }
 0x1d3   :  { %v2222_v45 = vmax.f32 %v10443_v15, %v1769_v60  ;;  %v2224_v14 = vmax.f32 %v10444_v32, %v1770_v56  ;;  %v1123_v50 = vpop.f32.mrf.mxu0  ;;  %v10445_v43 = vmax.f32 %v7510_v39, 0.0 }
 0x1d4   :  { %v6079_v51 = vpack.i.bf16 %v10296_v18, %v10297_v0  ;;  %v10304_v60 = vmax.f32 %v7986_v5, 0.0  ;;  %v5856_v17 = vpop.permute.xlu0 %5855  ;;  %v5866_v3 = vpop.permute.xlu1 %5865  ;;  %5530 = vmatprep.mubr.msk.bf16.mxu1 %vm2490_vm6, %v2347_v11  ;;  %v8003_v24 = vadd.f32 %v1123_v50, %v7381_v2 }
 0x1d5   :  { %6075 = vrot.lane.b32.xlu1 %v6064_v7, %s6749_s18  ;;  %v5858_v55 = vunpack.i.h.bf16 %v5856_v17  ;;  %v5857_v20 = vunpack.i.l.bf16 %v5856_v17  ;;  %v5868_v56 = vunpack.i.h.bf16 %v5866_v3  ;;  %v5867_v47 = vunpack.i.l.bf16 %v5866_v3  ;;  %v1125_v15 = vpop.f32.mrf.mxu0 }
 0x1d6   :  { %v6084_v32 = vpack.i.bf16 %v10304_v60, %v10301_v21  ;;  %v8006_v18 = vadd.f32 %v1125_v15, %v7385_v8  ;;  %v2346_v7 = vpack.c.bf16 %v2224_v14, %v2222_v45  ;;  %v10446_v21 = vmax.f32 %v7506_v30, 0.0 }
 0x1d7   :  { %v2157_v0 = vsel %vm2149_vm4, %v5868_v56, %v5858_v55  ;;  %v2156_v11 = vsel %vm2149_vm4, %v5867_v47, %v5857_v20  ;;  %v1127_v17 = vpop.f32.mrf.mxu0  ;;  %v1771_v3 = vsel %vm1764_vm5, %v5862_v1, %v5867_v47  ;;  %v1772_v61 = vsel %vm1764_vm5, %v5863_v4, %v5868_v56  ;;  %v6736_v20 = vld [vmem:[%s10187_s0 + $0xe0] sm:$0xff]  }
 0x1d8   :  { %v2229_v46 = vmax.f32 %v10445_v43, %v2157_v0  ;;  %v2227_v50 = vmax.f32 %v10446_v21, %v2156_v11  ;;  %2640 = vmatmul.mubr.bf16.gmra.mxu1 %v2346_v7  ;;  %v8017_v15 = vadd.f32 %v1127_v17, %v7381_v2  ;;  %6085 = vrot.lane.b32.xlu0 %v6084_v32, %s6749_s18  ;;  %v5876_v45 = vpop.permute.xlu0 %5875  ;;  %v377_v14 = vpop.permute.xlu1 %376  ;;  %v10448_v1 = vmax.f32 %v7493_v37, 0.0 }
 0x1d9   :  { %6080 = vrot.lane.b32.xlu1 %v6079_v51, %s6748_s2  ;;  %v1129_v55 = vpop.f32.mrf.mxu0  ;;  %v10449_v0 = vmax.f32 %v7497_v13, 0.0  ;;  %v535_v56 = vsel %vm448_vm0, %v6736_v20, %v313_v26  ;;  %v10303_v47 = vmax.f32 %v8003_v24, 0.0  ;;  %v10312_v37 = vmax.f32 %v8006_v18, 0.0 }
 0x1da   :  { %10447 = vst [vmem:[#allocation34_spill] sm:$0xff] %v8017_v15  ;;  %v2226_v4 = vmax.f32 %v10448_v1, %v1771_v3  ;;  %v10302_v39 = vmax.f32 %v8017_v15, 0.0  ;;  %v8025_v43 = vadd.f32 %v1129_v55, %v7385_v8  ;;  %v2349_v30 = vpack.c.bf16 %v2229_v46, %v2227_v50 }
 0x1db   :  { %v2228_v21 = vmax.f32 %v10449_v0, %v1772_v61  ;;  %v5878_v32 = vunpack.i.h.bf16 %v5876_v45  ;;  %v1133_v7 = vpop.f32.mrf.mxu0  ;;  %v5877_v11 = vunpack.i.l.bf16 %v5876_v45  ;;  %v603_v17 = vsel %vm545_vm1, %v535_v56, %v377_v14 }
 0x1dc   :  { %v10321_v46 = vmax.f32 %v8025_v43, 0.0  ;;  %v8038_v13 = vadd.f32 %v1133_v7, %v7381_v2  ;;  %6090 = vrot.lane.b32.xlu0 %v6079_v51, %s6749_s18  ;;  %v5881_v61 = vpop.permute.xlu0 %5880  ;;  %v5871_v3 = vpop.permute.xlu1 %5870  ;;  %5531 = vmatprep.mubr.msk.bf16.mxu1 %vm2490_vm6, %v2349_v30  ;;  %v6094_v45 = vpack.i.bf16 %v10302_v39, %v10303_v47  ;;  %v10450_v39 = vmax.f32 %v7538_v23, 0.0 }
 0x1dd   :  { %v5883_v26 = vunpack.i.h.bf16 %v5881_v61  ;;  %v5882_v50 = vunpack.i.l.bf16 %v5881_v61  ;;  %v5873_v55 = vunpack.i.h.bf16 %v5871_v3  ;;  %v5872_v1 = vunpack.i.l.bf16 %v5871_v3  ;;  %v1135_v0 = vpop.f32.mrf.mxu0 }
 0x1de   :  { %v6099_v14 = vpack.i.bf16 %v10321_v46, %v10312_v37  ;;  %v8051_v51 = vadd.f32 %v1135_v0, %v7385_v8  ;;  %v2348_v20 = vpack.c.bf16 %v2228_v21, %v2226_v4  ;;  %v10451_v60 = vmax.f32 %v7534_v53, 0.0 }
 0x1df   :  { %v2159_v30 = vsel %vm2149_vm4, %v5883_v26, %v5873_v55  ;;  %v2158_v56 = vsel %vm2149_vm4, %v5882_v50, %v5872_v1  ;;  %v1137_v7 = vpop.f32.mrf.mxu0  ;;  %v1773_v61 = vsel %vm1764_vm5, %v5877_v11, %v5882_v50  ;;  %v1774_v3 = vsel %vm1764_vm5, %v5878_v32, %v5883_v26 }
 0x1e0   :  { %v2233_v47 = vmax.f32 %v10450_v39, %v2159_v30  ;;  %v2231_v15 = vmax.f32 %v10451_v60, %v2158_v56  ;;  %2648 = vmatmul.mubr.bf16.gmra.mxu1 %v2348_v20  ;;  %v8062_v0 = vadd.f32 %v1137_v7, %v7381_v2  ;;  %6095 = vrot.lane.b32.xlu0 %v6094_v45, %s6748_s2  ;;  %v441_v4 = vpop.permute.xlu0 %440  ;;  %v5891_v21 = vpop.permute.xlu1 %5890  ;;  %v10307_v55 = vmax.f32 %v8038_v13, 0.0 }
 0x1e1   :  { %v696_v11 = vsel %vm610_vm2, %v603_v17, %v441_v4  ;;  %6100 = vrot.lane.b32.xlu1 %v6099_v14, %s6749_s18  ;;  %v1139_v32 = vpop.f32.mrf.mxu0  ;;  %v10452_v23 = vmax.f32 %v7520_v44, 0.0  ;;  %v10453_v50 = vmax.f32 %v7526_v48, 0.0  ;;  %v10308_v20 = vmax.f32 %v8051_v51, 0.0 }
 0x1e2   :  { %v10306_v53 = vmax.f32 %v8062_v0, 0.0  ;;  %v8072_v60 = vadd.f32 %v1139_v32, %v7385_v8  ;;  %1212 = vmatmul.mubr.bf16.gmra.mxu0 %v696_v11  ;;  %v2351_v26 = vpack.c.bf16 %v2233_v47, %v2231_v15  ;;  %v5893_v17 = vunpack.i.h.bf16 %v5891_v21 }
 0x1e3   :  { %v2230_v39 = vmax.f32 %v10452_v23, %v1773_v61  ;;  %v2232_v1 = vmax.f32 %v10453_v50, %v1774_v3  ;;  %v1143_v30 = vpop.f32.mrf.mxu0  ;;  %5514 = vmatprep.mubr.msk.bf16.mxu0 %vm448_vm0, %v7759_v49  ;;  %v5892_v14 = vunpack.i.l.bf16 %v5891_v21 }
 0x1e4   :  { %v6109_v44 = vpack.i.bf16 %v10306_v53, %v10307_v55  ;;  %v10311_v56 = vmax.f32 %v8072_v60, 0.0  ;;  %v5886_v7 = vpop.permute.xlu0 %5885  ;;  %v5896_v15 = vpop.permute.xlu1 %5895  ;;  %5532 = vmatprep.mubr.msk.bf16.mxu1 %vm2490_vm6, %v2351_v26  ;;  %v8091_v21 = vadd.f32 %v1143_v30, %v7381_v2  ;;  %v10455_v55 = vmax.f32 %v7563_v16, 0.0 }
 0x1e5   :  { %v5888_v48 = vunpack.i.h.bf16 %v5886_v7  ;;  %v5887_v47 = vunpack.i.l.bf16 %v5886_v7  ;;  %6105 = vrot.lane.b32.xlu1 %v6094_v45, %s6749_s18  ;;  %v5898_v61 = vunpack.i.h.bf16 %v5896_v15  ;;  %v5897_v3 = vunpack.i.l.bf16 %v5896_v15  ;;  %v1145_v49 = vpop.f32.mrf.mxu0 }
 0x1e6   :  { %v6114_v4 = vpack.i.bf16 %v10311_v56, %v10308_v20  ;;  %v8094_v11 = vadd.f32 %v1145_v49, %v7385_v8  ;;  %v2350_v32 = vpack.c.bf16 %v2232_v1, %v2230_v39  ;;  %v10454_v15 = vmax.f32 %v7567_v28, 0.0 }
 0x1e7   :  { %v2161_v23 = vsel %vm2149_vm4, %v5898_v61, %v5888_v48  ;;  %v2160_v26 = vsel %vm2149_vm4, %v5897_v3, %v5887_v47  ;;  %v1147_v45 = vpop.f32.mrf.mxu0  ;;  %v1775_v50 = vsel %vm1764_vm5, %v5892_v14, %v5897_v3  ;;  %v1776_v7 = vsel %vm1764_vm5, %v5893_v17, %v5898_v61 }
 0x1e8   :  { %v2237_v53 = vmax.f32 %v10454_v15, %v2161_v23  ;;  %v2235_v30 = vmax.f32 %v10455_v55, %v2160_v26  ;;  %2656 = vmatmul.mubr.bf16.gmra.mxu1 %v2350_v32  ;;  %v8105_v49 = vadd.f32 %v1147_v45, %v7381_v2  ;;  %6115 = vrot.lane.b32.xlu0 %v6114_v4, %s6749_s18  ;;  %v5906_v39 = vpop.permute.xlu0 %5905  ;;  %v5901_v1 = vpop.permute.xlu1 %5900  ;;  %v10456_v16 = vmax.f32 %v7549_v35, 0.0 }
 0x1e9   :  { %6110 = vrot.lane.b32.xlu1 %v6109_v44, %s6748_s2  ;;  %v1149_v48 = vpop.f32.mrf.mxu0  ;;  %v10310_v47 = vmax.f32 %v8091_v21, 0.0  ;;  %v10315_v61 = vmax.f32 %v8094_v11, 0.0  ;;  %v10457_v4 = vmax.f32 %v7559_v22, 0.0  ;;  %v5908_v23 = vunpack.i.h.bf16 %v5906_v39 }
 0x1ea   :  { %v10309_v14 = vmax.f32 %v8105_v49, 0.0  ;;  %v8111_v17 = vadd.f32 %v1149_v48, %v7385_v8  ;;  %v2353_v28 = vpack.c.bf16 %v2237_v53, %v2235_v30  ;;  %v2234_v55 = vmax.f32 %v10456_v16, %v1775_v50 }
 0x1eb   :  { %v1153_v3 = vpop.f32.mrf.mxu0  ;;  %v2236_v32 = vmax.f32 %v10457_v4, %v1776_v7  ;;  %v5907_v26 = vunpack.i.l.bf16 %v5906_v39  ;;  %v5903_v45 = vunpack.i.h.bf16 %v5901_v1  ;;  %v5902_v35 = vunpack.i.l.bf16 %v5901_v1 }
 0x1ec   :  { %v10316_v15 = vmax.f32 %v8111_v17, 0.0  ;;  %6120 = vrot.lane.b32.xlu0 %v6109_v44, %s6749_s18  ;;  %v5911_v48 = vpop.permute.xlu0 %5910  ;;  %v8121_v53 = vpop.permute.xlu1 %378  ;;  %5533 = vmatprep.mubr.msk.bf16.mxu1 %vm2490_vm6, %v2353_v28  ;;  %v8125_v50 = vadd.f32 %v1153_v3, %v7381_v2  ;;  %v6124_v7 = vpack.i.bf16 %v10309_v14, %v10310_v47  ;;  %v10458_v14 = vmax.f32 %v7592_v40, 0.0 }
 0x1ed   :  { %v5913_v30 = vunpack.i.h.bf16 %v5911_v48  ;;  %v5912_v16 = vunpack.i.l.bf16 %v5911_v48  ;;  %v1155_v22 = vpop.f32.mrf.mxu0  ;;  %v2352_v1 = vpack.c.bf16 %v2236_v32, %v2234_v55  ;;  %v10459_v56 = vmax.f32 %v7596_v38, 0.0 }
 0x1ee   :  { %v6129_v44 = vpack.i.bf16 %v10316_v15, %v10315_v61  ;;  %v8136_v39 = vadd.f32 %v1155_v22, %v7385_v8  ;;  %v10462_v61 = vmax.f32 %v7624_v62, 0.0 }
 0x1ef   :  { %v2162_v28 = vsel %vm2149_vm4, %v5912_v16, %v5902_v35  ;;  %v2163_v3 = vsel %vm2149_vm4, %v5913_v30, %v5903_v45  ;;  %v1157_v4 = vpop.f32.mrf.mxu0  ;;  %v1777_v48 = vsel %vm1764_vm5, %v5907_v26, %v5912_v16  ;;  %v1778_v20 = vsel %vm1764_vm5, %v5908_v23, %v5913_v30 }
 0x1f0   :  { %v2239_v47 = vmax.f32 %v10458_v14, %v2162_v28  ;;  %v2241_v37 = vmax.f32 %v10459_v56, %v2163_v3  ;;  %2664 = vmatmul.mubr.bf16.gmra.mxu1 %v2352_v1  ;;  %v8147_v22 = vadd.f32 %v1157_v4, %v7381_v2  ;;  %6125 = vrot.lane.b32.xlu0 %v6124_v7, %s6748_s2  ;;  %v315_v55 = vpop.permute.xlu0 %314  ;;  %v5921_v32 = vpop.permute.xlu1 %5920  ;;  %v10314_v45 = vmax.f32 %v8125_v50, 0.0  ;;  %v6737_v1 = vld [vmem:[%s10187_s0 + $0xe8] sm:$0xff]  }
 0x1f1   :  { %6130 = vrot.lane.b32.xlu1 %v6129_v44, %s6749_s18  ;;  %v1159_v26 = vpop.f32.mrf.mxu0  ;;  %v10460_v23 = vmax.f32 %v7578_v34, 0.0  ;;  %v10461_v35 = vmax.f32 %v7588_v63, 0.0  ;;  %v10317_v16 = vmax.f32 %v8136_v39, 0.0  ;;  %v538_v44 = vsel %vm448_vm0, %v6737_v1, %v315_v55 }
 0x1f2   :  { %v10313_v14 = vmax.f32 %v8147_v22, 0.0  ;;  %v8156_v38 = vadd.f32 %v1159_v26, %v7385_v8  ;;  %v2355_v56 = vpack.c.bf16 %v2241_v37, %v2239_v47  ;;  %v5923_v3 = vunpack.i.h.bf16 %v5921_v32 }
 0x1f3   :  { %v2238_v40 = vmax.f32 %v10460_v23, %v1777_v48  ;;  %v2240_v30 = vmax.f32 %v10461_v35, %v1778_v20  ;;  %v1163_v28 = vpop.f32.mrf.mxu0  ;;  %v5922_v4 = vunpack.i.l.bf16 %v5921_v32 }
 0x1f4   :  { %v6139_v34 = vpack.i.bf16 %v10313_v14, %v10314_v45  ;;  %v10320_v37 = vmax.f32 %v8156_v38, 0.0  ;;  %v5916_v63 = vpop.permute.xlu0 %5915  ;;  %v5926_v20 = vpop.permute.xlu1 %5925  ;;  %5534 = vmatprep.mubr.msk.bf16.mxu1 %vm2490_vm6, %v2355_v56  ;;  %v8177_v32 = vadd.f32 %v1163_v28, %v7381_v2 }
 0x1f5   :  { %v5918_v47 = vunpack.i.h.bf16 %v5916_v63  ;;  %v5917_v48 = vunpack.i.l.bf16 %v5916_v63  ;;  %6135 = vrot.lane.b32.xlu1 %v6124_v7, %s6749_s18  ;;  %v5928_v26 = vunpack.i.h.bf16 %v5926_v20  ;;  %v5927_v55 = vunpack.i.l.bf16 %v5926_v20  ;;  %v1165_v23 = vpop.f32.mrf.mxu0 }
 0x1f6   :  { %v6144_v35 = vpack.i.bf16 %v10320_v37, %v10317_v16  ;;  %v8180_v1 = vadd.f32 %v1165_v23, %v7385_v8  ;;  %v2354_v14 = vpack.c.bf16 %v2240_v30, %v2238_v40  ;;  %v10463_v16 = vmax.f32 %v7620_v52, 0.0 }
 0x1f7   :  { %v2165_v56 = vsel %vm2149_vm4, %v5928_v26, %v5918_v47  ;;  %v2164_v63 = vsel %vm2149_vm4, %v5927_v55, %v5917_v48  ;;  %v1167_v7 = vpop.f32.mrf.mxu0  ;;  %v1779_v20 = vsel %vm1764_vm5, %v5922_v4, %v5927_v55  ;;  %v1780_v45 = vsel %vm1764_vm5, %v5923_v3, %v5928_v26 }
 0x1f8   :  { %v2245_v15 = vmax.f32 %v10462_v61, %v2165_v56  ;;  %v2243_v28 = vmax.f32 %v10463_v16, %v2164_v63  ;;  %2672 = vmatmul.mubr.bf16.gmra.mxu1 %v2354_v14  ;;  %v8191_v23 = vadd.f32 %v1167_v7, %v7381_v2  ;;  %6145 = vrot.lane.b32.xlu0 %v6144_v35, %s6749_s18  ;;  %v5936_v40 = vpop.permute.xlu0 %5935  ;;  %v5931_v30 = vpop.permute.xlu1 %5930  ;;  %v10464_v52 = vmax.f32 %v7607_v57, 0.0 }
 0x1f9   :  { %6140 = vrot.lane.b32.xlu1 %v6139_v34, %s6748_s2  ;;  %v1169_v47 = vpop.f32.mrf.mxu0  ;;  %v10319_v14 = vmax.f32 %v8177_v32, 0.0  ;;  %v10326_v16 = vmax.f32 %v8180_v1, 0.0  ;;  %v10465_v26 = vmax.f32 %v7616_v36, 0.0  ;;  %v605_v35 = vsel %vm545_vm1, %v538_v44, %v8121_v53 }
 0x1fa   :  { %v10318_v4 = vmax.f32 %v8191_v23, 0.0  ;;  %v8197_v3 = vadd.f32 %v1169_v47, %v7385_v8  ;;  %v2357_v62 = vpack.c.bf16 %v2245_v15, %v2243_v28  ;;  %v2242_v61 = vmax.f32 %v10464_v52, %v1779_v20 }
 0x1fb   :  { %v1173_v48 = vpop.f32.mrf.mxu0  ;;  %v2244_v55 = vmax.f32 %v10465_v26, %v1780_v45  ;;  %v5938_v56 = vunpack.i.h.bf16 %v5936_v40  ;;  %v5937_v63 = vunpack.i.l.bf16 %v5936_v40  ;;  %v5933_v7 = vunpack.i.h.bf16 %v5931_v30 }
 0x1fc   :  { %v10327_v47 = vmax.f32 %v8197_v3, 0.0  ;;  %6150 = vrot.lane.b32.xlu0 %v6139_v34, %s6749_s18  ;;  %v5941_v57 = vpop.permute.xlu0 %5940  ;;  %v8209_v15 = vpop.permute.xlu1 %380  ;;  %5535 = vmatprep.mubr.msk.bf16.mxu1 %vm2490_vm6, %v2357_v62  ;;  %v5932_v20 = vunpack.i.l.bf16 %v5931_v30  ;;  %v8213_v28 = vadd.f32 %v1173_v48, %v7381_v2  ;;  %v6154_v53 = vpack.i.bf16 %v10318_v4, %v10319_v14 }
 0x1fd   :  { %v5943_v36 = vunpack.i.h.bf16 %v5941_v57  ;;  %v5942_v45 = vunpack.i.l.bf16 %v5941_v57  ;;  %v1175_v52 = vpop.f32.mrf.mxu0  ;;  %v2356_v40 = vpack.c.bf16 %v2244_v55, %v2242_v61  ;;  %v10466_v4 = vmax.f32 %v7650_v58, 0.0 }
 0x1fe   :  { %v6159_v44 = vpack.i.bf16 %v10327_v47, %v10326_v16  ;;  %v8224_v34 = vadd.f32 %v1175_v52, %v7385_v8  ;;  %v10467_v37 = vmax.f32 %v7654_v29, 0.0  ;;  %v10468_v58 = vmax.f32 %v7636_v59, 0.0  ;;  %v6602_v29 = vld [vmem:[%s10191_s3 + $0x70] ss:$8 sps:$4 sm:$0xff]  }
 0x1ff   :  { %v2166_v30 = vsel %vm2149_vm4, %v5942_v45, %v5932_v20  ;;  %v2167_v62 = vsel %vm2149_vm4, %v5943_v36, %v5933_v7  ;;  %v1177_v48 = vpop.f32.mrf.mxu0  ;;  %v1781_v26 = vsel %vm1764_vm5, %v5937_v63, %v5942_v45  ;;  %v1782_v57 = vsel %vm1764_vm5, %v5938_v56, %v5943_v36 }
 0x200   :  { %v2247_v14 = vmax.f32 %v10466_v4, %v2166_v30  ;;  %v2249_v46 = vmax.f32 %v10467_v37, %v2167_v62  ;;  %2680 = vmatmul.mubr.bf16.gmra.mxu1 %v2356_v40  ;;  %v8235_v52 = vadd.f32 %v1177_v48, %v7381_v2  ;;  %6155 = vrot.lane.b32.xlu0 %v6154_v53, %s6748_s2  ;;  %v443_v61 = vpop.permute.xlu0 %442  ;;  %v5951_v55 = vpop.permute.xlu1 %5950  ;;  %v10323_v7 = vmax.f32 %v8213_v28, 0.0 }
 0x201   :  { %v699_v63 = vsel %vm610_vm2, %v605_v35, %v443_v61  ;;  %6160 = vrot.lane.b32.xlu1 %v6159_v44, %s6749_s18  ;;  %v1179_v56 = vpop.f32.mrf.mxu0  ;;  %v2246_v4 = vmax.f32 %v10468_v58, %v1781_v26  ;;  %v10469_v45 = vmax.f32 %v7646_v12, 0.0  ;;  %v6604_v44 = vld [vmem:[%s10191_s3 + $0x74] ss:$8 sps:$4 sm:$0xff]   ;;  %v10324_v59 = vmax.f32 %v8224_v34, 0.0 }
 0x202   :  { %v10322_v37 = vmax.f32 %v8235_v52, 0.0  ;;  %v8248_v20 = vadd.f32 %v1179_v56, %v7385_v8  ;;  %1222 = vmatmul.mubr.bf16.gmra.mxu0 %v699_v63  ;;  %v2359_v36 = vpack.c.bf16 %v2249_v46, %v2247_v14  ;;  %v5953_v30 = vunpack.i.h.bf16 %v5951_v55  ;;  %3633 = vmatprep.subr.bf16.mxu0 %v6604_v44 }
 0x203   :  { %v2248_v35 = vmax.f32 %v10469_v45, %v1782_v57  ;;  %v1183_v40 = vpop.f32.mrf.mxu0  ;;  %5515 = vmatprep.mubr.msk.bf16.mxu0 %vm448_vm0, %v7814_v33  ;;  %v5952_v62 = vunpack.i.l.bf16 %v5951_v55  ;;  %3634 = vmatpush1.bf16.msra.mxu0 %v6602_v29 }
 0x204   :  { %v10325_v48 = vmax.f32 %v8248_v20, 0.0  ;;  %v8260_v26 = vadd.f32 %v1183_v40, %v7381_v2  ;;  %v5946_v46 = vpop.permute.xlu0 %5945  ;;  %v5956_v12 = vpop.permute.xlu1 %5955  ;;  %5536 = vmatprep.mubr.msk.bf16.mxu1 %vm2490_vm6, %v2359_v36  ;;  %v6169_v33 = vpack.i.bf16 %v10322_v37, %v10323_v7 }
 0x205   :  { %v5948_v14 = vunpack.i.h.bf16 %v5946_v46  ;;  %v5947_v57 = vunpack.i.l.bf16 %v5946_v46  ;;  %6165 = vrot.lane.b32.xlu1 %v6154_v53, %s6749_s18  ;;  %v5958_v61 = vunpack.i.h.bf16 %v5956_v12  ;;  %v5957_v63 = vunpack.i.l.bf16 %v5956_v12  ;;  %v1185_v56 = vpop.f32.mrf.mxu0  ;;  %v6605_v46 = vld [vmem:[%s10191_s3 + $0x170] ss:$8 sps:$4 sm:$0xff]   ;;  %v6607_v12 = vld [vmem:[%s10191_s3 + $0x174] ss:$8 sps:$4 sm:$0xff]  }
 0x206   :  { %10470 = vst [vmem:[#allocation35_spill] sm:$0xff] %v8260_v26  ;;  %v6174_v55 = vpack.i.bf16 %v10325_v48, %v10324_v59  ;;  %v8273_v58 = vadd.f32 %v1185_v56, %v7385_v8  ;;  %v2358_v36 = vpack.c.bf16 %v2248_v35, %v2246_v4  ;;  %v10472_v56 = vld [vmem:[#allocation8_spill] sm:$0xff]  ;;  %v10474_v35 = vld [vmem:[#allocation7_spill] sm:$0xff]  ;;  %3826 = vmatprep.subr.bf16.mxu1 %v6607_v12 }
 0x207   :  { %v2169_v53 = vsel %vm2149_vm4, %v5958_v61, %v5948_v14  ;;  %v2168_v45 = vsel %vm2149_vm4, %v5957_v63, %v5947_v57  ;;  %v1187_v44 = vpop.f32.mrf.mxu0  ;;  %v1783_v29 = vsel %vm1764_vm5, %v5952_v62, %v5957_v63  ;;  %v1784_v40 = vsel %vm1764_vm5, %v5953_v30, %v5958_v61  ;;  %v6738_v63 = vld [vmem:[%s10187_s0 + $0xf0] sm:$0xff]   ;;  %3827 = vmatpush1.bf16.msra.mxu1 %v6605_v46 }
 0x208   :  { %10471 = vst [vmem:[#allocation36_spill] sm:$0xff] %v8273_v58  ;;  %v10473_v37 = vmax.f32 %v10472_v56, 0.0  ;;  %v10475_v14 = vmax.f32 %v10474_v35, 0.0  ;;  %2688 = vmatmul.mubr.bf16.gmra.mxu1 %v2358_v36  ;;  %v8290_v57 = vadd.f32 %v1187_v44, %v7381_v2  ;;  %6175 = vrot.lane.b32.xlu0 %v6174_v55, %s6749_s18  ;;  %v317_v30 = vpop.permute.xlu0 %316  ;;  %v5966_v62 = vpop.permute.xlu1 %5965  ;;  %v10333_v16 = vmax.f32 %v8273_v58, 0.0 }
 0x209   :  { %v541_v56 = vsel %vm448_vm0, %v6738_v63, %v317_v30  ;;  %6170 = vrot.lane.b32.xlu1 %v6169_v33, %s6748_s2  ;;  %v5968_v30 = vunpack.i.h.bf16 %v5966_v62  ;;  %v5967_v47 = vunpack.i.l.bf16 %v5966_v62  ;;  %v10483_v62 = vmax.f32 %v8260_v26, 0.0  ;;  %v10487_v26 = vld [vmem:[#allocation11_spill] sm:$0xff] }
 0x20a   :  { %v2253_v4 = vmax.f32 %v10473_v37, %v2169_v53  ;;  %v2251_v7 = vmax.f32 %v10475_v14, %v2168_v45  ;;  %10476 = vst [vmem:[#allocation8_spill] sm:$0xff] %v8290_v57  ;;  %v1189_v37 = vpop.f32.mrf.mxu0  ;;  %v10477_v53 = vld [vmem:[#allocation5_spill] sm:$0xff]  ;;  %v10329_v44 = vmax.f32 %v8290_v57, 0.0  ;;  %v10480_v14 = vld [vmem:[#allocation6_spill] sm:$0xff]  ;;  %v10485_v57 = vld [vmem:[#allocation12_spill] sm:$0xff]  ;;  %v10488_v58 = vmax.f32 %v10487_v26, 0.0 }
 0x20b   :  { %v10478_v36 = vmax.f32 %v10477_v53, 0.0  ;;  %v8303_v55 = vadd.f32 %v1189_v37, %v7385_v8  ;;  %v10481_v59 = vmax.f32 %v10480_v14, 0.0  ;;  %v6608_v26 = vld [vmem:[%s10191_s3 + $0x60] ss:$8 sps:$4 sm:$0xff]  }
 0x20c   :  { %v2361_v35 = vpack.c.bf16 %v2253_v4, %v2251_v7  ;;  %v1193_v63 = vpop.f32.mrf.mxu0  ;;  %6180 = vrot.lane.b32.xlu0 %v6169_v33, %s6749_s18  ;;  %v5961_v12 = vpop.permute.xlu0 %5960  ;;  %v607_v7 = vsel %vm545_vm1, %v541_v56, %v8209_v15 }
 0x20d   :  { %v2250_v45 = vmax.f32 %v10478_v36, %v1783_v29  ;;  %10479 = vst [vmem:[#allocation7_spill] sm:$0xff] %v8303_v55  ;;  %v2252_v48 = vmax.f32 %v10481_v59, %v1784_v40  ;;  %v10334_v61 = vmax.f32 %v8303_v55, 0.0  ;;  %v8310_v29 = vadd.f32 %v1193_v63, %v7381_v2  ;;  %v5971_v37 = vpop.permute.xlu1 %5970 }
 0x20e   :  { %5537 = vmatprep.mubr.msk.bf16.mxu1 %vm2490_vm6, %v2361_v35  ;;  %v5963_v59 = vunpack.i.h.bf16 %v5961_v12  ;;  %v5962_v40 = vunpack.i.l.bf16 %v5961_v12  ;;  %v5973_v46 = vunpack.i.h.bf16 %v5971_v37  ;;  %v5972_v4 = vunpack.i.l.bf16 %v5971_v37  ;;  %v1195_v53 = vpop.f32.mrf.mxu0 }
 0x20f   :  { %10482 = vst [vmem:[#allocation5_spill] sm:$0xff] %v8310_v29  ;;  %v6184_v36 = vpack.i.bf16 %v10329_v44, %v10483_v62  ;;  %v6189_v33 = vpack.i.bf16 %v10334_v61, %v10333_v16  ;;  %v8325_v35 = vadd.f32 %v1195_v53, %v7385_v8  ;;  %v2360_v14 = vpack.c.bf16 %v2252_v48, %v2250_v45  ;;  %v10494_v61 = vld [vmem:[#allocation16_spill] sm:$0xff] }
 0x210   :  { %v2171_v15 = vsel %vm2149_vm4, %v5973_v46, %v5963_v59  ;;  %v2170_v56 = vsel %vm2149_vm4, %v5972_v4, %v5962_v40  ;;  %v1197_v63 = vpop.f32.mrf.mxu0  ;;  %v1785_v12 = vsel %vm1764_vm5, %v5967_v47, %v5972_v4  ;;  %v1786_v37 = vsel %vm1764_vm5, %v5968_v30, %v5973_v46  ;;  %v445_v48 = vpop.permute.xlu0 %444 }
 0x211   :  { %10484 = vst [vmem:[#allocation6_spill] sm:$0xff] %v8325_v35  ;;  %v10486_v62 = vmax.f32 %v10485_v57, 0.0  ;;  %v2255_v55 = vmax.f32 %v10488_v58, %v2170_v56  ;;  %2696 = vmatmul.mubr.bf16.gmra.mxu1 %v2360_v14  ;;  %v8336_v53 = vadd.f32 %v1197_v63, %v7381_v2  ;;  %6185 = vrot.lane.b32.xlu0 %v6184_v36, %s6748_s2  ;;  %v5981_v45 = vpop.permute.xlu1 %5980  ;;  %v10336_v59 = vmax.f32 %v8310_v29, 0.0  ;;  %v10490_v57 = vld [vmem:[#allocation9_spill] sm:$0xff]  ;;  %v6610_v58 = vld [vmem:[%s10191_s3 + $0x64] ss:$8 sps:$4 sm:$0xff]  }
 0x212   :  { %v702_v47 = vsel %vm610_vm2, %v607_v7, %v445_v48  ;;  %6190 = vrot.lane.b32.xlu1 %v6189_v33, %s6749_s18  ;;  %v1199_v30 = vpop.f32.mrf.mxu0  ;;  %v10491_v40 = vmax.f32 %v10490_v57, 0.0  ;;  %v10492_v33 = vld [vmem:[#allocation10_spill] sm:$0xff]  ;;  %v10340_v63 = vmax.f32 %v8325_v35, 0.0  ;;  %3635 = vmatprep.subr.bf16.mxu0 %v6610_v58  ;;  %v5983_v48 = vunpack.i.h.bf16 %v5981_v45 }
 0x213   :  { %v2257_v44 = vmax.f32 %v10486_v62, %v2171_v15  ;;  %10489 = vst [vmem:[#allocation12_spill] sm:$0xff] %v8336_v53  ;;  %v10335_v4 = vmax.f32 %v8336_v53, 0.0  ;;  %v8352_v14 = vadd.f32 %v1199_v30, %v7385_v8  ;;  %1232 = vmatmul.mubr.bf16.gmra.mxu0 %v702_v47  ;;  %v10493_v15 = vmax.f32 %v10492_v33, 0.0  ;;  %v6739_v62 = vld [vmem:[%s10187_s0 + $0x18] sm:$0xff]   ;;  %v10496_v53 = vld [vmem:[#allocation15_spill] sm:$0xff] }
 0x214   :  { %v2254_v46 = vmax.f32 %v10491_v40, %v1785_v12  ;;  %v1203_v12 = vpop.f32.mrf.mxu0  ;;  %5516 = vmatprep.mubr.msk.bf16.mxu0 %vm448_vm0, %v6739_v62  ;;  %v5982_v57 = vunpack.i.l.bf16 %v5981_v45  ;;  %3636 = vmatpush1.bf16.msra.mxu0 %v6608_v26  ;;  %v10497_v29 = vmax.f32 %v10496_v53, 0.0 }
 0x215   :  { %v2363_v7 = vpack.c.bf16 %v2257_v44, %v2255_v55  ;;  %v2256_v56 = vmax.f32 %v10493_v15, %v1786_v37  ;;  %v10341_v30 = vmax.f32 %v8352_v14, 0.0  ;;  %v8363_v47 = vadd.f32 %v1203_v12, %v7381_v2  ;;  %v5976_v44 = vpop.permute.xlu0 %5975  ;;  %v5986_v55 = vpop.permute.xlu1 %5985 }
 0x216   :  { %v5978_v37 = vunpack.i.h.bf16 %v5976_v44  ;;  %v5977_v40 = vunpack.i.l.bf16 %v5976_v44  ;;  %6195 = vrot.lane.b32.xlu1 %v6184_v36, %s6749_s18  ;;  %v5988_v33 = vunpack.i.h.bf16 %v5986_v55  ;;  %v5987_v15 = vunpack.i.l.bf16 %v5986_v55  ;;  %v1205_v62 = vpop.f32.mrf.mxu0 }
 0x217   :  { %5538 = vmatprep.mubr.msk.bf16.mxu1 %vm2490_vm6, %v2363_v7  ;;  %v6199_v45 = vpack.i.bf16 %v10335_v4, %v10336_v59  ;;  %v6204_v58 = vpack.i.bf16 %v10341_v30, %v10340_v63  ;;  %v8376_v7 = vadd.f32 %v1205_v62, %v7385_v8  ;;  %v2362_v26 = vpack.c.bf16 %v2256_v56, %v2254_v46 }
 0x218   :  { %v2173_v12 = vsel %vm2149_vm4, %v5988_v33, %v5978_v37  ;;  %v2172_v36 = vsel %vm2149_vm4, %v5987_v15, %v5977_v40  ;;  %v1207_v44 = vpop.f32.mrf.mxu0  ;;  %v1787_v55 = vsel %vm1764_vm5, %v5982_v57, %v5987_v15  ;;  %v1788_v16 = vsel %vm1764_vm5, %v5983_v48, %v5988_v33  ;;  %v10498_v48 = vld [vmem:[#allocation13_spill] sm:$0xff]  ;;  %v10500_v33 = vld [vmem:[#allocation14_spill] sm:$0xff] }
 0x219   :  { %v10495_v4 = vmax.f32 %v10494_v61, 0.0  ;;  %v2259_v35 = vmax.f32 %v10497_v29, %v2172_v36  ;;  %2704 = vmatmul.mubr.bf16.gmra.mxu1 %v2362_v26  ;;  %v8387_v62 = vadd.f32 %v1207_v44, %v7381_v2  ;;  %6205 = vrot.lane.b32.xlu0 %v6204_v58, %s6749_s18  ;;  %v319_v46 = vpop.permute.xlu0 %318  ;;  %v5996_v56 = vpop.permute.xlu1 %5995  ;;  %v10343_v37 = vmax.f32 %v8363_v47, 0.0 }
 0x21a   :  { %6200 = vrot.lane.b32.xlu1 %v6199_v45, %s6748_s2  ;;  %v1209_v57 = vpop.f32.mrf.mxu0  ;;  %v10499_v40 = vmax.f32 %v10498_v48, 0.0  ;;  %v10501_v15 = vmax.f32 %v10500_v33, 0.0  ;;  %v10344_v58 = vmax.f32 %v8376_v7, 0.0  ;;  %v5997_v36 = vunpack.i.l.bf16 %v5996_v56 }
 0x21b   :  { %v2261_v59 = vmax.f32 %v10495_v4, %v2173_v12  ;;  %v10342_v4 = vmax.f32 %v8387_v62, 0.0  ;;  %v8396_v29 = vadd.f32 %v1209_v57, %v7385_v8  ;;  %v5998_v12 = vunpack.i.h.bf16 %v5996_v56 }
 0x21c   :  { %v2258_v61 = vmax.f32 %v10499_v40, %v1787_v55  ;;  %v2260_v26 = vmax.f32 %v10501_v15, %v1788_v16 }
 0x21d   :  { %v2365_v53 = vpack.c.bf16 %v2261_v59, %v2259_v35  ;;  %v10345_v44 = vmax.f32 %v8396_v29, 0.0  ;;  %6210 = vrot.lane.b32.xlu0 %v6199_v45, %s6749_s18  ;;  %v5991_v63 = vpop.permute.xlu0 %5990  ;;  %v6001_v48 = vpop.permute.xlu1 %6000  ;;  %v6214_v16 = vpack.i.bf16 %v10342_v4, %v10343_v37  ;;  %v6611_v45 = vld [vmem:[%s10191_s3 + $0x160] ss:$8 sps:$4 sm:$0xff]  }
 0x21e   :  { %v5993_v55 = vunpack.i.h.bf16 %v5991_v63  ;;  %v5992_v40 = vunpack.i.l.bf16 %v5991_v63  ;;  %v6003_v57 = vunpack.i.h.bf16 %v6001_v48  ;;  %v6002_v30 = vunpack.i.l.bf16 %v6001_v48  ;;  %v6613_v63 = vld [vmem:[%s10191_s3 + $0x164] ss:$8 sps:$4 sm:$0xff]   ;;  %v10502_v48 = vld [vmem:[#allocation20_spill] sm:$0xff] }
 0x21f   :  { %5539 = vmatprep.mubr.msk.bf16.mxu1 %vm2490_vm6, %v2365_v53  ;;  %v6219_v35 = vpack.i.bf16 %v10345_v44, %v10344_v58  ;;  %v2364_v59 = vpack.c.bf16 %v2260_v26, %v2258_v61  ;;  %v6740_v61 = vld [vmem:[%s10187_s0 + $0xf8] sm:$0xff]   ;;  %v10503_v4 = vmax.f32 %v10502_v48, 0.0  ;;  %v10504_v58 = vld [vmem:[#allocation19_spill] sm:$0xff]  ;;  %3828 = vmatprep.subr.bf16.mxu1 %v6613_v63 }
 0x220   :  { %v2175_v56 = vsel %vm2149_vm4, %v6003_v57, %v5993_v55  ;;  %v2174_v53 = vsel %vm2149_vm4, %v6002_v30, %v5992_v40  ;;  %v1789_v33 = vsel %vm1764_vm5, %v5997_v36, %v6002_v30  ;;  %v1790_v15 = vsel %vm1764_vm5, %v5998_v12, %v6003_v57  ;;  %3829 = vmatpush1.bf16.msra.mxu1 %v6611_v45  ;;  %v6614_v45 = vld [vmem:[%s10191_s3 + $0x50] ss:$8 sps:$4 sm:$0xff]  }
 0x221   :  { %v544_v26 = vsel %vm448_vm0, %v6740_v61, %v319_v46  ;;  %v2265_v37 = vmax.f32 %v10503_v4, %v2175_v56  ;;  %v10505_v44 = vmax.f32 %v10504_v58, 0.0  ;;  %2712 = vmatmul.mubr.bf16.gmra.mxu1 %v2364_v59  ;;  %6215 = vrot.lane.b32.xlu0 %v6214_v16, %s6748_s2  ;;  %v447_v55 = vpop.permute.xlu0 %446  ;;  %v383_v40 = vpop.permute.xlu1 %382  ;;  %v10506_v46 = vld [vmem:[#allocation17_spill] sm:$0xff]  ;;  %v10508_v4 = vld [vmem:[#allocation18_spill] sm:$0xff] }
 0x222   :  { %6220 = vrot.lane.b32.xlu1 %v6219_v35, %s6749_s18  ;;  %v609_v30 = vsel %vm545_vm1, %v544_v26, %v383_v40  ;;  %v10507_v57 = vmax.f32 %v10506_v46, 0.0  ;;  %v10509_v56 = vmax.f32 %v10508_v4, 0.0 }
 0x223   :  { %v2263_v8 = vmax.f32 %v10505_v44, %v2174_v53  ;;  %v705_v12 = vsel %vm610_vm2, %v609_v30, %v447_v55  ;;  %v10512_v30 = vld [vmem:[#allocation23_spill] sm:$0xff] }
 0x224   :  { %v2262_v61 = vmax.f32 %v10507_v57, %v1789_v33  ;;  %v2264_v58 = vmax.f32 %v10509_v56, %v1790_v15  ;;  %1242 = vmatmul.mubr.bf16.gmra.mxu0 %v705_v12  ;;  %v6616_v33 = vld [vmem:[%s10191_s3 + $0x54] ss:$8 sps:$4 sm:$0xff]  }
 0x225   :  { %v2367_v36 = vpack.c.bf16 %v2265_v37, %v2263_v8  ;;  %v6006_v44 = vpop.permute.xlu0 %6005  ;;  %v6011_v59 = vpop.permute.xlu1 %6010  ;;  %v10510_v15 = vld [vmem:[#allocation24_spill] sm:$0xff]  ;;  %3637 = vmatprep.subr.bf16.mxu0 %v6616_v33 }
 0x226   :  { %v6008_v53 = vunpack.i.h.bf16 %v6006_v44  ;;  %v6007_v35 = vunpack.i.l.bf16 %v6006_v44  ;;  %6225 = vrot.lane.b32.xlu1 %v6214_v16, %s6749_s18  ;;  %v6013_v63 = vunpack.i.h.bf16 %v6011_v59  ;;  %v6012_v26 = vunpack.i.l.bf16 %v6011_v59  ;;  %3638 = vmatpush1.bf16.msra.mxu0 %v6614_v45  ;;  %v10514_v59 = vld [vmem:[#allocation22_spill] sm:$0xff] }
 0x227   :  { %5540 = vmatprep.mubr.msk.bf16.mxu1 %vm2490_vm6, %v2367_v36  ;;  %v2366_v48 = vpack.c.bf16 %v2264_v58, %v2262_v61  ;;  %v10511_v55 = vmax.f32 %v10510_v15, 0.0  ;;  %v10513_v16 = vmax.f32 %v10512_v30, 0.0 }
 0x228   :  { %v2177_v8 = vsel %vm2149_vm4, %v6013_v63, %v6008_v53  ;;  %v2176_v37 = vsel %vm2149_vm4, %v6012_v26, %v6007_v35  ;;  %v10515_v53 = vmax.f32 %v10514_v59, 0.0 }
 0x229   :  { %v2269_v40 = vmax.f32 %v10511_v55, %v2177_v8  ;;  %v2267_v12 = vmax.f32 %v10513_v16, %v2176_v37  ;;  %2720 = vmatmul.mubr.bf16.gmra.mxu1 %v2366_v48  ;;  %v6016_v36 = vpop.permute.xlu1 %6015  ;;  %v10516_v8 = vld [vmem:[#allocation21_spill] sm:$0xff] }
 0x22a   :  { %v6018_v46 = vunpack.i.h.bf16 %v6016_v36  ;;  %v6017_v57 = vunpack.i.l.bf16 %v6016_v36  ;;  %v6026_v61 = vpop.permute.xlu0 %6025  ;;  %v10517_v37 = vmax.f32 %v10516_v8, 0.0  ;;  %v10518_v36 = vld [vmem:[#allocation28_spill] sm:$0xff]  ;;  %v10522_v8 = vld [vmem:[#allocation27_spill] sm:$0xff] }
 0x22b   :  { %v2369_v4 = vpack.c.bf16 %v2269_v40, %v2267_v12  ;;  %v6028_v15 = vunpack.i.h.bf16 %v6026_v61  ;;  %v6027_v55 = vunpack.i.l.bf16 %v6026_v61 }
 0x22c   :  { %v1791_v56 = vsel %vm1764_vm5, %v6017_v57, %v6012_v26  ;;  %v1792_v58 = vsel %vm1764_vm5, %v6018_v46, %v6013_v63  ;;  %v10519_v46 = vmax.f32 %v10518_v36, 0.0 }
 0x22d   :  { %v6021_v44 = vpop.permute.xlu1 %6020  ;;  %5541 = vmatprep.mubr.msk.bf16.mxu1 %vm2490_vm6, %v2369_v4  ;;  %v2266_v35 = vmax.f32 %v10515_v53, %v1791_v56  ;;  %v2268_v48 = vmax.f32 %v10517_v37, %v1792_v58  ;;  %v10520_v4 = vld [vmem:[#allocation25_spill] sm:$0xff]  ;;  %v10523_v37 = vmax.f32 %v10522_v8, 0.0 }
 0x22e   :  { %v6023_v30 = vunpack.i.h.bf16 %v6021_v44  ;;  %v6022_v33 = vunpack.i.l.bf16 %v6021_v44  ;;  %v6031_v16 = vpop.permute.xlu0 %6030  ;;  %v10521_v56 = vmax.f32 %v10520_v4, 0.0 }
 0x22f   :  { %v2368_v40 = vpack.c.bf16 %v2268_v48, %v2266_v35  ;;  %v6033_v63 = vunpack.i.h.bf16 %v6031_v16  ;;  %v6032_v12 = vunpack.i.l.bf16 %v6031_v16 }
 0x230   :  { %v2179_v45 = vsel %vm2149_vm4, %v6028_v15, %v6023_v30  ;;  %v2178_v26 = vsel %vm2149_vm4, %v6027_v55, %v6022_v33  ;;  %v10524_v30 = vld [vmem:[#allocation26_spill] sm:$0xff] }
 0x231   :  { %v2273_v57 = vmax.f32 %v10519_v46, %v2179_v45  ;;  %v2271_v59 = vmax.f32 %v10521_v56, %v2178_v26  ;;  %2728 = vmatmul.mubr.bf16.gmra.mxu1 %v2368_v40  ;;  %v1793_v58 = vsel %vm1764_vm5, %v6032_v12, %v6027_v55  ;;  %v1794_v61 = vsel %vm1764_vm5, %v6033_v63, %v6028_v15 }
 0x232   :  { %v6036_v44 = vpop.permute.xlu0 %6035  ;;  %v6041_v53 = vpop.permute.xlu1 %6040  ;;  %v2270_v48 = vmax.f32 %v10523_v37, %v1793_v58  ;;  %v10525_v33 = vmax.f32 %v10524_v30, 0.0  ;;  %v10526_v15 = vmax.f32 %v7867_v42, 0.0  ;;  %v10527_v63 = vmax.f32 %v7859_v25, 0.0  ;;  %v6617_v58 = vld [vmem:[%s10191_s3 + $0x40] ss:$8 sps:$4 sm:$0xff]   ;;  %v10528_v37 = vld [vmem:[#allocation29_spill] sm:$0xff] }
 0x233   :  { %v2371_v35 = vpack.c.bf16 %v2273_v57, %v2271_v59  ;;  %v6038_v2 = vunpack.i.h.bf16 %v6036_v44  ;;  %v6037_v36 = vunpack.i.l.bf16 %v6036_v44  ;;  %v6043_v45 = vunpack.i.h.bf16 %v6041_v53  ;;  %v6620_v42 = vld [vmem:[%s10191_s3 + $0x150] ss:$8 sps:$4 sm:$0xff]   ;;  %v6622_v25 = vld [vmem:[%s10191_s3 + $0x154] ss:$8 sps:$4 sm:$0xff]  }
 0x234   :  { %v2272_v16 = vmax.f32 %v10525_v33, %v1794_v61  ;;  %v6042_v46 = vunpack.i.l.bf16 %v6041_v53  ;;  %v10530_v33 = vld [vmem:[#allocation30_spill] sm:$0xff]  ;;  %3830 = vmatprep.subr.bf16.mxu1 %v6622_v25 }
 0x235   :  { %5542 = vmatprep.mubr.msk.bf16.mxu1 %vm2490_vm6, %v2371_v35  ;;  %v2181_v40 = vsel %vm2149_vm4, %v6043_v45, %v6038_v2  ;;  %v6619_v2 = vld [vmem:[%s10191_s3 + $0x44] ss:$8 sps:$4 sm:$0xff]   ;;  %3831 = vmatpush1.bf16.msra.mxu1 %v6620_v42 }
 0x236   :  { %v2180_v55 = vsel %vm2149_vm4, %v6042_v46, %v6037_v36  ;;  %v2277_v26 = vmax.f32 %v10526_v15, %v2181_v40  ;;  %v6046_v57 = vpop.permute.xlu1 %6045  ;;  %v2370_v4 = vpack.c.bf16 %v2272_v16, %v2270_v48  ;;  %3639 = vmatprep.subr.bf16.mxu0 %v6619_v2  ;;  %v10529_v48 = vmax.f32 %v10528_v37, 0.0 }
 0x237   :  { %v2275_v12 = vmax.f32 %v10527_v63, %v2180_v55  ;;  %v6048_v56 = vunpack.i.h.bf16 %v6046_v57  ;;  %v6047_v59 = vunpack.i.l.bf16 %v6046_v57  ;;  %v10531_v16 = vmax.f32 %v10530_v33, 0.0  ;;  %3640 = vmatpush1.bf16.msra.mxu0 %v6617_v58 }
 0x238   :  { %v10532_v63 = vmax.f32 %v7903_v31, 0.0  ;;  %v10533_v57 = vmax.f32 %v7892_v27, 0.0  ;;  %v10534_v31 = vmax.f32 %v7889_v9, 0.0  ;;  %v10535_v27 = vmax.f32 %v7895_v41, 0.0  ;;  %v6623_v41 = vld [vmem:[%s10191_s3 + $0x30] ss:$8 sps:$4 sm:$0xff]  }
 0x239   :  { %2736 = vmatmul.mubr.bf16.gmra.mxu1 %v2370_v4  ;;  %v2373_v61 = vpack.c.bf16 %v2277_v26, %v2275_v12  ;;  %v1795_v44 = vsel %vm1764_vm5, %v6047_v59, %v6042_v46  ;;  %v1796_v53 = vsel %vm1764_vm5, %v6048_v56, %v6043_v45 }
 0x23a   :  { %v6056_v35 = vpop.permute.xlu0 %6055  ;;  %v6051_v8 = vpop.permute.xlu1 %6050  ;;  %v2274_v30 = vmax.f32 %v10529_v48, %v1795_v44  ;;  %v2276_v36 = vmax.f32 %v10531_v16, %v1796_v53 }
 0x23b   :  { %5543 = vmatprep.mubr.msk.bf16.mxu1 %vm2490_vm6, %v2373_v61  ;;  %v6058_v40 = vunpack.i.h.bf16 %v6056_v35  ;;  %v6057_v55 = vunpack.i.l.bf16 %v6056_v35  ;;  %v6053_v15 = vunpack.i.h.bf16 %v6051_v8  ;;  %v6052_v26 = vunpack.i.l.bf16 %v6051_v8 }
 0x23c   :  { %v2372_v59 = vpack.c.bf16 %v2276_v36, %v2274_v30 }
 0x23d   :  { %v2183_v45 = vsel %vm2149_vm4, %v6058_v40, %v6053_v15  ;;  %v2182_v46 = vsel %vm2149_vm4, %v6057_v55, %v6052_v26  ;;  %v10537_v15 = vmax.f32 %v7932_v10, 0.0 }
 0x23e   :  { %v2281_v12 = vmax.f32 %v10532_v63, %v2183_v45  ;;  %v2279_v4 = vmax.f32 %v10533_v57, %v2182_v46  ;;  %v6061_v56 = vpop.permute.xlu0 %6060 }
 0x23f   :  { %v6063_v2 = vunpack.i.h.bf16 %v6061_v56  ;;  %v6062_v58 = vunpack.i.l.bf16 %v6061_v56  ;;  %v10538_v56 = vmax.f32 %v7929_v19, 0.0 }
 0x240   :  { %v2375_v61 = vpack.c.bf16 %v2281_v12, %v2279_v4  ;;  %v6625_v12 = vld [vmem:[%s10191_s3 + $0x34] ss:$8 sps:$4 sm:$0xff]  }
 0x241   :  { %2744 = vmatmul.mubr.bf16.gmra.mxu1 %v2372_v59  ;;  %v1797_v44 = vsel %vm1764_vm5, %v6062_v58, %v6057_v55  ;;  %v1798_v42 = vsel %vm1764_vm5, %v6063_v2, %v6058_v40  ;;  %v10536_v40 = vmax.f32 %v7942_v6, 0.0  ;;  %3641 = vmatprep.subr.bf16.mxu0 %v6625_v12  ;;  %v10539_v2 = vld [vmem:[#allocation31_spill] sm:$0xff]  ;;  %v10545_v12 = vld [vmem:[#allocation33_spill] sm:$0xff] }
 0x242   :  { %v6066_v25 = vpop.permute.xlu0 %6065  ;;  %5544 = vmatprep.mubr.msk.bf16.mxu1 %vm2490_vm6, %v2375_v61  ;;  %v2278_v35 = vmax.f32 %v10534_v31, %v1797_v44  ;;  %v2280_v8 = vmax.f32 %v10535_v27, %v1798_v42  ;;  %v10540_v58 = vmax.f32 %v10539_v2, 0.0  ;;  %3642 = vmatpush1.bf16.msra.mxu0 %v6623_v41  ;;  %v6628_v27 = vld [vmem:[%s10191_s3 + $0x144] ss:$8 sps:$4 sm:$0xff]  }
 0x243   :  { %v6071_v53 = vpop.permute.xlu1 %6070  ;;  %v6068_v37 = vunpack.i.h.bf16 %v6066_v25  ;;  %v6067_v48 = vunpack.i.l.bf16 %v6066_v25  ;;  %3832 = vmatprep.subr.bf16.mxu1 %v6628_v27 }
 0x244   :  { %v6073_v30 = vunpack.i.h.bf16 %v6071_v53  ;;  %v6072_v33 = vunpack.i.l.bf16 %v6071_v53  ;;  %v2374_v9 = vpack.c.bf16 %v2280_v8, %v2278_v35  ;;  %v6626_v35 = vld [vmem:[%s10191_s3 + $0x140] ss:$8 sps:$4 sm:$0xff]  }
 0x245   :  { %3833 = vmatpush1.bf16.msra.mxu1 %v6626_v35  ;;  %v6631_v35 = vld [vmem:[%s10191_s3 + $0x24] ss:$8 sps:$4 sm:$0xff]  }
 0x246   :  { %v2185_v16 = vsel %vm2149_vm4, %v6073_v30, %v6068_v37  ;;  %v2184_v36 = vsel %vm2149_vm4, %v6072_v33, %v6067_v48  ;;  %3643 = vmatprep.subr.bf16.mxu0 %v6631_v35 }
 0x247   :  { %v2285_v55 = vmax.f32 %v10536_v40, %v2185_v16  ;;  %v2283_v26 = vmax.f32 %v10537_v15, %v2184_v36  ;;  %v6076_v45 = vpop.permute.xlu1 %6075  ;;  %v10542_v16 = vmax.f32 %v7966_v54, 0.0 }
 0x248   :  { %v6078_v46 = vunpack.i.h.bf16 %v6076_v45  ;;  %v6077_v63 = vunpack.i.l.bf16 %v6076_v45 }
 0x249   :  { %2752 = vmatmul.mubr.bf16.gmra.mxu1 %v2374_v9  ;;  %v2377_v57 = vpack.c.bf16 %v2285_v55, %v2283_v26 }
 0x24a   :  { %v1799_v6 = vsel %vm1764_vm5, %v6077_v63, %v6072_v33  ;;  %v1800_v4 = vsel %vm1764_vm5, %v6078_v46, %v6073_v30  ;;  %v6086_v10 = vpop.permute.xlu0 %6085  ;;  %v10541_v30 = vmax.f32 %v7986_v5, 0.0  ;;  %v10543_v46 = vld [vmem:[#allocation32_spill] sm:$0xff]  ;;  %v10546_v5 = vmax.f32 %v10545_v12, 0.0 }
 0x24b   :  { %5545 = vmatprep.mubr.msk.bf16.mxu1 %vm2490_vm6, %v2377_v57  ;;  %v2282_v59 = vmax.f32 %v10538_v56, %v1799_v6  ;;  %v2284_v61 = vmax.f32 %v10540_v58, %v1800_v4  ;;  %v6088_v44 = vunpack.i.h.bf16 %v6086_v10  ;;  %v6087_v42 = vunpack.i.l.bf16 %v6086_v10  ;;  %v6081_v25 = vpop.permute.xlu1 %6080 }
 0x24c   :  { %v6083_v53 = vunpack.i.h.bf16 %v6081_v25  ;;  %v6082_v31 = vunpack.i.l.bf16 %v6081_v25  ;;  %v10544_v63 = vmax.f32 %v10543_v46, 0.0  ;;  %v10552_v12 = vmax.f32 %v8072_v60, 0.0 }
 0x24d   :  { %v2376_v48 = vpack.c.bf16 %v2284_v61, %v2282_v59  ;;  %v10547_v61 = vmax.f32 %v8025_v43, 0.0 }
 0x24e   :  { %v2187_v19 = vsel %vm2149_vm4, %v6088_v44, %v6083_v53  ;;  %v2186_v8 = vsel %vm2149_vm4, %v6087_v42, %v6082_v31  ;;  %v6091_v37 = vpop.permute.xlu0 %6090  ;;  %v6629_v31 = vld [vmem:[%s10191_s3 + $0x20] ss:$8 sps:$4 sm:$0xff]  }
 0x24f   :  { %v2289_v33 = vmax.f32 %v10541_v30, %v2187_v19  ;;  %v2287_v36 = vmax.f32 %v10542_v16, %v2186_v8  ;;  %v6093_v40 = vunpack.i.h.bf16 %v6091_v37  ;;  %v6092_v55 = vunpack.i.l.bf16 %v6091_v37  ;;  %3644 = vmatpush1.bf16.msra.mxu0 %v6629_v31 }
 0x250   :  { %v10549_v16 = vmax.f32 %v8003_v24, 0.0 }
 0x251   :  { %2760 = vmatmul.mubr.bf16.gmra.mxu1 %v2376_v48  ;;  %v2379_v15 = vpack.c.bf16 %v2289_v33, %v2287_v36  ;;  %v1801_v26 = vsel %vm1764_vm5, %v6092_v55, %v6087_v42  ;;  %v1802_v45 = vsel %vm1764_vm5, %v6093_v40, %v6088_v44  ;;  %v10548_v42 = vmax.f32 %v8006_v18, 0.0  ;;  %v10550_v40 = vld [vmem:[#allocation34_spill] sm:$0xff] }
 0x252   :  { %v6096_v9 = vpop.permute.xlu0 %6095  ;;  %v2286_v41 = vmax.f32 %v10544_v63, %v1801_v26  ;;  %v2288_v57 = vmax.f32 %v10546_v5, %v1802_v45  ;;  %v10551_v55 = vmax.f32 %v10550_v40, 0.0 }
 0x253   :  { %v6098_v6 = vunpack.i.h.bf16 %v6096_v9  ;;  %v6097_v54 = vunpack.i.l.bf16 %v6096_v9  ;;  %v6101_v4 = vpop.permute.xlu1 %6100  ;;  %5546 = vmatprep.mubr.msk.bf16.mxu1 %vm2490_vm6, %v2379_v15 }
 0x254   :  { %v6103_v10 = vunpack.i.h.bf16 %v6101_v4  ;;  %v6102_v56 = vunpack.i.l.bf16 %v6101_v4  ;;  %v2378_v58 = vpack.c.bf16 %v2288_v57, %v2286_v41  ;;  %v10553_v57 = vmax.f32 %v8051_v51, 0.0 }
 0x256   :  { %v2189_v59 = vsel %vm2149_vm4, %v6103_v10, %v6098_v6  ;;  %v2188_v2 = vsel %vm2149_vm4, %v6102_v56, %v6097_v54 }
 0x257   :  { %v2293_v44 = vmax.f32 %v10547_v61, %v2189_v59  ;;  %v2291_v25 = vmax.f32 %v10548_v42, %v2188_v2  ;;  %v6106_v53 = vpop.permute.xlu1 %6105  ;;  %v10554_v2 = vmax.f32 %v8038_v13, 0.0  ;;  %v10555_v61 = vmax.f32 %v8062_v0, 0.0 }
 0x258   :  { %v6108_v27 = vunpack.i.h.bf16 %v6106_v53  ;;  %v6107_v19 = vunpack.i.l.bf16 %v6106_v53  ;;  %v10557_v13 = vmax.f32 %v8094_v11, 0.0  ;;  %v6637_v11 = vld [vmem:[%s10191_s3 + $0x134] ss:$8 sps:$4 sm:$0xff]  }
 0x259   :  { %2768 = vmatmul.mubr.bf16.gmra.mxu1 %v2378_v58  ;;  %v2381_v8 = vpack.c.bf16 %v2293_v44, %v2291_v25  ;;  %3834 = vmatprep.subr.bf16.mxu1 %v6637_v11 }
 0x25a   :  { %v6116_v37 = vpop.permute.xlu0 %6115  ;;  %v1803_v43 = vsel %vm1764_vm5, %v6107_v19, %v6102_v56  ;;  %v1804_v18 = vsel %vm1764_vm5, %v6108_v27, %v6103_v10  ;;  %v10556_v19 = vmax.f32 %v8111_v17, 0.0 }
 0x25b   :  { %v6118_v48 = vunpack.i.h.bf16 %v6116_v37  ;;  %v6117_v30 = vunpack.i.l.bf16 %v6116_v37  ;;  %v6111_v33 = vpop.permute.xlu1 %6110  ;;  %5547 = vmatprep.mubr.msk.bf16.mxu1 %vm2490_vm6, %v2381_v8  ;;  %v2290_v36 = vmax.f32 %v10549_v16, %v1803_v43  ;;  %v2292_v15 = vmax.f32 %v10551_v55, %v1804_v18  ;;  %v6632_v43 = vld [vmem:[%s10191_s3 + $0x10] ss:$8 sps:$4 sm:$0xff]   ;;  %v6634_v18 = vld [vmem:[%s10191_s3 + $0x14] ss:$8 sps:$4 sm:$0xff]  }
 0x25c   :  { %v6113_v26 = vunpack.i.h.bf16 %v6111_v33  ;;  %v6112_v45 = vunpack.i.l.bf16 %v6111_v33  ;;  %3645 = vmatprep.subr.bf16.mxu0 %v6634_v18 }
 0x25d   :  { %v2380_v41 = vpack.c.bf16 %v2292_v15, %v2290_v36  ;;  %3646 = vmatpush1.bf16.msra.mxu0 %v6632_v43 }
 0x25e   :  { %v2191_v9 = vsel %vm2149_vm4, %v6118_v48, %v6113_v26  ;;  %v2190_v46 = vsel %vm2149_vm4, %v6117_v30, %v6112_v45  ;;  %v6121_v63 = vpop.permute.xlu0 %6120  ;;  %v10558_v45 = vmax.f32 %v8091_v21, 0.0 }
 0x25f   :  { %v2297_v5 = vmax.f32 %v10552_v12, %v2191_v9  ;;  %v2295_v6 = vmax.f32 %v10553_v57, %v2190_v46  ;;  %v6123_v54 = vunpack.i.h.bf16 %v6121_v63  ;;  %v6122_v24 = vunpack.i.l.bf16 %v6121_v63 }
 0x260   :  { %v10559_v46 = vmax.f32 %v8105_v49, 0.0 }
 0x261   :  { %2776 = vmatmul.mubr.bf16.gmra.mxu1 %v2380_v41  ;;  %v2383_v4 = vpack.c.bf16 %v2297_v5, %v2295_v6  ;;  %v1805_v10 = vsel %vm1764_vm5, %v6122_v24, %v6117_v30  ;;  %v1806_v56 = vsel %vm1764_vm5, %v6123_v54, %v6118_v48  ;;  %v6635_v48 = vld [vmem:[%s10191_s3 + $0x130] ss:$8 sps:$4 sm:$0xff]   ;;  %v10560_v24 = vmax.f32 %v8156_v38, 0.0  ;;  %v6640_v38 = vld [vmem:[%s10191_s3 + $0x4] ss:$8 sps:$4 sm:$0xff]  }
 0x262   :  { %v6126_v59 = vpop.permute.xlu0 %6125  ;;  %v2294_v58 = vmax.f32 %v10554_v2, %v1805_v10  ;;  %v2296_v44 = vmax.f32 %v10555_v61, %v1806_v56  ;;  %3835 = vmatpush1.bf16.msra.mxu1 %v6635_v48  ;;  %v10561_v10 = vmax.f32 %v8136_v39, 0.0  ;;  %v6638_v61 = vld [vmem:[%s10191_s3] ss:$8 sps:$4 sm:$0xff]   ;;  %v10562_v39 = vmax.f32 %v8125_v50, 0.0  ;;  %3647 = vmatprep.subr.bf16.mxu0 %v6640_v38 }
 0x263   :  { %v6128_v60 = vunpack.i.h.bf16 %v6126_v59  ;;  %v6127_v42 = vunpack.i.l.bf16 %v6126_v59  ;;  %v6131_v25 = vpop.permute.xlu1 %6130  ;;  %5548 = vmatprep.mubr.msk.bf16.mxu1 %vm2490_vm6, %v2383_v4  ;;  %3648 = vmatpush1.bf16.msra.mxu0 %v6638_v61  ;;  %v10564_v50 = vmax.f32 %v8197_v3, 0.0 }
 0x264   :  { %v6133_v51 = vunpack.i.h.bf16 %v6131_v25  ;;  %v6132_v53 = vunpack.i.l.bf16 %v6131_v25  ;;  %v2382_v27 = vpack.c.bf16 %v2296_v44, %v2294_v58 }
 0x266   :  { %v2193_v31 = vsel %vm2149_vm4, %v6133_v51, %v6128_v60  ;;  %v2192_v35 = vsel %vm2149_vm4, %v6132_v53, %v6127_v42  ;;  %v10563_v42 = vmax.f32 %v8147_v22, 0.0  ;;  %v10565_v22 = vmax.f32 %v8180_v1, 0.0 }
 0x267   :  { %v2301_v8 = vmax.f32 %v10556_v19, %v2193_v31  ;;  %v2299_v37 = vmax.f32 %v10557_v13, %v2192_v35  ;;  %v6136_v0 = vpop.permute.xlu1 %6135 }
 0x268   :  { %v6138_v30 = vunpack.i.h.bf16 %v6136_v0  ;;  %v6137_v33 = vunpack.i.l.bf16 %v6136_v0 }
 0x269   :  { %2784 = vmatmul.mubr.bf16.gmra.mxu1 %v2382_v27  ;;  %v2385_v17 = vpack.c.bf16 %v2301_v8, %v2299_v37 }
 0x26a   :  { %v6146_v16 = vpop.permute.xlu0 %6145  ;;  %v1807_v36 = vsel %vm1764_vm5, %v6137_v33, %v6132_v53  ;;  %v1808_v40 = vsel %vm1764_vm5, %v6138_v30, %v6133_v51  ;;  %v6641_v30 = vld [vmem:[%s10191_s3 + $0x120] ss:$8 sps:$4 sm:$0xff]   ;;  %v6643_v33 = vld [vmem:[%s10191_s3 + $0x124] ss:$8 sps:$4 sm:$0xff]  }
 0x26b   :  { %v6148_v55 = vunpack.i.h.bf16 %v6146_v16  ;;  %v6147_v15 = vunpack.i.l.bf16 %v6146_v16  ;;  %v6141_v26 = vpop.permute.xlu1 %6140  ;;  %5549 = vmatprep.mubr.msk.bf16.mxu1 %vm2490_vm6, %v2385_v17  ;;  %v2298_v9 = vmax.f32 %v10558_v45, %v1807_v36  ;;  %v2300_v63 = vmax.f32 %v10559_v46, %v1808_v40  ;;  %3836 = vmatprep.subr.bf16.mxu1 %v6643_v33 }
 0x26c   :  { %v6143_v41 = vunpack.i.h.bf16 %v6141_v26  ;;  %v6142_v12 = vunpack.i.l.bf16 %v6141_v26  ;;  %v10567_v26 = vmax.f32 %v8191_v23, 0.0  ;;  %3837 = vmatpush1.bf16.msra.mxu1 %v6641_v30 }
 0x26d   :  { %v2384_v54 = vpack.c.bf16 %v2300_v63, %v2298_v9 }
 0x26e   :  { %v2195_v5 = vsel %vm2149_vm4, %v6148_v55, %v6143_v41  ;;  %v2194_v57 = vsel %vm2149_vm4, %v6147_v15, %v6142_v12  ;;  %v6151_v6 = vpop.permute.xlu0 %6150 }
 0x26f   :  { %v2305_v4 = vmax.f32 %v10560_v24, %v2195_v5  ;;  %v2303_v56 = vmax.f32 %v10561_v10, %v2194_v57  ;;  %v6153_v21 = vunpack.i.h.bf16 %v6151_v6  ;;  %v6152_v59 = vunpack.i.l.bf16 %v6151_v6 }
 0x270   :  { %v10568_v57 = vmax.f32 %v8248_v20, 0.0  ;;  %v6646_v20 = vld [vmem:[%s10191_s3 + $0xf4] ss:$8 sps:$4 sm:$0xff]  }
 0x271   :  { %2792 = vmatmul.mubr.bf16.gmra.mxu1 %v2384_v54  ;;  %v2387_v49 = vpack.c.bf16 %v2305_v4, %v2303_v56  ;;  %v1809_v2 = vsel %vm1764_vm5, %v6152_v59, %v6147_v15  ;;  %v1810_v58 = vsel %vm1764_vm5, %v6153_v21, %v6148_v55  ;;  %v10566_v55 = vmax.f32 %v8177_v32, 0.0  ;;  %v6644_v21 = vld [vmem:[%s10191_s3 + $0xf0] ss:$8 sps:$4 sm:$0xff]   ;;  %3649 = vmatprep.subr.bf16.mxu0 %v6646_v20 }
 0x272   :  { %v6156_v44 = vpop.permute.xlu0 %6155  ;;  %v2302_v60 = vmax.f32 %v10562_v39, %v1809_v2  ;;  %v2304_v25 = vmax.f32 %v10563_v42, %v1810_v58  ;;  %v10569_v54 = vmax.f32 %v8224_v34, 0.0  ;;  %v10570_v34 = vmax.f32 %v8213_v28, 0.0  ;;  %3650 = vmatpush2.bf16.msra.mxu0 %v6644_v21 }
 0x273   :  { %v6158_v51 = vunpack.i.h.bf16 %v6156_v44  ;;  %v6157_v53 = vunpack.i.l.bf16 %v6156_v44  ;;  %v6161_v31 = vpop.permute.xlu1 %6160  ;;  %5550 = vmatprep.mubr.msk.bf16.mxu1 %vm2490_vm6, %v2387_v49  ;;  %v10571_v2 = vmax.f32 %v8235_v52, 0.0 }
 0x274   :  { %v6163_v35 = vunpack.i.h.bf16 %v6161_v31  ;;  %v6162_v27 = vunpack.i.l.bf16 %v6161_v31  ;;  %v2386_v13 = vpack.c.bf16 %v2304_v25, %v2302_v60 }
 0x276   :  { %v2197_v19 = vsel %vm2149_vm4, %v6163_v35, %v6158_v51  ;;  %v2196_v8 = vsel %vm2149_vm4, %v6162_v27, %v6157_v53  ;;  %v10572_v53 = vld [vmem:[#allocation7_spill] sm:$0xff] }
 0x277   :  { %v2309_v37 = vmax.f32 %v10564_v50, %v2197_v19  ;;  %v2307_v0 = vmax.f32 %v10565_v22, %v2196_v8  ;;  %v6166_v43 = vpop.permute.xlu1 %6165  ;;  %v10573_v28 = vmax.f32 %v10572_v53, 0.0 }
 0x278   :  { %v6168_v18 = vunpack.i.h.bf16 %v6166_v43  ;;  %v6167_v48 = vunpack.i.l.bf16 %v6166_v43 }
 0x279   :  { %2800 = vmatmul.mubr.bf16.gmra.mxu1 %v2386_v13  ;;  %v2389_v11 = vpack.c.bf16 %v2309_v37, %v2307_v0 }
 0x27a   :  { %v6176_v17 = vpop.permute.xlu0 %6175  ;;  %v1811_v3 = vsel %vm1764_vm5, %v6167_v48, %v6162_v27  ;;  %v1812_v16 = vsel %vm1764_vm5, %v6168_v18, %v6163_v35  ;;  %v10574_v35 = vld [vmem:[#allocation36_spill] sm:$0xff] }
 0x27b   :  { %v6178_v1 = vunpack.i.h.bf16 %v6176_v17  ;;  %v6177_v36 = vunpack.i.l.bf16 %v6176_v17  ;;  %v6171_v40 = vpop.permute.xlu1 %6170  ;;  %5551 = vmatprep.mubr.msk.bf16.mxu1 %vm2490_vm6, %v2389_v11  ;;  %v2306_v15 = vmax.f32 %v10566_v55, %v1811_v3  ;;  %v2308_v45 = vmax.f32 %v10567_v26, %v1812_v16  ;;  %v10576_v17 = vld [vmem:[#allocation35_spill] sm:$0xff] }
 0x27c   :  { %v6173_v9 = vunpack.i.h.bf16 %v6171_v40  ;;  %v6172_v46 = vunpack.i.l.bf16 %v6171_v40  ;;  %v10575_v52 = vmax.f32 %v10574_v35, 0.0  ;;  %v10577_v3 = vmax.f32 %v10576_v17, 0.0 }
 0x27d   :  { %v2388_v5 = vpack.c.bf16 %v2308_v45, %v2306_v15 }
 0x27e   :  { %v2199_v63 = vsel %vm2149_vm4, %v6178_v1, %v6173_v9  ;;  %v2198_v41 = vsel %vm2149_vm4, %v6177_v36, %v6172_v46  ;;  %v6181_v12 = vpop.permute.xlu0 %6180 }
 0x27f   :  { %v2313_v6 = vmax.f32 %v10568_v57, %v2199_v63  ;;  %v2311_v24 = vmax.f32 %v10569_v54, %v2198_v41  ;;  %v6183_v32 = vunpack.i.h.bf16 %v6181_v12  ;;  %v6182_v4 = vunpack.i.l.bf16 %v6181_v12  ;;  %v6647_v41 = vld [vmem:[%s10191_s3 + $0x110] ss:$8 sps:$4 sm:$0xff]   ;;  %v6649_v12 = vld [vmem:[%s10191_s3 + $0x114] ss:$8 sps:$4 sm:$0xff]  }
 0x280   :  { %3838 = vmatprep.subr.bf16.mxu1 %v6649_v12 }
 0x281   :  { %2808 = vmatmul.mubr.bf16.gmra.mxu1 %v2388_v5  ;;  %v2391_v23 = vpack.c.bf16 %v2313_v6, %v2311_v24  ;;  %v1813_v10 = vsel %vm1764_vm5, %v6182_v4, %v6177_v36  ;;  %v1814_v56 = vsel %vm1764_vm5, %v6183_v32, %v6178_v1  ;;  %v10578_v1 = vld [vmem:[#allocation8_spill] sm:$0xff]  ;;  %v10580_v5 = vmax.f32 %v8352_v14, 0.0  ;;  %v10581_v6 = vld [vmem:[#allocation6_spill] sm:$0xff] }
 0x282   :  { %v2310_v49 = vmax.f32 %v10570_v34, %v1813_v10  ;;  %v2312_v58 = vmax.f32 %v10571_v2, %v1814_v56  ;;  %v10579_v36 = vmax.f32 %v10578_v1, 0.0  ;;  %v10582_v54 = vmax.f32 %v10581_v6, 0.0  ;;  %3839 = vmatpush1.bf16.msra.mxu1 %v6647_v41  ;;  %v6650_v14 = vld [vmem:[%s10191_s3 + $0xe0] ss:$8 sps:$4 sm:$0xff]   ;;  %v6652_v34 = vld [vmem:[%s10191_s3 + $0xe4] ss:$8 sps:$4 sm:$0xff]  }
 0x283   :  { %v6186_v59 = vpop.permute.xlu0 %6185  ;;  %5552 = vmatprep.mubr.msk.bf16.mxu1 %vm2490_vm6, %v2391_v23  ;;  %v10583_v2 = vld [vmem:[#allocation5_spill] sm:$0xff]  ;;  %3651 = vmatprep.subr.bf16.mxu0 %v6652_v34 }
 0x284   :  { %v6188_v61 = vunpack.i.h.bf16 %v6186_v59  ;;  %v6187_v38 = vunpack.i.l.bf16 %v6186_v59  ;;  %v6191_v44 = vpop.permute.xlu1 %6190  ;;  %v2390_v51 = vpack.c.bf16 %v2312_v58, %v2310_v49  ;;  %v10584_v58 = vmax.f32 %v10583_v2, 0.0  ;;  %3652 = vmatpush2.bf16.msra.mxu0 %v6650_v14 }
 0x285   :  { %v6193_v39 = vunpack.i.h.bf16 %v6191_v44  ;;  %v6192_v60 = vunpack.i.l.bf16 %v6191_v44 }
 0x286   :  { %v2625_v8 = vpop.f32.mrf.mxu1 }
 0x287   :  { %v2201_v42 = vsel %vm2149_vm4, %v6193_v39, %v6188_v61  ;;  %v2200_v25 = vsel %vm2149_vm4, %v6192_v60, %v6187_v38  ;;  %v10585_v38 = vld [vmem:[#allocation12_spill] sm:$0xff] }
 0x288   :  { %v2317_v31 = vmax.f32 %v10573_v28, %v2201_v42  ;;  %v2315_v27 = vmax.f32 %v10575_v52, %v2200_v25  ;;  %v6196_v19 = vpop.permute.xlu1 %6195  ;;  %v2627_v37 = vpop.f32.mrf.mxu1  ;;  %v10586_v44 = vmax.f32 %v10585_v38, 0.0 }
 0x289   :  { %v6198_v13 = vunpack.i.h.bf16 %v6196_v19  ;;  %v6197_v50 = vunpack.i.l.bf16 %v6196_v19  ;;  %2816 = vmatmul.mubr.bf16.gmra.mxu1 %v2390_v51  ;;  %v10588_v37 = vmax.f32 %v8376_v7, 0.0 }
 0x28a   :  { %v2393_v22 = vpack.c.bf16 %v2317_v31, %v2315_v27  ;;  %v2628_v11 = vpop.f32.mrf.mxu1 }
 0x28b   :  { %v6206_v0 = vpop.permute.xlu0 %6205  ;;  %v1815_v43 = vsel %vm1764_vm5, %v6197_v50, %v6192_v60  ;;  %v1816_v18 = vsel %vm1764_vm5, %v6198_v13, %v6193_v39  ;;  %v10587_v13 = vmax.f32 %v8396_v29, 0.0 }
 0x28c   :  { %v6208_v48 = vunpack.i.h.bf16 %v6206_v0  ;;  %v6207_v30 = vunpack.i.l.bf16 %v6206_v0  ;;  %v6201_v33 = vpop.permute.xlu1 %6200  ;;  %5553 = vmatprep.mubr.msk.bf16.mxu1 %vm2490_vm6, %v2393_v22  ;;  %v2314_v16 = vmax.f32 %v10577_v3, %v1815_v43  ;;  %v2316_v40 = vmax.f32 %v10579_v36, %v1816_v18  ;;  %v2630_v26 = vpop.f32.mrf.mxu1 }
 0x28d   :  { %v6203_v55 = vunpack.i.h.bf16 %v6201_v33  ;;  %v6202_v15 = vunpack.i.l.bf16 %v6201_v33  ;;  %v10589_v3 = vmax.f32 %v8363_v47, 0.0  ;;  %v6653_v47 = vld [vmem:[%s10191_s3 + $0xd0] ss:$8 sps:$4 sm:$0xff]  }
 0x28e   :  { %v2392_v63 = vpack.c.bf16 %v2316_v40, %v2314_v16  ;;  %v10590_v16 = vmax.f32 %v8387_v62, 0.0  ;;  %v6655_v62 = vld [vmem:[%s10191_s3 + $0xd4] ss:$8 sps:$4 sm:$0xff]  }
 0x28f   :  { %v2203_v45 = vsel %vm2149_vm4, %v6208_v48, %v6203_v55  ;;  %v2202_v9 = vsel %vm2149_vm4, %v6207_v30, %v6202_v15  ;;  %v6211_v46 = vpop.permute.xlu0 %6210  ;;  %3653 = vmatprep.subr.bf16.mxu0 %v6655_v62 }
 0x290   :  { %v2321_v57 = vmax.f32 %v10580_v5, %v2203_v45  ;;  %v2319_v24 = vmax.f32 %v10582_v54, %v2202_v9  ;;  %v6213_v32 = vunpack.i.h.bf16 %v6211_v46  ;;  %v6212_v4 = vunpack.i.l.bf16 %v6211_v46  ;;  %v2633_v23 = vpop.f32.mrf.mxu1  ;;  %v10592_v54 = vld [vmem:[#allocation4_spill] sm:$0xff]  ;;  %3654 = vmatpush2.bf16.msra.mxu0 %v6653_v47 }
 0x291   :  { %v2880_v10 = vmax.f32 %v2625_v8, %v2633_v23  ;;  %2824 = vmatmul.mubr.bf16.gmra.mxu1 %v2392_v63  ;;  %v10591_v63 = vld [vmem:[#allocation3_spill] sm:$0xff] }
 0x292   :  { %v2635_v56 = vpop.f32.mrf.mxu1  ;;  %v2395_v21 = vpack.c.bf16 %v2321_v57, %v2319_v24  ;;  %v1817_v20 = vsel %vm1764_vm5, %v6212_v4, %v6207_v30  ;;  %v1818_v59 = vsel %vm1764_vm5, %v6213_v32, %v6208_v48 }
 0x293   :  { %v6216_v49 = vpop.permute.xlu0 %6215  ;;  %v2318_v61 = vmax.f32 %v10584_v58, %v1817_v20  ;;  %v2320_v39 = vmax.f32 %v10586_v44, %v1818_v59  ;;  %v6656_v20 = vld [vmem:[%s10191_s3 + $0x100] ss:$8 sps:$4 sm:$0xff]   ;;  %v6658_v59 = vld [vmem:[%s10191_s3 + $0x104] ss:$8 sps:$4 sm:$0xff]  }
 0x294   :  { %v6218_v60 = vunpack.i.h.bf16 %v6216_v49  ;;  %v6217_v42 = vunpack.i.l.bf16 %v6216_v49  ;;  %v6221_v25 = vpop.permute.xlu1 %6220  ;;  %v2636_v51 = vpop.f32.mrf.mxu1  ;;  %5554 = vmatprep.mubr.msk.bf16.mxu1 %vm2490_vm6, %v2395_v21  ;;  %3840 = vmatprep.subr.bf16.mxu1 %v6658_v59 }
 0x295   :  { %v6223_v53 = vunpack.i.h.bf16 %v6221_v25  ;;  %v6222_v28 = vunpack.i.l.bf16 %v6221_v25  ;;  %v2881_v31 = vmax.f32 %v2628_v11, %v2636_v51  ;;  %v2394_v8 = vpack.c.bf16 %v2320_v39, %v2318_v61  ;;  %3841 = vmatpush1.bf16.msra.mxu1 %v6656_v20  ;;  %v6661_v25 = vld [vmem:[%s10191_s3 + $0xc4] ss:$8 sps:$4 sm:$0xff]  }
 0x296   :  { %v2638_v35 = vpop.f32.mrf.mxu1  ;;  %3655 = vmatprep.subr.bf16.mxu0 %v6661_v25 }
 0x297   :  { %v2205_v52 = vsel %vm2149_vm4, %v6223_v53, %v6218_v60  ;;  %v2204_v27 = vsel %vm2149_vm4, %v6222_v28, %v6217_v42  ;;  %v8702_v19 = vpack.c.bf16 %v2881_v31, %v2880_v10  ;;  %v6659_v42 = vld [vmem:[%s10191_s3 + $0xc0] ss:$8 sps:$4 sm:$0xff]  }
 0x298   :  { %v2325_v50 = vmax.f32 %v10587_v13, %v2205_v52  ;;  %v2323_v22 = vmax.f32 %v10588_v37, %v2204_v27  ;;  %v6226_v0 = vpop.permute.xlu1 %6225  ;;  %v2641_v48 = vpop.f32.mrf.mxu1  ;;  %3656 = vmatpush2.bf16.msra.mxu0 %v6659_v42 }
 0x299   :  { %v6228_v43 = vunpack.i.h.bf16 %v6226_v0  ;;  %v6227_v18 = vunpack.i.l.bf16 %v6226_v0  ;;  %2832 = vmatmul.mubr.bf16.gmra.mxu1 %v2394_v8 }
 0x29a   :  { %v2397_v30 = vpack.c.bf16 %v2325_v50, %v2323_v22  ;;  %v2643_v33 = vpop.f32.mrf.mxu1  ;;  %v3319_v50 = vld [vmem:[%s10191_s3 + $0x1a0] sm:$0x33] }
 0x29b   :  { %v1819_v11 = vsel %vm1764_vm5, %v6227_v18, %v6222_v28  ;;  %v1820_v17 = vsel %vm1764_vm5, %v6228_v43, %v6223_v53  ;;  %v5613_v37 = vcombine.high %v3319_v50, %v3319_v50  ;;  %v5612_v22 = vcombine.low %v3319_v50, %v3319_v50 }
 0x29c   :  { %5555 = vmatprep.mubr.msk.bf16.mxu1 %vm2490_vm6, %v2397_v30  ;;  %v2322_v29 = vmax.f32 %v10589_v3, %v1819_v11  ;;  %v2324_v7 = vmax.f32 %v10590_v16, %v1820_v17  ;;  %v2644_v1 = vpop.f32.mrf.mxu1  ;;  %v6664_v11 = vld [vmem:[%s10191_s3 + $0xb0] ss:$8 sps:$4 sm:$0xff]   ;;  %v6666_v17 = vld [vmem:[%s10191_s3 + $0xb4] ss:$8 sps:$4 sm:$0xff]  }
 0x29d   :  { %5614 = vmatprep.subr.msk.bf16.mxu1 %vm3626_vm7, %v5613_v37  ;;  %v3628_v18 = vsel %vm3626_vm7, %v5612_v22, 0  ;;  %3657 = vmatprep.subr.bf16.mxu0 %v6666_v17 }
 0x29e   :  { %v2646_v36 = vpop.f32.mrf.mxu1  ;;  %v2396_v40 = vpack.c.bf16 %v2324_v7, %v2322_v29  ;;  %3853 = vmatpush2.bf16.msra.mxu1 %v3628_v18  ;;  %3658 = vmatpush2.bf16.msra.mxu0 %v6664_v11  ;;  %v6675_v11 = vld [vmem:[%s10191_s3 + $0x94] ss:$8 sps:$4 sm:$0xff]  }
 0x2a0   :  { %v2649_v55 = vpop.f32.mrf.mxu1 }
 0x2a1   :  { %2840 = vmatmul.mubr.bf16.gmra.mxu1 %v2396_v40  ;;  %v2882_v15 = vmax.f32 %v2641_v48, %v2649_v55 }
 0x2a2   :  { %v2651_v26 = vpop.f32.mrf.mxu1  ;;  %v1213_v45 = vpop.f32.mrf.mxu0 }
 0x2a3   :  { %v8716_v41 = vadd.f32 %v1213_v45, %v10591_v63 }
 0x2a4   :  { %v2652_v9 = vpop.f32.mrf.mxu1  ;;  %v1215_v46 = vpop.f32.mrf.mxu0 }
 0x2a5   :  { %v2883_v12 = vmax.f32 %v2644_v1, %v2652_v9  ;;  %v8727_v24 = vadd.f32 %v1215_v46, %v10592_v54  ;;  %v1364_v10 = vmax.f32 %v8716_v41, 0.0 }
 0x2a6   :  { %v2654_v5 = vpop.f32.mrf.mxu1  ;;  %v1217_v57 = vpop.f32.mrf.mxu0 }
 0x2a7   :  { %v8724_v6 = vpack.c.bf16 %v2883_v12, %v2882_v15  ;;  %v8730_v32 = vadd.f32 %v1217_v57, %v10591_v63  ;;  %v1365_v34 = vmax.f32 %v8727_v24, 0.0 }
 0x2a8   :  { %v2657_v4 = vpop.f32.mrf.mxu1  ;;  %v1219_v23 = vpop.f32.mrf.mxu0 }
 0x2a9   :  { %v1366_v56 = vmax.f32 %v8730_v32, 0.0  ;;  %v8735_v21 = vadd.f32 %v1219_v23, %v10592_v54 }
 0x2aa   :  { %v2659_v14 = vpop.f32.mrf.mxu1 }
 0x2ab   :  { %v6229_v49 = vpack.i.bf16 %v1366_v56, %v1364_v10  ;;  %v1367_v2 = vmax.f32 %v8735_v21, 0.0  ;;  %v6667_v14 = vld [vmem:[%s10191_s3 + $0xa0] ss:$8 sps:$4 sm:$0xff]  }
 0x2ac   :  { %v2660_v58 = vpop.f32.mrf.mxu1 }
 0x2ad   :  { %v6234_v61 = vpack.i.bf16 %v1367_v2, %v1365_v34  ;;  %6230 = vrot.lane.b32.xlu1 %v6229_v49, %s6748_s2 }
 0x2ae   :  { %v2662_v38 = vpop.f32.mrf.mxu1 }
 0x2af   :  { %6235 = vrot.lane.b32.xlu0 %v6234_v61, %s6749_s18 }
 0x2b0   :  { %v2665_v44 = vpop.f32.mrf.mxu1 }
 0x2b1   :  { %v2884_v39 = vmax.f32 %v2657_v4, %v2665_v44 }
 0x2b2   :  { %v2667_v60 = vpop.f32.mrf.mxu1 }
 0x2b3   :  { %6240 = vrot.lane.b32.xlu0 %v6229_v49, %s6749_s18  ;;  %v6669_v49 = vld [vmem:[%s10191_s3 + $0xa4] ss:$8 sps:$4 sm:$0xff]  }
 0x2b4   :  { %v2668_v51 = vpop.f32.mrf.mxu1  ;;  %3659 = vmatprep.subr.bf16.mxu0 %v6669_v49 }
 0x2b5   :  { %v2885_v53 = vmax.f32 %v2660_v58, %v2668_v51  ;;  %3660 = vmatpush2.bf16.msra.mxu0 %v6667_v14 }
 0x2b6   :  { %v2670_v28 = vpop.f32.mrf.mxu1  ;;  %3661 = vmatprep.subr.bf16.mxu0 %v6675_v11  ;;  %v10593_v11 = vmov 0  }
 0x2b7   :  { %v8762_v31 = vpack.c.bf16 %v2885_v53, %v2884_v39  ;;  %v6670_v53 = vld [vmem:[%s10191_s3 + $0x190] ss:$8 sps:$4 sm:$0xff]   ;;  %v6672_v28 = vld [vmem:[%s10191_s3 + $0x194] ss:$8 sps:$4 sm:$0xff]  }
 0x2b8   :  { %v8764_v35 = vpop.f32.mrf.mxu1  ;;  %3854 = vmatprep.subr.bf16.mxu1 %v6672_v28 }
 0x2b9   :  { %3855 = vmatpush2.bf16.msra.mxu1 %v6670_v53  ;;  %v6678_v53 = vld [vmem:[%s10191_s3 + $0x84] ss:$8 sps:$4 sm:$0xff]  }
 0x2ba   :  { %v2675_v52 = vpop.f32.mrf.mxu1 }
 0x2bc   :  { %v8766_v27 = vpop.f32.mrf.mxu1 }
 0x2be   :  { %v2678_v8 = vpop.f32.mrf.mxu1 }
 0x2c0   :  { %v8768_v13 = vpop.f32.mrf.mxu1 }
 0x2c2   :  { %v2683_v0 = vpop.f32.mrf.mxu1  ;;  %v1223_v43 = vpop.f32.mrf.mxu0 }
 0x2c3   :  { %v8776_v33 = vadd.f32 %v1223_v43, %v10591_v63 }
 0x2c4   :  { %v8773_v48 = vpop.f32.mrf.mxu1  ;;  %v1225_v30 = vpop.f32.mrf.mxu0 }
 0x2c5   :  { %v8785_v16 = vadd.f32 %v1225_v30, %v10592_v54  ;;  %v1368_v40 = vmax.f32 %v8776_v33, 0.0  ;;  %v6673_v30 = vld [vmem:[%s10191_s3 + $0x90] ss:$8 sps:$4 sm:$0xff]  }
 0x2c6   :  { %v2686_v3 = vpop.f32.mrf.mxu1  ;;  %v1227_v29 = vpop.f32.mrf.mxu0  ;;  %3662 = vmatpush2.bf16.msra.mxu0 %v6673_v30 }
 0x2c7   :  { %v8788_v7 = vadd.f32 %v1227_v29, %v10591_v63  ;;  %v1369_v45 = vmax.f32 %v8785_v16, 0.0  ;;  %3663 = vmatprep.subr.bf16.mxu0 %v6678_v53 }
 0x2c8   :  { %v8790_v1 = vpop.f32.mrf.mxu1  ;;  %v1229_v36 = vpop.f32.mrf.mxu0 }
 0x2c9   :  { %v1370_v55 = vmax.f32 %v8788_v7, 0.0  ;;  %v8795_v15 = vadd.f32 %v1229_v36, %v10592_v54 }
 0x2ca   :  { %v2691_v26 = vpop.f32.mrf.mxu1 }
 0x2cb   :  { %v6244_v9 = vpack.i.bf16 %v1370_v55, %v1368_v40  ;;  %v1371_v46 = vmax.f32 %v8795_v15, 0.0 }
 0x2cc   :  { %v8803_v12 = vpop.f32.mrf.mxu1 }
 0x2cd   :  { %v6249_v47 = vpack.i.bf16 %v1371_v46, %v1369_v45  ;;  %6245 = vrot.lane.b32.xlu0 %v6244_v9, %s6748_s2 }
 0x2ce   :  { %v2694_v62 = vpop.f32.mrf.mxu1 }
 0x2cf   :  { %6250 = vrot.lane.b32.xlu1 %v6249_v47, %s6749_s18 }
 0x2d1   :  { %v8811_v5 = vpop.f32.mrf.mxu1 }
 0x2d3   :  { %v2699_v57 = vpop.f32.mrf.mxu1  ;;  %v1233_v4 = vpop.f32.mrf.mxu0  ;;  %6255 = vrot.lane.b32.xlu1 %v6244_v9, %s6749_s18 }
 0x2d4   :  { %v8817_v59 = vadd.f32 %v1233_v4, %v10591_v63 }
 0x2d5   :  { %v8814_v23 = vpop.f32.mrf.mxu1  ;;  %v1235_v20 = vpop.f32.mrf.mxu0 }
 0x2d6   :  { %v8826_v38 = vadd.f32 %v1235_v20, %v10592_v54  ;;  %v1372_v42 = vmax.f32 %v8817_v59, 0.0 }
 0x2d7   :  { %v2702_v58 = vpop.f32.mrf.mxu1  ;;  %v1237_v61 = vpop.f32.mrf.mxu0 }
 0x2d8   :  { %v8829_v44 = vadd.f32 %v1237_v61, %v10591_v63  ;;  %v1373_v8 = vmax.f32 %v8826_v38, 0.0 }
 0x2d9   :  { %v8831_v39 = vpop.f32.mrf.mxu1  ;;  %v1239_v60 = vpop.f32.mrf.mxu0 }
 0x2da   :  { %v1374_v25 = vmax.f32 %v8829_v44, 0.0  ;;  %v8836_v51 = vadd.f32 %v1239_v60, %v10592_v54  ;;  %v6676_v60 = vld [vmem:[%s10191_s3 + $0x80] ss:$8 sps:$4 sm:$0xff]  }
 0x2db   :  { %v2707_v52 = vpop.f32.mrf.mxu1  ;;  %3664 = vmatpush2.bf16.msra.mxu0 %v6676_v60 }
 0x2dc   :  { %v6259_v50 = vpack.i.bf16 %v1374_v25, %v1372_v42  ;;  %v1375_v37 = vmax.f32 %v8836_v51, 0.0  ;;  %4724 = vmatprep.subr.bf16.mxu0 %v10593_v11 }
 0x2dd   :  { %v8850_v22 = vpop.f32.mrf.mxu1 }
 0x2de   :  { %v6264_v0 = vpack.i.bf16 %v1375_v37, %v1373_v8  ;;  %6260 = vrot.lane.b32.xlu1 %v6259_v50, %s6748_s2 }
 0x2df   :  { %v2710_v43 = vpop.f32.mrf.mxu1 }
 0x2e0   :  { %6265 = vrot.lane.b32.xlu0 %v6264_v0, %s6749_s18  ;;  %v6681_v0 = vld [vmem:[%s10191_s3 + $0x184] ss:$8 sps:$4 sm:$0xff]  }
 0x2e1   :  { %v8858_v18 = vpop.f32.mrf.mxu1  ;;  %3856 = vmatprep.subr.bf16.mxu1 %v6681_v0 }
 0x2e3   :  { %v2715_v17 = vpop.f32.mrf.mxu1 }
 0x2e4   :  { %6270 = vrot.lane.b32.xlu0 %v6259_v50, %s6749_s18  ;;  %v1243_v3 = vpop.f32.mrf.mxu0  ;;  %v2887_v17 = vmax.f32 %v8766_v27, %v8773_v48  ;;  %v2889_v27 = vmax.f32 %v8803_v12, %v8814_v23 }
 0x2e5   :  { %v2716_v29 = vpop.f32.mrf.mxu1  ;;  %v8868_v26 = vadd.f32 %v1243_v3, %v10591_v63 }
 0x2e6   :  { %v1245_v36 = vpop.f32.mrf.mxu0  ;;  %v2891_v23 = vmax.f32 %v8850_v22, %v2716_v29 }
 0x2e7   :  { %v2718_v9 = vpop.f32.mrf.mxu1  ;;  %v8871_v62 = vadd.f32 %v1245_v36, %v10592_v54  ;;  %v1376_v14 = vmax.f32 %v8868_v26, 0.0  ;;  %v2886_v36 = vmax.f32 %v8764_v35, %v8768_v13  ;;  %v2888_v35 = vmax.f32 %v8790_v1, %v8811_v5 }
 0x2e8   :  { %v1247_v47 = vpop.f32.mrf.mxu0  ;;  %v2890_v5 = vmax.f32 %v8831_v39, %v8858_v18 }
 0x2e9   :  { %v8873_v57 = vpop.f32.mrf.mxu1  ;;  %v8876_v4 = vadd.f32 %v1247_v47, %v10591_v63  ;;  %v1377_v63 = vmax.f32 %v8871_v62, 0.0  ;;  %v8914_v47 = vpack.c.bf16 %v2887_v17, %v2886_v36 }
 0x2ea   :  { %v1249_v20 = vpop.f32.mrf.mxu0 }
 0x2eb   :  { %v1378_v49 = vmax.f32 %v8876_v4, 0.0  ;;  %v2723_v58 = vpop.f32.mrf.mxu1  ;;  %v8881_v61 = vadd.f32 %v1249_v20, %v10592_v54  ;;  %v6679_v54 = vld [vmem:[%s10191_s3 + $0x180] ss:$8 sps:$4 sm:$0xff]   ;;  %s6750_s3 = smov 84  }
 0x2ec   :  { %3857 = vmatpush2.bf16.msra.mxu1 %v6679_v54  ;;  %v8925_v58 = vpack.c.bf16 %v2889_v27, %v2888_v35 }
 0x2ed   :  { %v6274_v28 = vpack.i.bf16 %v1378_v49, %v1376_v14  ;;  %v1379_v52 = vmax.f32 %v8881_v61, 0.0  ;;  %v2724_v50 = vpop.f32.mrf.mxu1 }
 0x2ef   :  { %v6279_v43 = vpack.i.bf16 %v1379_v52, %v1377_v63  ;;  %v2726_v30 = vpop.f32.mrf.mxu1  ;;  %6275 = vrot.lane.b32.xlu0 %v6274_v28, %s6748_s2  ;;  %s6751_s2 = smov 124  }
 0x2f1   :  { %6280 = vrot.lane.b32.xlu1 %v6279_v43, %s6749_s18  ;;  %v2729_v3 = vpop.f32.mrf.mxu1 }
 0x2f2   :  { %v2892_v39 = vmax.f32 %v8873_v57, %v2729_v3 }
 0x2f3   :  { %2944 = vrot.lane.b32.xlu0 %v8724_v6, %s6750_s3  ;;  %v2731_v9 = vpop.f32.mrf.mxu1 }
 0x2f5   :  { %6285 = vrot.lane.b32.xlu1 %v6274_v28, %s6749_s18  ;;  %v2732_v20 = vpop.f32.mrf.mxu1  ;;  %v8938_v28 = vpack.c.bf16 %v2891_v23, %v2890_v5 }
 0x2f6   :  { %v2893_v29 = vmax.f32 %v2724_v50, %v2732_v20 }
 0x2f7   :  { %3008 = vrot.lane.b32.xlu0 %v8914_v47, %s6751_s2  ;;  %v2734_v48 = vpop.f32.mrf.mxu1 }
 0x2f8   :  { %v8949_v43 = vpack.c.bf16 %v2893_v29, %v2892_v39 }
 0x2f9   :  { %2976 = vrot.lane.b32.xlu1 %v8762_v31, %s6752_s17  ;;  %v2737_v13 = vpop.f32.mrf.mxu1 }
 0x2fb   :  { %2946 = vrot.lane.b32.xlu0 %v8762_v31, %s6750_s3  ;;  %v2739_v60 = vpop.f32.mrf.mxu1 }
 0x2fd   :  { %3040 = vrot.lane.b32.xlu1 %v8925_v58, %s6753_s19  ;;  %v2740_v12 = vpop.f32.mrf.mxu1 }
 0x2ff   :  { %3010 = vrot.lane.b32.xlu0 %v8925_v58, %s6751_s2  ;;  %v2742_v1 = vpop.f32.mrf.mxu1 }
 0x301   :  { %2978 = vrot.lane.b32.xlu1 %v8914_v47, %s6752_s17  ;;  %v2745_v53 = vpop.f32.mrf.mxu1 }
 0x302   :  { %v2894_v57 = vmax.f32 %v2737_v13, %v2745_v53 }
 0x303   :  { %2948 = vrot.lane.b32.xlu0 %v8914_v47, %s6750_s3  ;;  %v2747_v54 = vpop.f32.mrf.mxu1 }
 0x305   :  { %3042 = vrot.lane.b32.xlu1 %v8938_v28, %s6753_s19  ;;  %v2748_v22 = vpop.f32.mrf.mxu1 }
 0x306   :  { %v2895_v17 = vmax.f32 %v2740_v12, %v2748_v22 }
 0x307   :  { %3012 = vrot.lane.b32.xlu0 %v8938_v28, %s6751_s2  ;;  %v2750_v0 = vpop.f32.mrf.mxu1 }
 0x308   :  { %v8959_v9 = vpack.c.bf16 %v2895_v17, %v2894_v57 }
 0x309   :  { %2980 = vrot.lane.b32.xlu1 %v8925_v58, %s6752_s17  ;;  %v2753_v18 = vpop.f32.mrf.mxu1 }
 0x30b   :  { %2950 = vrot.lane.b32.xlu0 %v8925_v58, %s6750_s3  ;;  %v2755_v30 = vpop.f32.mrf.mxu1 }
 0x30d   :  { %3044 = vrot.lane.b32.xlu1 %v8949_v43, %s6753_s19  ;;  %v2756_v50 = vpop.f32.mrf.mxu1 }
 0x30f   :  { %3014 = vrot.lane.b32.xlu0 %v8949_v43, %s6751_s2  ;;  %v2758_v36 = vpop.f32.mrf.mxu1 }
 0x311   :  { %2982 = vrot.lane.b32.xlu1 %v8938_v28, %s6752_s17  ;;  %v2761_v3 = vpop.f32.mrf.mxu1 }
 0x312   :  { %v2896_v13 = vmax.f32 %v2753_v18, %v2761_v3 }
 0x313   :  { %2952 = vrot.lane.b32.xlu0 %v8938_v28, %s6750_s3  ;;  %v2763_v20 = vpop.f32.mrf.mxu1 }
 0x315   :  { %3046 = vrot.lane.b32.xlu1 %v8959_v9, %s6753_s19  ;;  %v2764_v27 = vpop.f32.mrf.mxu1 }
 0x316   :  { %v2897_v48 = vmax.f32 %v2756_v50, %v2764_v27 }
 0x317   :  { %3016 = vrot.lane.b32.xlu0 %v8959_v9, %s6751_s2  ;;  %v2766_v35 = vpop.f32.mrf.mxu1 }
 0x318   :  { %v8969_v12 = vpack.c.bf16 %v2897_v48, %v2896_v13 }
 0x319   :  { %2984 = vrot.lane.b32.xlu1 %v8949_v43, %s6752_s17  ;;  %v2769_v60 = vpop.f32.mrf.mxu1 }
 0x31b   :  { %2954 = vrot.lane.b32.xlu0 %v8949_v43, %s6750_s3  ;;  %v2771_v23 = vpop.f32.mrf.mxu1 }
 0x31d   :  { %3048 = vrot.lane.b32.xlu1 %v8969_v12, %s6753_s19  ;;  %v2772_v1 = vpop.f32.mrf.mxu1 }
 0x31f   :  { %3018 = vrot.lane.b32.xlu0 %v8969_v12, %s6751_s2  ;;  %v2774_v5 = vpop.f32.mrf.mxu1  ;;  %v6231_v53 = vpop.permute.xlu1 %6230 }
 0x320   :  { %v6233_v29 = vunpack.i.h.bf16 %v6231_v53  ;;  %v6232_v0 = vunpack.i.l.bf16 %v6231_v53 }
 0x321   :  { %2986 = vrot.lane.b32.xlu1 %v8959_v9, %s6752_s17  ;;  %v2777_v54 = vpop.f32.mrf.mxu1  ;;  %v6236_v22 = vpop.permute.xlu0 %6235 }
 0x322   :  { %v6238_v39 = vunpack.i.h.bf16 %v6236_v22  ;;  %v6237_v18 = vunpack.i.l.bf16 %v6236_v22  ;;  %v2898_v57 = vmax.f32 %v2769_v60, %v2777_v54 }
 0x323   :  { %2956 = vrot.lane.b32.xlu0 %v8959_v9, %s6750_s3  ;;  %v2779_v30 = vpop.f32.mrf.mxu1 }
 0x324   :  { %v2206_v50 = vsel %vm2149_vm4, %v6237_v18, %v6232_v0  ;;  %v2207_v17 = vsel %vm2149_vm4, %v6238_v39, %v6233_v29 }
 0x325   :  { %v2780_v36 = vpop.f32.mrf.mxu1  ;;  %v2327_v3 = vmax.f32 %v1365_v34, %v2206_v50  ;;  %v2329_v20 = vmax.f32 %v1367_v2, %v2207_v17  ;;  %v6241_v48 = vpop.permute.xlu0 %6240 }
 0x326   :  { %v2899_v27 = vmax.f32 %v2772_v1, %v2780_v36  ;;  %v6243_v35 = vunpack.i.h.bf16 %v6241_v48  ;;  %v6242_v13 = vunpack.i.l.bf16 %v6241_v48 }
 0x327   :  { %v2782_v23 = vpop.f32.mrf.mxu1  ;;  %v2399_v53 = vpack.c.bf16 %v2329_v20, %v2327_v3 }
 0x328   :  { %v8987_v5 = vpack.c.bf16 %v2899_v27, %v2898_v57  ;;  %v1822_v22 = vsel %vm1764_vm5, %v6243_v35, %v6238_v39  ;;  %v1821_v29 = vsel %vm1764_vm5, %v6242_v13, %v6237_v18 }
 0x329   :  { %v2785_v0 = vpop.f32.mrf.mxu1  ;;  %v2328_v24 = vmax.f32 %v1366_v56, %v1822_v22  ;;  %v2326_v21 = vmax.f32 %v1364_v10, %v1821_v29  ;;  %5556 = vmatprep.mubr.msk.bf16.mxu1 %vm2490_vm6, %v2399_v53 }
 0x32a   :  { %3020 = vrot.lane.b32.xlu0 %v8987_v5, %s6751_s2  ;;  %3050 = vrot.lane.b32.xlu1 %v8987_v5, %s6753_s19 }
 0x32b   :  { %v2787_v34 = vpop.f32.mrf.mxu1  ;;  %v2398_v2 = vpack.c.bf16 %v2328_v24, %v2326_v21 }
 0x32d   :  { %v2788_v60 = vpop.f32.mrf.mxu1  ;;  %2848 = vmatmul.mubr.bf16.gmra.mxu1 %v2398_v2 }
 0x32e   :  { %2958 = vrot.lane.b32.xlu0 %v8969_v12, %s6750_s3  ;;  %2988 = vrot.lane.b32.xlu1 %v8969_v12, %s6752_s17 }
 0x32f   :  { %v2790_v41 = vpop.f32.mrf.mxu1 }
 0x331   :  { %v2793_v32 = vpop.f32.mrf.mxu1 }
 0x332   :  { %v2900_v1 = vmax.f32 %v2785_v0, %v2793_v32 }
 0x333   :  { %v2795_v10 = vpop.f32.mrf.mxu1 }
 0x335   :  { %v2796_v56 = vpop.f32.mrf.mxu1 }
 0x336   :  { %v2901_v54 = vmax.f32 %v2788_v60, %v2796_v56 }
 0x337   :  { %v2798_v39 = vpop.f32.mrf.mxu1 }
 0x338   :  { %v9004_v18 = vpack.c.bf16 %v2901_v54, %v2900_v1 }
 0x339   :  { %v2801_v30 = vpop.f32.mrf.mxu1 }
 0x33a   :  { %3022 = vrot.lane.b32.xlu0 %v9004_v18, %s6751_s2  ;;  %3052 = vrot.lane.b32.xlu1 %v9004_v18, %s6753_s19 }
 0x33b   :  { %v2803_v50 = vpop.f32.mrf.mxu1 }
 0x33d   :  { %v2804_v17 = vpop.f32.mrf.mxu1 }
 0x33e   :  { %2960 = vrot.lane.b32.xlu0 %v8987_v5, %s6750_s3  ;;  %2990 = vrot.lane.b32.xlu1 %v8987_v5, %s6752_s17 }
 0x33f   :  { %v2806_v36 = vpop.f32.mrf.mxu1  ;;  %v6246_v57 = vpop.permute.xlu0 %6245 }
 0x340   :  { %v6248_v27 = vunpack.i.h.bf16 %v6246_v57  ;;  %v6247_v48 = vunpack.i.l.bf16 %v6246_v57 }
 0x341   :  { %v2809_v3 = vpop.f32.mrf.mxu1  ;;  %v6251_v20 = vpop.permute.xlu1 %6250 }
 0x342   :  { %v6253_v35 = vunpack.i.h.bf16 %v6251_v20  ;;  %v6252_v13 = vunpack.i.l.bf16 %v6251_v20  ;;  %v2902_v0 = vmax.f32 %v2801_v30, %v2809_v3 }
 0x343   :  { %v2811_v23 = vpop.f32.mrf.mxu1 }
 0x344   :  { %v2209_v53 = vsel %vm2149_vm4, %v6253_v35, %v6248_v27  ;;  %v2208_v22 = vsel %vm2149_vm4, %v6252_v13, %v6247_v48 }
 0x345   :  { %v2812_v29 = vpop.f32.mrf.mxu1  ;;  %v2333_v24 = vmax.f32 %v1371_v46, %v2209_v53  ;;  %v2331_v21 = vmax.f32 %v1369_v45, %v2208_v22  ;;  %v6256_v2 = vpop.permute.xlu1 %6255 }
 0x346   :  { %v2903_v34 = vmax.f32 %v2804_v17, %v2812_v29  ;;  %v6258_v60 = vunpack.i.h.bf16 %v6256_v2  ;;  %v6257_v41 = vunpack.i.l.bf16 %v6256_v2 }
 0x347   :  { %v2814_v32 = vpop.f32.mrf.mxu1  ;;  %v2401_v56 = vpack.c.bf16 %v2333_v24, %v2331_v21 }
 0x348   :  { %v9020_v10 = vpack.c.bf16 %v2903_v34, %v2902_v0  ;;  %v1823_v1 = vsel %vm1764_vm5, %v6257_v41, %v6252_v13  ;;  %v1824_v54 = vsel %vm1764_vm5, %v6258_v60, %v6253_v35 }
 0x349   :  { %v2817_v39 = vpop.f32.mrf.mxu1  ;;  %v2330_v15 = vmax.f32 %v1368_v40, %v1823_v1  ;;  %v2332_v16 = vmax.f32 %v1370_v55, %v1824_v54  ;;  %5557 = vmatprep.mubr.msk.bf16.mxu1 %vm2490_vm6, %v2401_v56 }
 0x34a   :  { %3024 = vrot.lane.b32.xlu0 %v9020_v10, %s6751_s2  ;;  %3054 = vrot.lane.b32.xlu1 %v9020_v10, %s6753_s19 }
 0x34b   :  { %v2819_v45 = vpop.f32.mrf.mxu1  ;;  %v2400_v46 = vpack.c.bf16 %v2332_v16, %v2330_v15 }
 0x34d   :  { %v2820_v30 = vpop.f32.mrf.mxu1  ;;  %2856 = vmatmul.mubr.bf16.gmra.mxu1 %v2400_v46 }
 0x34e   :  { %2962 = vrot.lane.b32.xlu0 %v9004_v18, %s6750_s3  ;;  %2992 = vrot.lane.b32.xlu1 %v9004_v18, %s6752_s17 }
 0x34f   :  { %v2822_v33 = vpop.f32.mrf.mxu1 }
 0x350   :  { %v6261_v7 = vpop.permute.xlu1 %6260 }
 0x351   :  { %v2825_v40 = vpop.f32.mrf.mxu1  ;;  %v6263_v50 = vunpack.i.h.bf16 %v6261_v7  ;;  %v6262_v17 = vunpack.i.l.bf16 %v6261_v7 }
 0x352   :  { %v6266_v55 = vpop.permute.xlu0 %6265  ;;  %v2904_v35 = vmax.f32 %v2817_v39, %v2825_v40 }
 0x353   :  { %v6268_v36 = vunpack.i.h.bf16 %v6266_v55  ;;  %v6267_v57 = vunpack.i.l.bf16 %v6266_v55  ;;  %v2827_v3 = vpop.f32.mrf.mxu1 }
 0x355   :  { %v2210_v20 = vsel %vm2149_vm4, %v6267_v57, %v6262_v17  ;;  %v2211_v27 = vsel %vm2149_vm4, %v6268_v36, %v6263_v50  ;;  %v2828_v48 = vpop.f32.mrf.mxu1 }
 0x356   :  { %v2335_v13 = vmax.f32 %v1373_v8, %v2210_v20  ;;  %v2337_v23 = vmax.f32 %v1375_v37, %v2211_v27  ;;  %v2905_v53 = vmax.f32 %v2820_v30, %v2828_v48  ;;  %v6271_v22 = vpop.permute.xlu0 %6270 }
 0x357   :  { %v6273_v29 = vunpack.i.h.bf16 %v6271_v22  ;;  %v6272_v0 = vunpack.i.l.bf16 %v6271_v22  ;;  %v2830_v24 = vpop.f32.mrf.mxu1 }
 0x358   :  { %v9043_v21 = vpack.c.bf16 %v2905_v53, %v2904_v35  ;;  %v2403_v34 = vpack.c.bf16 %v2337_v23, %v2335_v13 }
 0x359   :  { %v1826_v2 = vsel %vm1764_vm5, %v6273_v29, %v6268_v36  ;;  %v1825_v60 = vsel %vm1764_vm5, %v6272_v0, %v6267_v57  ;;  %v2833_v41 = vpop.f32.mrf.mxu1 }
 0x35a   :  { %v2336_v38 = vmax.f32 %v1374_v25, %v1826_v2  ;;  %v2334_v51 = vmax.f32 %v1372_v42, %v1825_v60  ;;  %5558 = vmatprep.mubr.msk.bf16.mxu1 %vm2490_vm6, %v2403_v34  ;;  %3026 = vrot.lane.b32.xlu0 %v9043_v21, %s6751_s2 }
 0x35b   :  { %3056 = vrot.lane.b32.xlu1 %v9043_v21, %s6753_s19  ;;  %v2835_v8 = vpop.f32.mrf.mxu1 }
 0x35c   :  { %v2402_v37 = vpack.c.bf16 %v2336_v38, %v2334_v51 }
 0x35d   :  { %v2836_v32 = vpop.f32.mrf.mxu1 }
 0x35e   :  { %2864 = vmatmul.mubr.bf16.gmra.mxu1 %v2402_v37  ;;  %2964 = vrot.lane.b32.xlu0 %v9020_v10, %s6750_s3 }
 0x35f   :  { %2994 = vrot.lane.b32.xlu1 %v9020_v10, %s6752_s17  ;;  %v2838_v59 = vpop.f32.mrf.mxu1 }
 0x361   :  { %v6276_v44 = vpop.permute.xlu0 %6275  ;;  %v2841_v42 = vpop.f32.mrf.mxu1 }
 0x362   :  { %v6278_v1 = vunpack.i.h.bf16 %v6276_v44  ;;  %v6277_v54 = vunpack.i.l.bf16 %v6276_v44  ;;  %v2906_v46 = vmax.f32 %v2833_v41, %v2841_v42 }
 0x363   :  { %v6281_v25 = vpop.permute.xlu1 %6280  ;;  %v2843_v56 = vpop.f32.mrf.mxu1 }
 0x364   :  { %v6283_v39 = vunpack.i.h.bf16 %v6281_v25  ;;  %v6282_v15 = vunpack.i.l.bf16 %v6281_v25 }
 0x365   :  { %v2945_v16 = vpop.permute.xlu0 %2944  ;;  %v2844_v45 = vpop.f32.mrf.mxu1 }
 0x366   :  { %v2213_v30 = vsel %vm2149_vm4, %v6283_v39, %v6278_v1  ;;  %v2212_v33 = vsel %vm2149_vm4, %v6282_v15, %v6277_v54  ;;  %v2907_v7 = vmax.f32 %v2836_v32, %v2844_v45  ;;  %v3075_v26 = vsel %vm3072_vm9, %v8702_v19, %v2945_v16 }
 0x367   :  { %v2341_v40 = vmax.f32 %v1379_v52, %v2213_v30  ;;  %v2339_v55 = vmax.f32 %v1377_v63, %v2212_v33  ;;  %v6286_v50 = vpop.permute.xlu1 %6285  ;;  %v2846_v17 = vpop.f32.mrf.mxu1 }
 0x368   :  { %v9066_v36 = vpack.c.bf16 %v2907_v7, %v2906_v46  ;;  %v6288_v57 = vunpack.i.h.bf16 %v6286_v50  ;;  %v6287_v3 = vunpack.i.l.bf16 %v6286_v50 }
 0x369   :  { %v3009_v20 = vpop.permute.xlu0 %3008  ;;  %v2405_v27 = vpack.c.bf16 %v2341_v40, %v2339_v55 }
 0x36a   :  { %v1827_v48 = vsel %vm1764_vm5, %v6287_v3, %v6282_v15  ;;  %v1828_v35 = vsel %vm1764_vm5, %v6288_v57, %v6283_v39  ;;  %3028 = vrot.lane.b32.xlu0 %v9066_v36, %s6751_s2  ;;  %3058 = vrot.lane.b32.xlu1 %v9066_v36, %s6753_s19 }
 0x36b   :  { %v2338_v62 = vmax.f32 %v1376_v14, %v1827_v48  ;;  %v2340_v61 = vmax.f32 %v1378_v49, %v1828_v35  ;;  %5559 = vmatprep.mubr.msk.bf16.mxu1 %vm2490_vm6, %v2405_v27  ;;  %v2977_v63 = vpop.permute.xlu1 %2976 }
 0x36c   :  { %v3138_v52 = vsel %vm2490_vm6, %v2945_v16, %v2977_v63 }
 0x36d   :  { %v2947_v13 = vpop.permute.xlu0 %2946  ;;  %v3171_v23 = vsel %vm3169_vm8, %v3138_v52, %v3009_v20  ;;  %v2404_v53 = vpack.c.bf16 %v2340_v61, %v2338_v62 }
 0x36e   :  { %3665 = vmatprep.mubr.bf16.mxu0 %v3171_v23  ;;  %2998 = vrot.lane.b32.xlu0 %v9066_v36, %s6752_s17  ;;  %v3079_v34 = vsel %vm3072_vm9, %v8724_v6, %v2947_v13 }
 0x36f   :  { %2996 = vrot.lane.b32.xlu1 %v9043_v21, %s6752_s17  ;;  %2872 = vmatmul.mubr.bf16.gmra.mxu1 %v2404_v53  ;;  %v3041_v4 = vpop.permute.xlu1 %3040 }
 0x370   :  { %3666 = vmatmul.mubr.bf16.vlgmr.msra.gmra.mxu0 %v3075_v26  ;;  %5615 = vmatprep.mubr.msk.bf16.mxu1 %vm3593_vm10, %v3041_v4  ;;  %v3220_v24 = vsel %vm3218_vm11, %v3009_v20, %v3041_v4 }
 0x371   :  { %v3011_v14 = vpop.permute.xlu0 %3010 }
 0x372   :  { %2968 = vrot.lane.b32.xlu0 %v9066_v36, %s6750_s3 }
 0x373   :  { %2966 = vrot.lane.b32.xlu1 %v9043_v21, %s6750_s3  ;;  %v2979_v49 = vpop.permute.xlu1 %2978 }
 0x374   :  { %v3140_v22 = vsel %vm2490_vm6, %v2947_v13, %v2979_v49 }
 0x375   :  { %v2949_v29 = vpop.permute.xlu0 %2948  ;;  %v3174_v0 = vsel %vm3169_vm8, %v3140_v22, %v3011_v14 }
 0x376   :  { %3675 = vmatprep.mubr.bf16.mxu0 %v3174_v0  ;;  %v3083_v32 = vsel %vm3072_vm9, %v8762_v31, %v2949_v29 }
 0x377   :  { %3859 = vmatmul.mubr.bf16.vlgmr.msra.gmra.mxu1 %v3220_v24  ;;  %v3043_v2 = vpop.permute.xlu1 %3042 }
 0x378   :  { %3676 = vmatmul.mubr.bf16.gmra.mxu0 %v3079_v34  ;;  %5616 = vmatprep.mubr.msk.bf16.mxu1 %vm3593_vm10, %v3043_v2  ;;  %v3223_v37 = vsel %vm3218_vm11, %v3011_v14, %v3043_v2 }
 0x379   :  { %v3013_v60 = vpop.permute.xlu0 %3012 }
 0x37b   :  { %v2981_v41 = vpop.permute.xlu1 %2980 }
 0x37c   :  { %v3142_v38 = vsel %vm2490_vm6, %v2949_v29, %v2981_v41 }
 0x37d   :  { %v2951_v51 = vpop.permute.xlu0 %2950  ;;  %v3177_v8 = vsel %vm3169_vm8, %v3142_v38, %v3013_v60 }
 0x37e   :  { %3685 = vmatprep.mubr.bf16.mxu0 %v3177_v8  ;;  %v3087_v39 = vsel %vm3072_vm9, %v8914_v47, %v2951_v51 }
 0x37f   :  { %3869 = vmatmul.mubr.bf16.gmra.mxu1 %v3223_v37  ;;  %v3045_v59 = vpop.permute.xlu1 %3044 }
 0x380   :  { %3686 = vmatmul.mubr.bf16.gmra.mxu0 %v3083_v32  ;;  %5617 = vmatprep.mubr.msk.bf16.mxu1 %vm3593_vm10, %v3045_v59  ;;  %v3226_v54 = vsel %vm3218_vm11, %v3013_v60, %v3045_v59 }
 0x381   :  { %v3015_v44 = vpop.permute.xlu0 %3014 }
 0x383   :  { %v2983_v42 = vpop.permute.xlu1 %2982 }
 0x384   :  { %v3144_v25 = vsel %vm2490_vm6, %v2951_v51, %v2983_v42 }
 0x385   :  { %v2953_v56 = vpop.permute.xlu0 %2952  ;;  %v3180_v1 = vsel %vm3169_vm8, %v3144_v25, %v3015_v44 }
 0x386   :  { %3695 = vmatprep.mubr.bf16.mxu0 %v3180_v1  ;;  %v3091_v40 = vsel %vm3072_vm9, %v8925_v58, %v2953_v56 }
 0x387   :  { %3879 = vmatmul.mubr.bf16.gmra.mxu1 %v3226_v54  ;;  %v3047_v15 = vpop.permute.xlu1 %3046 }
 0x388   :  { %3696 = vmatmul.mubr.bf16.gmra.mxu0 %v3087_v39  ;;  %5618 = vmatprep.mubr.msk.bf16.mxu1 %vm3593_vm10, %v3047_v15  ;;  %v3229_v7 = vsel %vm3218_vm11, %v3015_v44, %v3047_v15  ;;  %v6683_v39 = vld [vmem:[%s10192_s4 + $0x30] sm:$0xff]  }
 0x389   :  { %v3017_v16 = vpop.permute.xlu0 %3016 }
 0x38b   :  { %v2985_v45 = vpop.permute.xlu1 %2984 }
 0x38c   :  { %v3146_v46 = vsel %vm2490_vm6, %v2953_v56, %v2985_v45  ;;  %v6684_v45 = vld [vmem:[%s10192_s4 + $0x28] sm:$0xff]  }
 0x38d   :  { %v3183_v30 = vsel %vm3169_vm8, %v3146_v46, %v3017_v16  ;;  %v2955_v33 = vpop.permute.xlu0 %2954 }
 0x38e   :  { %3705 = vmatprep.mubr.bf16.mxu0 %v3183_v30  ;;  %v3095_v27 = vsel %vm3072_vm9, %v8938_v28, %v2955_v33 }
 0x38f   :  { %3889 = vmatmul.mubr.bf16.gmra.mxu1 %v3229_v7  ;;  %v3049_v55 = vpop.permute.xlu1 %3048 }
 0x390   :  { %3706 = vmatmul.mubr.bf16.gmra.mxu0 %v3091_v40  ;;  %5619 = vmatprep.mubr.msk.bf16.mxu1 %vm3593_vm10, %v3049_v55  ;;  %v3232_v20 = vsel %vm3218_vm11, %v3017_v16, %v3049_v55  ;;  %v6686_v40 = vld [vmem:[%s10192_s4 + $0x18] sm:$0xff]  }
 0x391   :  { %v3019_v17 = vpop.permute.xlu0 %3018 }
 0x393   :  { %v2987_v50 = vpop.permute.xlu1 %2986 }
 0x394   :  { %v3148_v57 = vsel %vm2490_vm6, %v2955_v33, %v2987_v50 }
 0x395   :  { %v3186_v3 = vsel %vm3169_vm8, %v3148_v57, %v3019_v17  ;;  %v2957_v48 = vpop.permute.xlu0 %2956 }
 0x396   :  { %3715 = vmatprep.mubr.bf16.mxu0 %v3186_v3  ;;  %v3099_v13 = vsel %vm3072_vm9, %v8949_v43, %v2957_v48 }
 0x397   :  { %3899 = vmatmul.mubr.bf16.gmra.mxu1 %v3232_v20 }
 0x398   :  { %3716 = vmatmul.mubr.bf16.gmra.mxu0 %v3095_v27  ;;  %v6687_v27 = vld [vmem:[%s10192_s4 + $0x10] sm:$0xff]  }
 0x39c   :  { %v3051_v58 = vpop.permute.xlu1 %3050  ;;  %v3021_v61 = vpop.permute.xlu0 %3020 }
 0x39d   :  { %v3235_v35 = vsel %vm3218_vm11, %v3019_v17, %v3051_v58  ;;  %5620 = vmatprep.mubr.msk.bf16.mxu1 %vm3593_vm10, %v3051_v58 }
 0x39f   :  { %3909 = vmatmul.mubr.bf16.gmra.mxu1 %v3235_v35 }
 0x3a0   :  { %v2989_v62 = vpop.permute.xlu1 %2988  ;;  %v2959_v23 = vpop.permute.xlu0 %2958 }
 0x3a1   :  { %v3150_v63 = vsel %vm2490_vm6, %v2957_v48, %v2989_v62  ;;  %v3103_v22 = vsel %vm3072_vm9, %v8959_v9, %v2959_v23  ;;  %v6688_v62 = vld [vmem:[%s10192_s4 + $0x8] sm:$0xff]  }
 0x3a2   :  { %v3189_v52 = vsel %vm3169_vm8, %v3150_v63, %v3021_v61 }
 0x3a3   :  { %3725 = vmatprep.mubr.bf16.mxu0 %v3189_v52  ;;  %v6689_v52 = vld [vmem:[%s10192_s4] sm:$0xff]  }
 0x3a4   :  { %3726 = vmatmul.mubr.bf16.gmra.mxu0 %v3099_v13 }
 0x3ac   :  { %v3053_v28 = vpop.permute.xlu1 %3052  ;;  %v3023_v4 = vpop.permute.xlu0 %3022 }
 0x3ad   :  { %v3238_v53 = vsel %vm3218_vm11, %v3021_v61, %v3053_v28  ;;  %5621 = vmatprep.mubr.msk.bf16.mxu1 %vm3593_vm10, %v3053_v28  ;;  %v10595_v28 = vld [vmem:[#allocation2_spill] sm:$0xff] }
 0x3ae   :  { %3919 = vmatmul.mubr.bf16.gmra.mxu1 %v3238_v53 }
 0x3b0   :  { %v2991_v26 = vpop.permute.xlu1 %2990  ;;  %v2961_v29 = vpop.permute.xlu0 %2960 }
 0x3b1   :  { %v3152_v14 = vsel %vm2490_vm6, %v2959_v23, %v2991_v26  ;;  %v3107_v41 = vsel %vm3072_vm9, %v8969_v12, %v2961_v29  ;;  %v6682_v12 = vld [vmem:[%s10192_s4 + $0x38] sm:$0xff]   ;;  %v3322_v23 = vsub.s32 1, %v10595_v28 }
 0x3b2   :  { %v3192_v49 = vsel %vm3169_vm8, %v3152_v14, %v3023_v4  ;;  %4725 = vmatpush1.bf16.msra.mxu0 %v6682_v12 }
 0x3b3   :  { %3735 = vmatprep.mubr.bf16.mxu0 %v3192_v49  ;;  %4726 = vmatprep.subr.bf16.mxu0 %v10593_v11  ;;  %v6741_v49 = vld [vmem:[%s10190_s7] sm:$0x1f] }
 0x3b4   :  { %3736 = vmatmul.mubr.bf16.gmra.mxu0 %v3103_v22  ;;  %v9206_v22 = vrot.slane %v6741_v49, %v3322_v23 }
 0x3b6   :  { %4727 = vmatpush1.bf16.msra.mxu0 %v6683_v39  ;;  %10596 = vst [vmem:[#allocation9_spill] sm:$0xff] %v9206_v22 }
 0x3b7   :  { %4728 = vmatprep.subr.bf16.mxu0 %v10593_v11 }
 0x3ba   :  { %4729 = vmatpush1.bf16.msra.mxu0 %v6684_v45 }
 0x3bb   :  { %4730 = vmatprep.subr.bf16.mxu0 %v10593_v11 }
 0x3bc   :  { %v3055_v43 = vpop.permute.xlu1 %3054  ;;  %v3025_v34 = vpop.permute.xlu0 %3024 }
 0x3bd   :  { %v3241_v0 = vsel %vm3218_vm11, %v3023_v4, %v3055_v43  ;;  %5622 = vmatprep.mubr.msk.bf16.mxu1 %vm3593_vm10, %v3055_v43 }
 0x3be   :  { %3929 = vmatmul.mubr.bf16.gmra.mxu1 %v3241_v0 }
 0x3c0   :  { %v2993_v24 = vpop.permute.xlu1 %2992  ;;  %v2963_v38 = vpop.permute.xlu0 %2962 }
 0x3c1   :  { %v3154_v2 = vsel %vm2490_vm6, %v2961_v29, %v2993_v24  ;;  %v3111_v44 = vsel %vm3072_vm9, %v8987_v5, %v2963_v38 }
 0x3c2   :  { %v3195_v60 = vsel %vm3169_vm8, %v3154_v2, %v3025_v34 }
 0x3c3   :  { %3745 = vmatprep.mubr.bf16.mxu0 %v3195_v60 }
 0x3c4   :  { %3746 = vmatmul.mubr.bf16.gmra.mxu0 %v3107_v41 }
 0x3cc   :  { %v3027_v37 = vpop.permute.xlu0 %3026 }
 0x3cd   :  { %v3057_v9 = vpop.permute.xlu1 %3056 }
 0x3ce   :  { %v3244_v51 = vsel %vm3218_vm11, %v3025_v34, %v3057_v9  ;;  %5623 = vmatprep.mubr.msk.bf16.mxu1 %vm3593_vm10, %v3057_v9 }
 0x3cf   :  { %3939 = vmatmul.mubr.bf16.gmra.mxu1 %v3244_v51 }
 0x3d0   :  { %v2965_v56 = vpop.permute.xlu0 %2964 }
 0x3d1   :  { %v2995_v8 = vpop.permute.xlu1 %2994  ;;  %v3115_v16 = vsel %vm3072_vm9, %v9004_v18, %v2965_v56  ;;  %v6685_v18 = vld [vmem:[%s10192_s4 + $0x20] sm:$0xff]  }
 0x3d2   :  { %v3156_v32 = vsel %vm2490_vm6, %v2963_v38, %v2995_v8  ;;  %4731 = vmatpush1.bf16.msra.mxu0 %v6685_v18  ;;  %v6690_v38 = vld [vmem:[%s10192_s4 + $0x48] sm:$0xff]  }
 0x3d3   :  { %v3198_v59 = vsel %vm3169_vm8, %v3156_v32, %v3027_v37  ;;  %4732 = vmatprep.subr.bf16.mxu0 %v10593_v11 }
 0x3d4   :  { %3755 = vmatprep.mubr.bf16.mxu0 %v3198_v59 }
 0x3d5   :  { %3756 = vmatmul.mubr.bf16.gmra.mxu0 %v3111_v44 }
 0x3d6   :  { %4733 = vmatpush1.bf16.msra.mxu0 %v6686_v40 }
 0x3d7   :  { %4734 = vmatprep.subr.bf16.mxu0 %v10593_v11 }
 0x3da   :  { %4735 = vmatpush1.bf16.msra.mxu0 %v6687_v27 }
 0x3db   :  { %4736 = vmatprep.subr.bf16.mxu0 %v10593_v11 }
 0x3dc   :  { %v3059_v42 = vpop.permute.xlu1 %3058  ;;  %v9151_v54 = vpop.permute.xlu0 %3028 }
 0x3dd   :  { %v3247_v25 = vsel %vm3218_vm11, %v3027_v37, %v3059_v42  ;;  %5624 = vmatprep.mubr.msk.bf16.mxu1 %vm3593_vm10, %v3059_v42  ;;  %10594 = vst [vmem:[#allocation11_spill] sm:$0xff] %v9151_v54 }
 0x3de   :  { %3949 = vmatmul.mubr.bf16.gmra.mxu1 %v3247_v25  ;;  %4737 = vmatpush1.bf16.msra.mxu0 %v6688_v62  ;;  %v6742_v25 = vld [vmem:[%s10190_s7 + $0x8] sm:$0x1f] }
 0x3df   :  { %4738 = vmatprep.subr.bf16.mxu0 %v10593_v11 }
 0x3e1   :  { %v2997_v1 = vpop.permute.xlu1 %2996 }
 0x3e2   :  { %v3158_v5 = vsel %vm2490_vm6, %v2965_v56, %v2997_v1  ;;  %4739 = vmatpush1.bf16.msra.mxu0 %v6689_v52  ;;  %v9227_v56 = vrot.slane %v6742_v25, %v3322_v23 }
 0x3e3   :  { %v3201_v15 = vsel %vm3169_vm8, %v3158_v5, %v9151_v54  ;;  %4752 = vmatprep.subr.bf16.mxu0 %v10593_v11 }
 0x3e4   :  { %3765 = vmatprep.mubr.bf16.mxu0 %v3201_v15 }
 0x3e5   :  { %3766 = vmatmul.mubr.bf16.gmra.mxu0 %v3115_v16 }
 0x3e6   :  { %4753 = vmatpush2.bf16.msra.mxu0 %v6690_v38 }
 0x3e7   :  { %4754 = vmatprep.subr.bf16.mxu0 %v10593_v11 }
 0x3ed   :  { %v2849_v46 = vpop.f32.mrf.mxu1 }
 0x3ef   :  { %v2851_v30 = vpop.f32.mrf.mxu1 }
 0x3f1   :  { %v2852_v33 = vpop.f32.mrf.mxu1 }
 0x3f3   :  { %v2854_v7 = vpop.f32.mrf.mxu1 }
 0x40d   :  { %v2857_v55 = vpop.f32.mrf.mxu1 }
 0x40e   :  { %v2908_v57 = vmax.f32 %v2849_v46, %v2857_v55 }
 0x40f   :  { %v2859_v50 = vpop.f32.mrf.mxu1 }
 0x411   :  { %v2860_v17 = vpop.f32.mrf.mxu1 }
 0x412   :  { %v2909_v3 = vmax.f32 %v2852_v33, %v2860_v17 }
 0x413   :  { %v2862_v20 = vpop.f32.mrf.mxu1 }
 0x414   :  { %v9177_v58 = vpack.c.bf16 %v2909_v3, %v2908_v57 }
 0x416   :  { %3030 = vrot.lane.b32.xlu1 %v9177_v58, %s6751_s2 }
 0x41a   :  { %3000 = vrot.lane.b32.xlu1 %v9177_v58, %s6752_s17 }
 0x41e   :  { %v2865_v48 = vpop.f32.mrf.mxu1  ;;  %2970 = vrot.lane.b32.xlu1 %v9177_v58, %s6750_s3 }
 0x420   :  { %v2867_v35 = vpop.f32.mrf.mxu1 }
 0x422   :  { %v2868_v61 = vpop.f32.mrf.mxu1  ;;  %3034 = vrot.lane.b32.xlu1 %v8702_v19, %s6751_s2 }
 0x424   :  { %v2870_v63 = vpop.f32.mrf.mxu1 }
 0x426   :  { %3004 = vrot.lane.b32.xlu1 %v8702_v19, %s6752_s17 }
 0x42a   :  { %2974 = vrot.lane.b32.xlu1 %v8702_v19, %s6750_s3 }
 0x42e   :  { %3038 = vrot.lane.b32.xlu1 %v8762_v31, %s6751_s2 }
 0x42f   :  { %v2873_v13 = vpop.f32.mrf.mxu1 }
 0x430   :  { %v3667_v53 = vpop.f32.mrf.mxu0  ;;  %v2910_v43 = vmax.f32 %v2865_v48, %v2873_v13 }
 0x431   :  { %v2875_v26 = vpop.f32.mrf.mxu1  ;;  %v3668_v41 = vadd.f32 %v3667_v53, %v9206_v22 }
 0x432   :  { %v3669_v4 = vpop.f32.mrf.mxu0 }
 0x433   :  { %v2876_v14 = vpop.f32.mrf.mxu1  ;;  %v3670_v33 = vadd.f32 %v3669_v4, %v9227_v56 }
 0x434   :  { %v2911_v29 = vmax.f32 %v2868_v61, %v2876_v14  ;;  %v3671_v0 = vpop.f32.mrf.mxu0  ;;  %v6691_v14 = vld [vmem:[%s10192_s4 + $0x40] sm:$0xff]  }
 0x435   :  { %v2878_v24 = vpop.f32.mrf.mxu1  ;;  %v3672_v8 = vadd.f32 %v3671_v0, %v9206_v22  ;;  %4755 = vmatpush2.bf16.msra.mxu0 %v6691_v14 }
 0x436   :  { %v9208_v34 = vpack.c.bf16 %v2911_v29, %v2910_v43  ;;  %v3673_v2 = vpop.f32.mrf.mxu0 }
 0x437   :  { %v3860_v60 = vpop.f32.mrf.mxu1  ;;  %v3674_v16 = vadd.f32 %v3673_v2, %v9227_v56 }
 0x438   :  { %v3677_v9 = vpop.f32.mrf.mxu0  ;;  %3032 = vrot.lane.b32.xlu0 %v9208_v34, %s6751_s2  ;;  %v9217_v37 = vadd.f32 %v3860_v60, %v3668_v41 }
 0x439   :  { %v3862_v51 = vpop.f32.mrf.mxu1  ;;  %v3678_v48 = vadd.f32 %v3677_v9, %v9206_v22 }
 0x43a   :  { %v3679_v32 = vpop.f32.mrf.mxu0  ;;  %v10374_v1 = vmax.f32 %v9217_v37, 0.0  ;;  %v9243_v50 = vadd.f32 %v3862_v51, %v3670_v33 }
 0x43b   :  { %v3864_v59 = vpop.f32.mrf.mxu1  ;;  %v3680_v7 = vadd.f32 %v3679_v32, %v9227_v56 }
 0x43c   :  { %v3681_v44 = vpop.f32.mrf.mxu0  ;;  %v9220_v12 = vadd.f32 %v3864_v59, %v3672_v8  ;;  %3002 = vrot.lane.b32.xlu0 %v9208_v34, %s6752_s17  ;;  %v10381_v13 = vmax.f32 %v9243_v50, 0.0 }
 0x43d   :  { %v3866_v42 = vpop.f32.mrf.mxu1  ;;  %v3682_v17 = vadd.f32 %v3681_v44, %v9206_v22 }
 0x43e   :  { %v10379_v5 = vmax.f32 %v9220_v12, 0.0  ;;  %v3683_v39 = vpop.f32.mrf.mxu0  ;;  %v9240_v18 = vadd.f32 %v3866_v42, %v3674_v16 }
 0x43f   :  { %v3870_v15 = vpop.f32.mrf.mxu1  ;;  %v3684_v57 = vadd.f32 %v3683_v39, %v9227_v56 }
 0x440   :  { %v6289_v45 = vpack.i.bf16 %v10379_v5, %v10374_v1  ;;  %v3687_v46 = vpop.f32.mrf.mxu0  ;;  %2972 = vrot.lane.b32.xlu0 %v9208_v34, %s6750_s3  ;;  %v10380_v35 = vmax.f32 %v9240_v18, 0.0  ;;  %v9258_v23 = vadd.f32 %v3870_v15, %v3678_v48 }
 0x441   :  { %v3872_v30 = vpop.f32.mrf.mxu1  ;;  %v3688_v49 = vadd.f32 %v3687_v46, %v9206_v22 }
 0x442   :  { %v3689_v40 = vpop.f32.mrf.mxu0  ;;  %6290 = vrot.lane.b32.xlu1 %v6289_v45, %s6754_s23  ;;  %v9247_v3 = vadd.f32 %v3872_v30, %v3680_v7  ;;  %v6294_v29 = vpack.i.bf16 %v10380_v35, %v10381_v13  ;;  %v10371_v9 = vmax.f32 %v9258_v23, 0.0 }
 0x443   :  { %v3874_v55 = vpop.f32.mrf.mxu1  ;;  %v3690_v44 = vadd.f32 %v3689_v40, %v9227_v56 }
 0x444   :  { %v3691_v20 = vpop.f32.mrf.mxu0  ;;  %3036 = vrot.lane.b32.xlu0 %v8724_v6, %s6751_s2  ;;  %v9253_v62 = vadd.f32 %v3874_v55, %v3682_v17  ;;  %v10373_v53 = vmax.f32 %v9247_v3, 0.0 }
 0x445   :  { %v3876_v27 = vpop.f32.mrf.mxu1  ;;  %v3692_v0 = vadd.f32 %v3691_v20, %v9206_v22 }
 0x446   :  { %v3693_v61 = vpop.f32.mrf.mxu0  ;;  %v9255_v63 = vadd.f32 %v3876_v27, %v3684_v57  ;;  %v10370_v24 = vmax.f32 %v9253_v62, 0.0 }
 0x447   :  { %v3880_v52 = vpop.f32.mrf.mxu1  ;;  %v3694_v38 = vadd.f32 %v3693_v61, %v9227_v56 }
 0x448   :  { %v10372_v26 = vmax.f32 %v9255_v63, 0.0  ;;  %v3697_v4 = vpop.f32.mrf.mxu0  ;;  %3006 = vrot.lane.b32.xlu0 %v8724_v6, %s6752_s17  ;;  %v9280_v51 = vadd.f32 %v3880_v52, %v3688_v49  ;;  %v6314_v42 = vpack.i.bf16 %v10370_v24, %v10371_v9 }
 0x449   :  { %v3882_v43 = vpop.f32.mrf.mxu1  ;;  %v3698_v49 = vadd.f32 %v3697_v4, %v9206_v22 }
 0x44a   :  { %v6309_v2 = vpack.i.bf16 %v10372_v26, %v10373_v53  ;;  %v3699_v60 = vpop.f32.mrf.mxu0  ;;  %v10363_v46 = vmax.f32 %v9280_v51, 0.0  ;;  %v9295_v30 = vadd.f32 %v3882_v43, %v3690_v44 }
 0x44b   :  { %v3884_v41 = vpop.f32.mrf.mxu1  ;;  %v3700_v40 = vadd.f32 %v3699_v60, %v9227_v56 }
 0x44c   :  { %v3701_v8 = vpop.f32.mrf.mxu0  ;;  %v9282_v32 = vadd.f32 %v3884_v41, %v3692_v0  ;;  %6295 = vrot.lane.b32.xlu0 %v6294_v29, %s6749_s18  ;;  %6310 = vrot.lane.b32.xlu1 %v6309_v2, %s6749_s18  ;;  %v10365_v27 = vmax.f32 %v9295_v30, 0.0 }
 0x44d   :  { %v3886_v59 = vpop.f32.mrf.mxu1  ;;  %v3702_v48 = vadd.f32 %v3701_v8, %v9206_v22 }
 0x44e   :  { %v10356_v25 = vmax.f32 %v9282_v32, 0.0  ;;  %v3703_v39 = vpop.f32.mrf.mxu0  ;;  %v9292_v15 = vadd.f32 %v3886_v59, %v3694_v38 }
 0x44f   :  { %v3890_v16 = vpop.f32.mrf.mxu1 }
 0x450   :  { %v3707_v33 = vpop.f32.mrf.mxu0  ;;  %6300 = vrot.lane.b32.xlu0 %v6289_v45, %s6749_s18  ;;  %6315 = vrot.lane.b32.xlu1 %v6314_v42, %s6749_s18  ;;  %v6319_v55 = vpack.i.bf16 %v10356_v25, %v10363_v46  ;;  %v10364_v17 = vmax.f32 %v9292_v15, 0.0  ;;  %v3704_v45 = vadd.f32 %v3703_v39, %v9227_v56  ;;  %v9321_v41 = vadd.f32 %v3890_v16, %v3698_v49 }
 0x451   :  { %v3892_v7 = vpop.f32.mrf.mxu1  ;;  %v3708_v4 = vadd.f32 %v3707_v33, %v9206_v22 }
 0x452   :  { %v3709_v57 = vpop.f32.mrf.mxu0  ;;  %v9308_v61 = vadd.f32 %v3892_v7, %v3700_v40  ;;  %v6324_v43 = vpack.i.bf16 %v10364_v17, %v10365_v27 }
 0x453   :  { %v3894_v20 = vpop.f32.mrf.mxu1 }
 0x454   :  { %v3711_v52 = vpop.f32.mrf.mxu0  ;;  %6305 = vrot.lane.b32.xlu0 %v6314_v42, %s6754_s23  ;;  %6320 = vrot.lane.b32.xlu1 %v6319_v55, %s6754_s23  ;;  %v9317_v29 = vadd.f32 %v3894_v20, %v3702_v48  ;;  %v10353_v38 = vmax.f32 %v9308_v61, 0.0  ;;  %v3710_v42 = vadd.f32 %v3709_v57, %v9227_v56 }
 0x455   :  { %v3896_v14 = vpop.f32.mrf.mxu1  ;;  %v3712_v39 = vadd.f32 %v3711_v52, %v9206_v22 }
 0x456   :  { %v3713_v0 = vpop.f32.mrf.mxu0  ;;  %v9319_v2 = vadd.f32 %v3896_v14, %v3704_v45  ;;  %v10351_v7 = vmax.f32 %v9317_v29, 0.0  ;;  %v10352_v45 = vmax.f32 %v9321_v41, 0.0 }
 0x457   :  { %v3900_v60 = vpop.f32.mrf.mxu1  ;;  %v3714_v20 = vadd.f32 %v3713_v0, %v9227_v56 }
 0x458   :  { %v10350_v8 = vmax.f32 %v9319_v2, 0.0  ;;  %v3717_v59 = vpop.f32.mrf.mxu0  ;;  %6325 = vrot.lane.b32.xlu0 %v6324_v43, %s6749_s18  ;;  %v9336_v14 = vadd.f32 %v3900_v60, %v3708_v4  ;;  %v6344_v43 = vpack.i.bf16 %v10351_v7, %v10352_v45 }
 0x459   :  { %v3902_v44 = vpop.f32.mrf.mxu1 }
 0x45a   :  { %v6339_v16 = vpack.i.bf16 %v10350_v8, %v10353_v38  ;;  %v3719_v40 = vpop.f32.mrf.mxu0  ;;  %v9338_v33 = vadd.f32 %v3902_v44, %v3710_v42  ;;  %v10355_v4 = vmax.f32 %v9336_v14, 0.0 }
 0x45b   :  { %v3904_v48 = vpop.f32.mrf.mxu1 }
 0x45c   :  { %v3721_v57 = vpop.f32.mrf.mxu0  ;;  %v9340_v49 = vadd.f32 %v3904_v48, %v3712_v39  ;;  %6330 = vrot.lane.b32.xlu0 %v6319_v55, %s6749_s18  ;;  %6340 = vrot.lane.b32.xlu1 %v6339_v16, %s6749_s18  ;;  %v10357_v44 = vmax.f32 %v9338_v33, 0.0  ;;  %v3718_v39 = vadd.f32 %v3717_v59, %v9206_v22  ;;  %v3720_v48 = vadd.f32 %v3719_v40, %v9227_v56 }
 0x45d   :  { %v3906_v52 = vpop.f32.mrf.mxu1 }
 0x45e   :  { %v10354_v0 = vmax.f32 %v9340_v49, 0.0  ;;  %v9349_v8 = vadd.f32 %v3906_v52, %v3714_v20  ;;  %v3723_v42 = vpop.f32.mrf.mxu0  ;;  %v3722_v20 = vadd.f32 %v3721_v57, %v9206_v22 }
 0x45f   :  { %v3910_v60 = vpop.f32.mrf.mxu1  ;;  %v3724_v45 = vadd.f32 %v3723_v42, %v9227_v56 }
 0x460   :  { %v10360_v55 = vmax.f32 %v9349_v8, 0.0  ;;  %6335 = vrot.lane.b32.xlu0 %v6344_v43, %s6754_s23  ;;  %6345 = vrot.lane.b32.xlu1 %v6344_v43, %s6749_s18  ;;  %v6349_v52 = vpack.i.bf16 %v10354_v0, %v10355_v4  ;;  %v9368_v38 = vadd.f32 %v3910_v60, %v3718_v39 }
 0x461   :  { %v3912_v16 = vpop.f32.mrf.mxu1 }
 0x462   :  { %v6354_v7 = vpack.i.bf16 %v10360_v55, %v10357_v44  ;;  %v9370_v59 = vadd.f32 %v3912_v16, %v3720_v48  ;;  %v10359_v44 = vmax.f32 %v9368_v38, 0.0 }
 0x463   :  { %v3914_v43 = vpop.f32.mrf.mxu1 }
 0x464   :  { %v9372_v40 = vadd.f32 %v3914_v43, %v3722_v20  ;;  %6355 = vrot.lane.b32.xlu0 %v6354_v7, %s6749_s18  ;;  %6350 = vrot.lane.b32.xlu1 %v6349_v52, %s6754_s23  ;;  %v3727_v57 = vpop.f32.mrf.mxu0  ;;  %v10361_v42 = vmax.f32 %v9370_v59, 0.0 }
 0x465   :  { %v3916_v0 = vpop.f32.mrf.mxu1  ;;  %v3728_v48 = vadd.f32 %v3727_v57, %v9206_v22 }
 0x466   :  { %v10358_v4 = vmax.f32 %v9372_v40, 0.0  ;;  %v9377_v25 = vadd.f32 %v3916_v0, %v3724_v45  ;;  %v3729_v39 = vpop.f32.mrf.mxu0 }
 0x467   :  { %v3730_v43 = vadd.f32 %v3729_v39, %v9227_v56 }
 0x468   :  { %v10362_v60 = vmax.f32 %v9377_v25, 0.0  ;;  %6360 = vrot.lane.b32.xlu0 %v6349_v52, %s6749_s18  ;;  %v6364_v7 = vpack.i.bf16 %v10358_v4, %v10359_v44  ;;  %v3731_v0 = vpop.f32.mrf.mxu0 }
 0x469   :  { %v3732_v4 = vadd.f32 %v3731_v0, %v9206_v22 }
 0x46a   :  { %v6369_v45 = vpack.i.bf16 %v10362_v60, %v10361_v42  ;;  %v3733_v20 = vpop.f32.mrf.mxu0 }
 0x46b   :  { %v3734_v42 = vadd.f32 %v3733_v20, %v9227_v56 }
 0x46c   :  { %6365 = vrot.lane.b32.xlu0 %v6364_v7, %s6754_s23  ;;  %6370 = vrot.lane.b32.xlu1 %v6369_v45, %s6749_s18 }
 0x46e   :  { %v3920_v16 = vpop.f32.mrf.mxu1 }
 0x46f   :  { %v9397_v44 = vadd.f32 %v3920_v16, %v3728_v48 }
 0x470   :  { %v3922_v52 = vpop.f32.mrf.mxu1  ;;  %6375 = vrot.lane.b32.xlu1 %v6364_v7, %s6749_s18 }
 0x471   :  { %v9400_v60 = vadd.f32 %v3922_v52, %v3730_v43  ;;  %v10367_v57 = vmax.f32 %v9397_v44, 0.0 }
 0x472   :  { %v3924_v55 = vpop.f32.mrf.mxu1 }
 0x473   :  { %v9402_v46 = vadd.f32 %v3924_v55, %v3732_v4  ;;  %v10369_v39 = vmax.f32 %v9400_v60, 0.0 }
 0x474   :  { %v3926_v45 = vpop.f32.mrf.mxu1  ;;  %v3737_v27 = vpop.f32.mrf.mxu0 }
 0x475   :  { %v10366_v17 = vmax.f32 %v9402_v46, 0.0  ;;  %v9406_v7 = vadd.f32 %v3926_v45, %v3734_v42  ;;  %v3738_v20 = vadd.f32 %v3737_v27, %v9206_v22 }
 0x476   :  { %v3739_v55 = vpop.f32.mrf.mxu0 }
 0x477   :  { %v6379_v0 = vpack.i.bf16 %v10366_v17, %v10367_v57  ;;  %v10368_v16 = vmax.f32 %v9406_v7, 0.0  ;;  %v3740_v45 = vadd.f32 %v3739_v55, %v9227_v56  ;;  %v2999_v55 = vpop.permute.xlu0 %2998 }
 0x478   :  { %v3741_v42 = vpop.f32.mrf.mxu0 }
 0x479   :  { %v6384_v4 = vpack.i.bf16 %v10368_v16, %v10369_v39  ;;  %6380 = vrot.lane.b32.xlu1 %v6379_v0, %s6754_s23  ;;  %v3742_v17 = vadd.f32 %v3741_v42, %v9206_v22  ;;  %v2967_v39 = vpop.permute.xlu1 %2966 }
 0x47a   :  { %v3743_v52 = vpop.f32.mrf.mxu0 }
 0x47b   :  { %6385 = vrot.lane.b32.xlu0 %v6384_v4, %s6749_s18  ;;  %v3744_v24 = vadd.f32 %v3743_v52, %v9227_v56 }
 0x47e   :  { %v3930_v48 = vpop.f32.mrf.mxu1 }
 0x47f   :  { %6390 = vrot.lane.b32.xlu0 %v6379_v0, %s6749_s18  ;;  %v9424_v57 = vadd.f32 %v3930_v48, %v3738_v20 }
 0x480   :  { %v3932_v43 = vpop.f32.mrf.mxu1 }
 0x481   :  { %v9427_v9 = vadd.f32 %v3932_v43, %v3740_v45  ;;  %v10376_v27 = vmax.f32 %v9424_v57, 0.0  ;;  %v3119_v45 = vsel %vm3072_vm9, %v9020_v10, %v2967_v39 }
 0x482   :  { %v3934_v16 = vpop.f32.mrf.mxu1 }
 0x483   :  { %v9429_v4 = vadd.f32 %v3934_v16, %v3742_v17  ;;  %v10377_v42 = vmax.f32 %v9427_v9, 0.0  ;;  %v3160_v17 = vsel %vm2490_vm6, %v2967_v39, %v2999_v55 }
 0x484   :  { %v3747_v26 = vpop.f32.mrf.mxu0  ;;  %v3936_v0 = vpop.f32.mrf.mxu1 }
 0x485   :  { %v10375_v53 = vmax.f32 %v9429_v4, 0.0  ;;  %v9433_v1 = vadd.f32 %v3936_v0, %v3744_v24 }
 0x486   :  { %v3749_v16 = vpop.f32.mrf.mxu0 }
 0x487   :  { %v6394_v48 = vpack.i.bf16 %v10375_v53, %v10376_v27  ;;  %v10378_v20 = vmax.f32 %v9433_v1, 0.0  ;;  %v3748_v53 = vadd.f32 %v3747_v26, %v9206_v22 }
 0x488   :  { %v9442_v52 = vpop.permute.xlu1 %3030  ;;  %v3751_v0 = vpop.f32.mrf.mxu0 }
 0x489   :  { %10597 = vst [vmem:[#allocation10_spill] sm:$0xff] %v9442_v52  ;;  %v6399_v24 = vpack.i.bf16 %v10378_v20, %v10377_v42  ;;  %6395 = vrot.lane.b32.xlu0 %v6394_v48, %s6754_s23  ;;  %v3204_v43 = vsel %vm3169_vm8, %v3160_v17, %v9442_v52  ;;  %v3750_v20 = vadd.f32 %v3749_v16, %v9227_v56 }
 0x48a   :  { %3775 = vmatprep.mubr.bf16.mxu0 %v3204_v43  ;;  %v3753_v27 = vpop.f32.mrf.mxu0  ;;  %v3752_v5 = vadd.f32 %v3751_v0, %v9206_v22 }
 0x48b   :  { %6400 = vrot.lane.b32.xlu1 %v6399_v24, %s6749_s18  ;;  %3776 = vmatmul.mubr.bf16.gmra.mxu0 %v3119_v45  ;;  %v3754_v10 = vadd.f32 %v3753_v27, %v9227_v56 }
 0x48c   :  { %v3001_v16 = vpop.permute.xlu1 %3000 }
 0x48f   :  { %v3940_v55 = vpop.f32.mrf.mxu1  ;;  %6405 = vrot.lane.b32.xlu1 %v6394_v48, %s6749_s18 }
 0x490   :  { %v9458_v17 = vadd.f32 %v3940_v55, %v3748_v53 }
 0x491   :  { %v3942_v42 = vpop.f32.mrf.mxu1 }
 0x492   :  { %10598 = vst [vmem:[#allocation16_spill] sm:$0xff] %v9458_v17  ;;  %v9461_v39 = vadd.f32 %v3942_v42, %v3750_v20  ;;  %v10383_v26 = vmax.f32 %v9458_v17, 0.0  ;;  %v2971_v20 = vpop.permute.xlu1 %2970 }
 0x493   :  { %v3944_v35 = vpop.f32.mrf.mxu1 }
 0x494   :  { %v9463_v24 = vadd.f32 %v3944_v35, %v3752_v5  ;;  %v10386_v0 = vmax.f32 %v9461_v39, 0.0 }
 0x495   :  { %v3757_v43 = vpop.f32.mrf.mxu0  ;;  %v3946_v45 = vpop.f32.mrf.mxu1 }
 0x496   :  { %10599 = vst [vmem:[#allocation15_spill] sm:$0xff] %v9463_v24  ;;  %v10382_v48 = vmax.f32 %v9463_v24, 0.0  ;;  %v9467_v13 = vadd.f32 %v3946_v45, %v3754_v10  ;;  %v3758_v10 = vadd.f32 %v3757_v43, %v9206_v22  ;;  %v9492_v54 = vpop.permute.xlu1 %3034 }
 0x497   :  { %v3759_v5 = vpop.f32.mrf.mxu0 }
 0x498   :  { %v6409_v53 = vpack.i.bf16 %v10382_v48, %v10383_v26  ;;  %v10385_v27 = vmax.f32 %v9467_v13, 0.0  ;;  %v3760_v26 = vadd.f32 %v3759_v5, %v9227_v56  ;;  %v2969_v5 = vpop.permute.xlu0 %2968 }
 0x499   :  { %v3761_v42 = vpop.f32.mrf.mxu0 }
 0x49a   :  { %v6414_v35 = vpack.i.bf16 %v10385_v27, %v10386_v0  ;;  %6410 = vrot.lane.b32.xlu1 %v6409_v53, %s6754_s23  ;;  %v3762_v28 = vadd.f32 %v3761_v42, %v9206_v22 }
 0x49b   :  { %v3763_v45 = vpop.f32.mrf.mxu0 }
 0x49c   :  { %6415 = vrot.lane.b32.xlu0 %v6414_v35, %s6749_s18  ;;  %v3764_v0 = vadd.f32 %v3763_v45, %v9227_v56  ;;  %v3123_v45 = vsel %vm3072_vm9, %v9043_v21, %v2969_v5  ;;  %v3127_v21 = vsel %vm3072_vm9, %v9066_v36, %v2971_v20 }
 0x49e   :  { %v3950_v55 = vpop.f32.mrf.mxu1 }
 0x49f   :  { %v9485_v11 = vadd.f32 %v3950_v55, %v3758_v10 }
 0x4a0   :  { %6420 = vrot.lane.b32.xlu0 %v6409_v53, %s6749_s18  ;;  %v3952_v48 = vpop.f32.mrf.mxu1 }
 0x4a1   :  { %v9488_v52 = vadd.f32 %v3952_v48, %v3760_v26  ;;  %v10392_v24 = vmax.f32 %v9485_v11, 0.0 }
 0x4a2   :  { %v3954_v27 = vpop.f32.mrf.mxu1 }
 0x4a3   :  { %v9490_v35 = vadd.f32 %v3954_v27, %v3762_v28  ;;  %v10393_v42 = vmax.f32 %v9488_v52, 0.0  ;;  %v3005_v27 = vpop.permute.xlu1 %3004 }
 0x4a4   :  { %v3956_v43 = vpop.f32.mrf.mxu1 }
 0x4a5   :  { %v10391_v53 = vmax.f32 %v9490_v35, 0.0  ;;  %v9496_v17 = vadd.f32 %v3956_v43, %v3764_v0  ;;  %v3162_v0 = vsel %vm2490_vm6, %v2969_v5, %v3001_v16 }
 0x4a7   :  { %v6424_v26 = vpack.i.bf16 %v10391_v53, %v10392_v24  ;;  %v10394_v28 = vmax.f32 %v9496_v17, 0.0  ;;  %v2975_v16 = vpop.permute.xlu1 %2974 }
 0x4a9   :  { %v6429_v48 = vpack.i.bf16 %v10394_v28, %v10393_v42  ;;  %6425 = vrot.lane.b32.xlu0 %v6424_v26, %s6754_s23  ;;  %v3135_v28 = vsel %vm3072_vm9, %v9208_v34, %v2975_v16 }
 0x4aa   :  { %v9510_v55 = vpop.permute.xlu0 %3032 }
 0x4ab   :  { %6430 = vrot.lane.b32.xlu1 %v6429_v48, %s6749_s18  ;;  %v3207_v10 = vsel %vm3169_vm8, %v3162_v0, %v9510_v55  ;;  %v9531_v5 = vpop.permute.xlu1 %3038 }
 0x4ac   :  { %3785 = vmatprep.mubr.bf16.mxu0 %v3207_v10 }
 0x4ad   :  { %3786 = vmatmul.mubr.bf16.gmra.mxu0 %v3123_v45  ;;  %3060 = vrot.lane.b32.xlu0 %v9177_v58, %s6753_s19 }
 0x4ae   :  { %v3003_v43 = vpop.permute.xlu0 %3002 }
 0x4af   :  { %v3164_v53 = vsel %vm2490_vm6, %v2971_v20, %v3003_v43  ;;  %6435 = vrot.lane.b32.xlu1 %v6424_v26, %s6749_s18 }
 0x4b0   :  { %v3210_v48 = vsel %vm3169_vm8, %v3164_v53, %v9492_v54 }
 0x4b1   :  { %3795 = vmatprep.mubr.bf16.mxu0 %v3210_v48  ;;  %3064 = vrot.lane.b32.xlu0 %v8702_v19, %s6753_s19 }
 0x4b2   :  { %v2973_v0 = vpop.permute.xlu0 %2972 }
 0x4b3   :  { %3062 = vrot.lane.b32.xlu1 %v9208_v34, %s6753_s19  ;;  %v3166_v26 = vsel %vm2490_vm6, %v2973_v0, %v3005_v27 }
 0x4b4   :  { %v6291_v10 = vpop.permute.xlu1 %6290 }
 0x4b5   :  { %3796 = vmatmul.mubr.bf16.gmra.mxu0 %v3127_v21  ;;  %3068 = vrot.lane.b32.xlu0 %v8762_v31, %s6753_s19  ;;  %v3131_v31 = vsel %vm3072_vm9, %v9177_v58, %v2973_v0  ;;  %v6293_v43 = vunpack.i.h.bf16 %v6291_v10  ;;  %v6292_v48 = vunpack.i.l.bf16 %v6291_v10  ;;  %v10601_v58 = vmax.f32 %v9240_v18, 0.0 }
 0x4b6   :  { %v9534_v53 = vpop.permute.xlu0 %3036  ;;  %v10602_v18 = vmax.f32 %v9220_v12, 0.0  ;;  %v10605_v12 = vmax.f32 %v9255_v63, 0.0 }
 0x4b7   :  { %3066 = vrot.lane.b32.xlu1 %v8724_v6, %s6753_s19  ;;  %v3213_v19 = vsel %vm3169_vm8, %v3166_v26, %v9534_v53 }
 0x4b8   :  { %3805 = vmatprep.mubr.bf16.mxu0 %v3213_v19 }
 0x4ba   :  { %v3007_v45 = vpop.permute.xlu0 %3006 }
 0x4bb   :  { %v3168_v36 = vsel %vm2490_vm6, %v2975_v16, %v3007_v45  ;;  %3070 = vrot.lane.b32.xlu1 %v8914_v47, %s6753_s19  ;;  %v10600_v47 = vmax.f32 %v9243_v50, 0.0 }
 0x4bc   :  { %v3216_v20 = vsel %vm3169_vm8, %v3168_v36, %v9531_v5 }
 0x4bd   :  { %3806 = vmatmul.mubr.bf16.gmra.mxu0 %v3131_v31 }
 0x4be   :  { %3815 = vmatprep.mubr.bf16.mxu0 %v3216_v20  ;;  %v6296_v6 = vpop.permute.xlu0 %6295  ;;  %v6311_v27 = vpop.permute.xlu1 %6310 }
 0x4bf   :  { %v6298_v21 = vunpack.i.h.bf16 %v6296_v6  ;;  %v6297_v26 = vunpack.i.l.bf16 %v6296_v6  ;;  %v6312_v50 = vunpack.i.l.bf16 %v6311_v27 }
 0x4c1   :  { %v4468_v19 = vsel %vm4467_vm12, %v6297_v26, %v6292_v48  ;;  %v4469_v45 = vsel %vm4467_vm12, %v6298_v21, %v6293_v43  ;;  %v6313_v43 = vunpack.i.h.bf16 %v6311_v27 }
 0x4c2   :  { %v4501_v24 = vmax.f32 %v10600_v47, %v4468_v19  ;;  %v4503_v0 = vmax.f32 %v10601_v58, %v4469_v45  ;;  %v6301_v36 = vpop.permute.xlu0 %6300  ;;  %v6316_v31 = vpop.permute.xlu1 %6315  ;;  %v10603_v58 = vmax.f32 %v9217_v37, 0.0 }
 0x4c3   :  { %v6303_v20 = vunpack.i.h.bf16 %v6301_v36  ;;  %v6302_v42 = vunpack.i.l.bf16 %v6301_v36  ;;  %v6317_v22 = vunpack.i.l.bf16 %v6316_v31  ;;  %v6318_v19 = vunpack.i.h.bf16 %v6316_v31 }
 0x4c4   :  { %v4565_v10 = vpack.c.bf16 %v4503_v0, %v4501_v24 }
 0x4c5   :  { %v4276_v6 = vsel %vm1764_vm5, %v6303_v20, %v6298_v21  ;;  %v4275_v48 = vsel %vm1764_vm5, %v6302_v42, %v6297_v26  ;;  %3816 = vmatmul.mubr.bf16.gmra.mxu0 %v3135_v28  ;;  %v4277_v21 = vsel %vm1764_vm5, %v6317_v22, %v6312_v50  ;;  %v4278_v27 = vsel %vm1764_vm5, %v6318_v19, %v6313_v43 }
 0x4c6   :  { %v6306_v47 = vpop.permute.xlu0 %6305  ;;  %5641 = vmatprep.mubr.msk.bf16.mxu0 %vm448_vm0, %v4565_v10  ;;  %v4502_v45 = vmax.f32 %v10602_v18, %v4276_v6  ;;  %v4500_v36 = vmax.f32 %v10603_v58, %v4275_v48  ;;  %v6321_v16 = vpop.permute.xlu1 %6320  ;;  %v10604_v26 = vmax.f32 %v9247_v3, 0.0  ;;  %v10607_v3 = vmax.f32 %v9253_v62, 0.0 }
 0x4c7   :  { %v6308_v34 = vunpack.i.h.bf16 %v6306_v47  ;;  %v6307_v24 = vunpack.i.l.bf16 %v6306_v47  ;;  %v6323_v20 = vunpack.i.h.bf16 %v6321_v16  ;;  %v6322_v6 = vunpack.i.l.bf16 %v6321_v16 }
 0x4c8   :  { %v4564_v10 = vpack.c.bf16 %v4502_v45, %v4500_v36  ;;  %v4506_v58 = vmax.f32 %v10607_v3, %v4278_v27  ;;  %v10608_v45 = vmax.f32 %v9295_v30, 0.0 }
 0x4c9   :  { %v4470_v42 = vsel %vm4467_vm12, %v6312_v50, %v6307_v24  ;;  %v4471_v28 = vsel %vm4467_vm12, %v6313_v43, %v6308_v34  ;;  %v10606_v43 = vmax.f32 %v9258_v23, 0.0  ;;  %v10609_v24 = vmax.f32 %v9292_v15, 0.0 }
 0x4ca   :  { %v4505_v0 = vmax.f32 %v10604_v26, %v4470_v42  ;;  %v4507_v31 = vmax.f32 %v10605_v12, %v4471_v28  ;;  %v6326_v37 = vpop.permute.xlu0 %6325 }
 0x4cb   :  { %v6328_v48 = vunpack.i.h.bf16 %v6326_v37  ;;  %v6327_v47 = vunpack.i.l.bf16 %v6326_v37  ;;  %v4504_v19 = vmax.f32 %v10606_v43, %v4277_v21 }
 0x4cc   :  { %v4567_v18 = vpack.c.bf16 %v4507_v31, %v4505_v0 }
 0x4cd   :  { %v4472_v22 = vsel %vm4467_vm12, %v6327_v47, %v6322_v6  ;;  %v4473_v50 = vsel %vm4467_vm12, %v6328_v48, %v6323_v20  ;;  %4757 = vmatmul.mubr.bf16.vlgmr.msra.gmra.mxu0 %v4564_v10  ;;  %v4566_v12 = vpack.c.bf16 %v4506_v58, %v4504_v19 }
 0x4ce   :  { %v6331_v63 = vpop.permute.xlu0 %6330  ;;  %v6341_v34 = vpop.permute.xlu1 %6340  ;;  %5642 = vmatprep.mubr.msk.bf16.mxu0 %vm448_vm0, %v4567_v18  ;;  %v4509_v36 = vmax.f32 %v10608_v45, %v4472_v22  ;;  %v4511_v16 = vmax.f32 %v10609_v24, %v4473_v50  ;;  %v10610_v18 = vmax.f32 %v9280_v51, 0.0  ;;  %v10611_v50 = vmax.f32 %v9282_v32, 0.0 }
 0x4cf   :  { %v6333_v42 = vunpack.i.h.bf16 %v6331_v63  ;;  %v6332_v28 = vunpack.i.l.bf16 %v6331_v63  ;;  %v6343_v23 = vunpack.i.h.bf16 %v6341_v34  ;;  %v6342_v21 = vunpack.i.l.bf16 %v6341_v34 }
 0x4d0   :  { %v4569_v37 = vpack.c.bf16 %v4511_v16, %v4509_v36 }
 0x4d1   :  { %v4279_v27 = vsel %vm1764_vm5, %v6332_v28, %v6327_v47  ;;  %v4280_v20 = vsel %vm1764_vm5, %v6333_v42, %v6328_v48  ;;  %v10612_v47 = vmax.f32 %v9308_v61, 0.0  ;;  %v10613_v48 = vmax.f32 %v9319_v2, 0.0 }
 0x4d2   :  { %v6336_v26 = vpop.permute.xlu0 %6335  ;;  %v6346_v0 = vpop.permute.xlu1 %6345  ;;  %v4508_v22 = vmax.f32 %v10610_v18, %v4279_v27  ;;  %v4510_v43 = vmax.f32 %v10611_v50, %v4280_v20 }
 0x4d3   :  { %v6338_v31 = vunpack.i.h.bf16 %v6336_v26  ;;  %v6337_v62 = vunpack.i.l.bf16 %v6336_v26  ;;  %v6348_v58 = vunpack.i.h.bf16 %v6346_v0  ;;  %v6347_v63 = vunpack.i.l.bf16 %v6346_v0 }
 0x4d4   :  { %v4568_v42 = vpack.c.bf16 %v4510_v43, %v4508_v22  ;;  %v10614_v0 = vmax.f32 %v9321_v41, 0.0 }
 0x4d5   :  { %v4474_v30 = vsel %vm4467_vm12, %v6342_v21, %v6337_v62  ;;  %v4475_v10 = vsel %vm4467_vm12, %v6343_v23, %v6338_v31  ;;  %4765 = vmatmul.mubr.bf16.gmra.mxu0 %v4566_v12  ;;  %v4281_v51 = vsel %vm1764_vm5, %v6347_v63, %v6342_v21  ;;  %v4282_v28 = vsel %vm1764_vm5, %v6348_v58, %v6343_v23 }
 0x4d6   :  { %v6356_v15 = vpop.permute.xlu0 %6355  ;;  %v6351_v6 = vpop.permute.xlu1 %6350  ;;  %5643 = vmatprep.mubr.msk.bf16.mxu0 %vm448_vm0, %v4569_v37  ;;  %v4513_v19 = vmax.f32 %v10612_v47, %v4474_v30  ;;  %v4515_v3 = vmax.f32 %v10613_v48, %v4475_v10  ;;  %v4512_v31 = vmax.f32 %v10614_v0, %v4281_v51  ;;  %v10615_v62 = vmax.f32 %v9317_v29, 0.0 }
 0x4d7   :  { %v6358_v34 = vunpack.i.h.bf16 %v6356_v15  ;;  %v6357_v45 = vunpack.i.l.bf16 %v6356_v15  ;;  %v6353_v36 = vunpack.i.h.bf16 %v6351_v6  ;;  %v6352_v24 = vunpack.i.l.bf16 %v6351_v6 }
 0x4d8   :  { %v4571_v32 = vpack.c.bf16 %v4515_v3, %v4513_v19  ;;  %v4514_v27 = vmax.f32 %v10615_v62, %v4282_v28  ;;  %v10616_v21 = vmax.f32 %v9349_v8, 0.0  ;;  %v10617_v23 = vmax.f32 %v9338_v33, 0.0 }
 0x4d9   :  { %v4477_v26 = vsel %vm4467_vm12, %v6358_v34, %v6353_v36  ;;  %v4476_v61 = vsel %vm4467_vm12, %v6357_v45, %v6352_v24  ;;  %v10618_v33 = vmax.f32 %v9336_v14, 0.0  ;;  %v10619_v3 = vmax.f32 %v9340_v49, 0.0 }
 0x4da   :  { %v6361_v16 = vpop.permute.xlu0 %6360  ;;  %v4519_v20 = vmax.f32 %v10616_v21, %v4477_v26  ;;  %v4517_v37 = vmax.f32 %v10617_v23, %v4476_v61  ;;  %v4570_v50 = vpack.c.bf16 %v4514_v27, %v4512_v31  ;;  %v10620_v63 = vmax.f32 %v9377_v25, 0.0 }
 0x4db   :  { %v6363_v30 = vunpack.i.h.bf16 %v6361_v16  ;;  %v6362_v10 = vunpack.i.l.bf16 %v6361_v16  ;;  %v10622_v25 = vmax.f32 %v9368_v38, 0.0  ;;  %v10623_v0 = vmax.f32 %v9372_v40, 0.0 }
 0x4dc   :  { %v4573_v47 = vpack.c.bf16 %v4519_v20, %v4517_v37  ;;  %v10624_v21 = vmax.f32 %v9400_v60, 0.0  ;;  %v10625_v23 = vmax.f32 %v9406_v7, 0.0  ;;  %v10627_v60 = vmax.f32 %v9402_v46, 0.0 }
 0x4dd   :  { %4773 = vmatmul.mubr.bf16.gmra.mxu0 %v4568_v42  ;;  %v4283_v43 = vsel %vm1764_vm5, %v6362_v10, %v6357_v45  ;;  %v4284_v41 = vsel %vm1764_vm5, %v6363_v30, %v6358_v34  ;;  %v10621_v34 = vmax.f32 %v9370_v59, 0.0 }
 0x4de   :  { %v6366_v2 = vpop.permute.xlu0 %6365  ;;  %v6371_v12 = vpop.permute.xlu1 %6370  ;;  %5644 = vmatprep.mubr.msk.bf16.mxu0 %vm448_vm0, %v4571_v32  ;;  %v4516_v48 = vmax.f32 %v10618_v33, %v4283_v43  ;;  %v4518_v58 = vmax.f32 %v10619_v3, %v4284_v41 }
 0x4df   :  { %v6368_v15 = vunpack.i.h.bf16 %v6366_v2  ;;  %v6367_v6 = vunpack.i.l.bf16 %v6366_v2  ;;  %v6373_v18 = vunpack.i.h.bf16 %v6371_v12  ;;  %v6372_v22 = vunpack.i.l.bf16 %v6371_v12 }
 0x4e0   :  { %v4572_v51 = vpack.c.bf16 %v4518_v58, %v4516_v48  ;;  %v10628_v58 = vmax.f32 %v9433_v1, 0.0 }
 0x4e1   :  { %v4479_v29 = vsel %vm4467_vm12, %v6373_v18, %v6368_v15  ;;  %v4478_v8 = vsel %vm4467_vm12, %v6372_v22, %v6367_v6 }
 0x4e2   :  { %v6376_v19 = vpop.permute.xlu1 %6375  ;;  %v4523_v45 = vmax.f32 %v10620_v63, %v4479_v29  ;;  %v4521_v36 = vmax.f32 %v10621_v34, %v4478_v8 }
 0x4e3   :  { %v6378_v24 = vunpack.i.h.bf16 %v6376_v19  ;;  %v6377_v16 = vunpack.i.l.bf16 %v6376_v19 }
 0x4e4   :  { %v4575_v26 = vpack.c.bf16 %v4523_v45, %v4521_v36 }
 0x4e5   :  { %4781 = vmatmul.mubr.bf16.gmra.mxu0 %v4570_v50  ;;  %v4285_v28 = vsel %vm1764_vm5, %v6377_v16, %v6372_v22  ;;  %v4286_v32 = vsel %vm1764_vm5, %v6378_v24, %v6373_v18  ;;  %v10626_v22 = vmax.f32 %v9397_v44, 0.0  ;;  %v10629_v44 = vmax.f32 %v9427_v9, 0.0 }
 0x4e6   :  { %5645 = vmatprep.mubr.msk.bf16.mxu0 %vm448_vm0, %v4573_v47  ;;  %v4520_v59 = vmax.f32 %v10622_v25, %v4285_v28  ;;  %v4522_v31 = vmax.f32 %v10623_v0, %v4286_v32  ;;  %v10631_v32 = vmax.f32 %v9429_v4, 0.0  ;;  %v10633_v4 = vmax.f32 %v9467_v13, 0.0 }
 0x4e8   :  { %v4574_v6 = vpack.c.bf16 %v4522_v31, %v4520_v59 }
 0x4eb   :  { %v6381_v42 = vpop.permute.xlu1 %6380 }
 0x4ec   :  { %v6383_v61 = vunpack.i.h.bf16 %v6381_v42  ;;  %v6382_v49 = vunpack.i.l.bf16 %v6381_v42 }
 0x4ed   :  { %v6386_v14 = vpop.permute.xlu0 %6385  ;;  %4789 = vmatmul.mubr.bf16.gmra.mxu0 %v4572_v51  ;;  %v10630_v51 = vmax.f32 %v9424_v57, 0.0  ;;  %v10632_v57 = vmax.f32 %v9461_v39, 0.0 }
 0x4ee   :  { %v6388_v2 = vunpack.i.h.bf16 %v6386_v14  ;;  %v6387_v12 = vunpack.i.l.bf16 %v6386_v14  ;;  %5646 = vmatprep.mubr.msk.bf16.mxu0 %vm448_vm0, %v4575_v26 }
 0x4f0   :  { %v4480_v62 = vsel %vm4467_vm12, %v6387_v12, %v6382_v49  ;;  %v4481_v27 = vsel %vm4467_vm12, %v6388_v2, %v6383_v61 }
 0x4f1   :  { %v4525_v20 = vmax.f32 %v10624_v21, %v4480_v62  ;;  %v4527_v37 = vmax.f32 %v10625_v23, %v4481_v27  ;;  %v6391_v30 = vpop.permute.xlu0 %6390 }
 0x4f2   :  { %v6393_v10 = vunpack.i.h.bf16 %v6391_v30  ;;  %v6392_v15 = vunpack.i.l.bf16 %v6391_v30  ;;  %v10634_v30 = vld [vmem:[#allocation16_spill] sm:$0xff] }
 0x4f3   :  { %v4577_v18 = vpack.c.bf16 %v4527_v37, %v4525_v20 }
 0x4f4   :  { %v4287_v38 = vsel %vm1764_vm5, %v6392_v15, %v6387_v12  ;;  %v4288_v40 = vsel %vm1764_vm5, %v6393_v10, %v6388_v2  ;;  %v10635_v10 = vmax.f32 %v10634_v30, 0.0 }
 0x4f5   :  { %4797 = vmatmul.mubr.bf16.gmra.mxu0 %v4574_v6  ;;  %v4524_v50 = vmax.f32 %v10626_v22, %v4287_v38  ;;  %v4526_v43 = vmax.f32 %v10627_v60, %v4288_v40  ;;  %v10636_v6 = vld [vmem:[#allocation15_spill] sm:$0xff] }
 0x4f6   :  { %5647 = vmatprep.mubr.msk.bf16.mxu0 %vm448_vm0, %v4577_v18  ;;  %v10637_v18 = vmax.f32 %v10636_v6, 0.0 }
 0x4f7   :  { %v4576_v7 = vpack.c.bf16 %v4526_v43, %v4524_v50 }
 0x4fb   :  { %v6396_v41 = vpop.permute.xlu0 %6395 }
 0x4fc   :  { %v6398_v29 = vunpack.i.h.bf16 %v6396_v41  ;;  %v6397_v8 = vunpack.i.l.bf16 %v6396_v41 }
 0x4fd   :  { %4805 = vmatmul.mubr.bf16.gmra.mxu0 %v4576_v7  ;;  %v6401_v47 = vpop.permute.xlu1 %6400 }
 0x4fe   :  { %v6403_v19 = vunpack.i.h.bf16 %v6401_v47  ;;  %v6402_v33 = vunpack.i.l.bf16 %v6401_v47 }
 0x500   :  { %v4483_v48 = vsel %vm4467_vm12, %v6403_v19, %v6398_v29  ;;  %v4482_v3 = vsel %vm4467_vm12, %v6402_v33, %v6397_v8  ;;  %v10638_v29 = vld [vmem:[#allocation11_spill] sm:$0xff] }
 0x501   :  { %v4531_v63 = vmax.f32 %v10628_v58, %v4483_v48  ;;  %v4529_v45 = vmax.f32 %v10629_v44, %v4482_v3  ;;  %v6406_v46 = vpop.permute.xlu1 %6405  ;;  %v10640_v48 = vmax.f32 %v9488_v52, 0.0 }
 0x502   :  { %v6408_v34 = vunpack.i.h.bf16 %v6406_v46  ;;  %v6407_v36 = vunpack.i.l.bf16 %v6406_v46 }
 0x503   :  { %v4579_v24 = vpack.c.bf16 %v4531_v63, %v4529_v45 }
 0x504   :  { %v4289_v16 = vsel %vm1764_vm5, %v6407_v36, %v6402_v33  ;;  %v4290_v42 = vsel %vm1764_vm5, %v6408_v34, %v6403_v19  ;;  %v10639_v19 = vmax.f32 %v9496_v17, 0.0  ;;  %v10641_v36 = vmax.f32 %v9485_v11, 0.0 }
 0x505   :  { %v4528_v28 = vmax.f32 %v10630_v51, %v4289_v16  ;;  %v4530_v26 = vmax.f32 %v10631_v32, %v4290_v42  ;;  %5648 = vmatprep.mubr.msk.bf16.mxu0 %vm448_vm0, %v4579_v24  ;;  %v10642_v16 = vmax.f32 %v9490_v35, 0.0  ;;  %v10643_v51 = vld [vmem:[#allocation10_spill] sm:$0xff] }
 0x507   :  { %v4578_v1 = vpack.c.bf16 %v4530_v26, %v4528_v28 }
 0x509   :  { %4813 = vmatmul.mubr.bf16.gmra.mxu0 %v4578_v1 }
 0x50c   :  { %v6411_v9 = vpop.permute.xlu1 %6410 }
 0x50d   :  { %v6413_v61 = vunpack.i.h.bf16 %v6411_v9  ;;  %v6412_v49 = vunpack.i.l.bf16 %v6411_v9 }
 0x50e   :  { %v6416_v14 = vpop.permute.xlu0 %6415 }
 0x50f   :  { %v6418_v2 = vunpack.i.h.bf16 %v6416_v14  ;;  %v6417_v12 = vunpack.i.l.bf16 %v6416_v14 }
 0x511   :  { %v4484_v25 = vsel %vm4467_vm12, %v6417_v12, %v6412_v49  ;;  %v4485_v59 = vsel %vm4467_vm12, %v6418_v2, %v6413_v61  ;;  %v6693_v61 = vld [vmem:[%s10193_s5 + $0x38] sm:$0xff]   ;;  %v9703_v49 = vpop.f32.mrf.mxu0 }
 0x512   :  { %v4533_v0 = vmax.f32 %v10632_v57, %v4484_v25  ;;  %v4535_v31 = vmax.f32 %v10633_v4, %v4485_v59  ;;  %v6421_v62 = vpop.permute.xlu0 %6420  ;;  %v6696_v4 = vld [vmem:[%s10193_s5 + $0x68] sm:$0xff]  }
 0x513   :  { %v6423_v27 = vunpack.i.h.bf16 %v6421_v62  ;;  %v6422_v21 = vunpack.i.l.bf16 %v6421_v62  ;;  %v6697_v62 = vld [vmem:[%s10193_s5 + $0x28] sm:$0xff]  }
 0x514   :  { %v4581_v20 = vpack.c.bf16 %v4535_v31, %v4533_v0 }
 0x515   :  { %v4291_v23 = vsel %vm1764_vm5, %v6422_v21, %v6417_v12  ;;  %v4292_v37 = vsel %vm1764_vm5, %v6423_v27, %v6418_v2  ;;  %v6695_v2 = vld [vmem:[%s10193_s5 + $0x30] sm:$0xff]   ;;  %v9711_v12 = vpop.f32.mrf.mxu0 }
 0x516   :  { %v4532_v15 = vmax.f32 %v10635_v10, %v4291_v23  ;;  %v4534_v38 = vmax.f32 %v10637_v18, %v4292_v37  ;;  %5649 = vmatprep.mubr.msk.bf16.mxu0 %vm448_vm0, %v4581_v20  ;;  %v6699_v18 = vld [vmem:[%s10193_s5 + $0x20] sm:$0xff]  }
 0x517   :  { %v9713_v25 = vpop.f32.mrf.mxu0 }
 0x518   :  { %v4580_v39 = vpack.c.bf16 %v4534_v38, %v4532_v15  ;;  %v6698_v15 = vld [vmem:[%s10193_s5 + $0x60] sm:$0xff]  }
 0x519   :  { %v9715_v59 = vpop.f32.mrf.mxu0 }
 0x51a   :  { %4821 = vmatmul.mubr.bf16.gmra.mxu0 %v4580_v39 }
 0x51b   :  { %v6426_v13 = vpop.permute.xlu0 %6425 }
 0x51c   :  { %v6428_v22 = vunpack.i.h.bf16 %v6426_v13  ;;  %v6427_v50 = vunpack.i.l.bf16 %v6426_v13 }
 0x51d   :  { %v6431_v40 = vpop.permute.xlu1 %6430 }
 0x51e   :  { %v6433_v60 = vunpack.i.h.bf16 %v6431_v40  ;;  %v6432_v43 = vunpack.i.l.bf16 %v6431_v40 }
 0x51f   :  { %v3061_v7 = vpop.permute.xlu0 %3060 }
 0x520   :  { %v4487_v41 = vsel %vm4467_vm12, %v6433_v60, %v6428_v22  ;;  %v4486_v47 = vsel %vm4467_vm12, %v6432_v43, %v6427_v50  ;;  %v3250_v8 = vsel %vm3218_vm11, %v10638_v29, %v3061_v7  ;;  %5625 = vmatprep.mubr.msk.bf16.mxu1 %vm3593_vm10, %v3061_v7 }
 0x521   :  { %v4539_v33 = vmax.f32 %v10639_v19, %v4487_v41  ;;  %v4537_v3 = vmax.f32 %v10640_v48, %v4486_v47  ;;  %3959 = vmatmul.mubr.bf16.gmra.mxu1 %v3250_v8  ;;  %v6436_v58 = vpop.permute.xlu1 %6435  ;;  %v6701_v41 = vld [vmem:[%s10193_s5 + $0x18] sm:$0xff]  }
 0x522   :  { %v6438_v63 = vunpack.i.h.bf16 %v6436_v58  ;;  %v6437_v44 = vunpack.i.l.bf16 %v6436_v58  ;;  %v6703_v58 = vld [vmem:[%s10193_s5 + $0x10] sm:$0xff]  }
 0x523   :  { %v4583_v45 = vpack.c.bf16 %v4539_v33, %v4537_v3  ;;  %v3065_v32 = vpop.permute.xlu0 %3064  ;;  %v6702_v33 = vld [vmem:[%s10193_s5 + $0x50] sm:$0xff]  }
 0x524   :  { %v4293_v46 = vsel %vm1764_vm5, %v6437_v44, %v6432_v43  ;;  %v4294_v34 = vsel %vm1764_vm5, %v6438_v63, %v6433_v60  ;;  %v3256_v11 = vsel %vm3218_vm11, %v9510_v55, %v3065_v32  ;;  %v6692_v55 = vld [vmem:[%s10193_s5 + $0x78] sm:$0xff]  }
 0x525   :  { %v4536_v24 = vmax.f32 %v10641_v36, %v4293_v46  ;;  %v4538_v42 = vmax.f32 %v10642_v16, %v4294_v34  ;;  %v3063_v17 = vpop.permute.xlu1 %3062  ;;  %5650 = vmatprep.mubr.msk.bf16.mxu0 %vm448_vm0, %v4583_v45  ;;  %5715 = vmatprep.subr.bf16.mxu1 %v6692_v55  ;;  %v6700_v43 = vld [vmem:[%s10193_s5 + $0x58] sm:$0xff]  }
 0x526   :  { %5626 = vmatprep.mubr.msk.bf16.mxu1 %vm3593_vm10, %v3063_v17  ;;  %v3253_v28 = vsel %vm3218_vm11, %v10643_v51, %v3063_v17  ;;  %5716 = vmatpush3.bf16.msra.mxu1 %v6693_v61  ;;  %v6705_v17 = vld [vmem:[%s10193_s5 + $0x8] sm:$0xff]   ;;  %v6706_v61 = vld [vmem:[%s10193_s5 + $0x40] sm:$0xff]  }
 0x527   :  { %v4582_v52 = vpack.c.bf16 %v4538_v42, %v4536_v24  ;;  %v3069_v1 = vpop.permute.xlu0 %3068  ;;  %v6704_v42 = vld [vmem:[%s10193_s5 + $0x48] sm:$0xff]  }
 0x528   :  { %v3262_v9 = vsel %vm3218_vm11, %v9534_v53, %v3069_v1  ;;  %v6694_v53 = vld [vmem:[%s10193_s5 + $0x70] sm:$0xff]  }
 0x529   :  { %3969 = vmatmul.mubr.bf16.gmra.mxu1 %v3253_v28  ;;  %4829 = vmatmul.mubr.bf16.gmra.mxu0 %v4582_v52  ;;  %v3067_v26 = vpop.permute.xlu1 %3066 }
 0x52a   :  { %5627 = vmatprep.mubr.msk.bf16.mxu1 %vm3593_vm10, %v3065_v32  ;;  %v3259_v35 = vsel %vm3218_vm11, %v9492_v54, %v3067_v26  ;;  %5717 = vmatprep.subr.bf16.mxu1 %v6694_v53 }
 0x52b   :  { %5718 = vmatpush3.bf16.msra.mxu1 %v6695_v2 }
 0x52c   :  { %5719 = vmatprep.subr.bf16.mxu1 %v6696_v4  ;;  %v10644_v4 = vmov 0  }
 0x52d   :  { %v3071_v14 = vpop.permute.xlu1 %3070 }
 0x52e   :  { %v3265_v54 = vsel %vm3218_vm11, %v9531_v5, %v3071_v14 }
 0x52f   :  { %5720 = vmatpush3.bf16.msra.mxu1 %v6697_v62 }
 0x530   :  { %5721 = vmatprep.subr.bf16.mxu1 %v6698_v15 }
 0x531   :  { %3979 = vmatmul.mubr.bf16.gmra.mxu1 %v3256_v11 }
 0x532   :  { %5628 = vmatprep.mubr.msk.bf16.mxu1 %vm3593_vm10, %v3067_v26 }
 0x533   :  { %5722 = vmatpush3.bf16.msra.mxu1 %v6699_v18 }
 0x534   :  { %5723 = vmatprep.subr.bf16.mxu1 %v6700_v43 }
 0x537   :  { %5724 = vmatpush3.bf16.msra.mxu1 %v6701_v41 }
 0x538   :  { %5725 = vmatprep.subr.bf16.mxu1 %v6702_v33 }
 0x539   :  { %3989 = vmatmul.mubr.bf16.gmra.mxu1 %v3259_v35 }
 0x53a   :  { %5629 = vmatprep.mubr.msk.bf16.mxu1 %vm3593_vm10, %v3069_v1 }
 0x53b   :  { %5726 = vmatpush3.bf16.msra.mxu1 %v6703_v58 }
 0x53c   :  { %5727 = vmatprep.subr.bf16.mxu1 %v6704_v42 }
 0x53f   :  { %5728 = vmatpush3.bf16.msra.mxu1 %v6705_v17 }
 0x540   :  { %5729 = vmatprep.subr.bf16.mxu1 %v6706_v61 }
 0x541   :  { %3999 = vmatmul.mubr.bf16.gmra.mxu1 %v3262_v9 }
 0x542   :  { %5630 = vmatprep.mubr.msk.bf16.mxu1 %vm3593_vm10, %v3071_v14 }
 0x549   :  { %4009 = vmatmul.mubr.bf16.gmra.mxu1 %v3265_v54  ;;  %v6707_v54 = vld [vmem:[%s10193_s5] sm:$0xff]  }
 0x54a   :  { %5730 = vmatpush3.bf16.msra.mxu1 %v6707_v54 }
 0x54b   :  { %v9717_v5 = vpop.f32.mrf.mxu0  ;;  %5161 = vmatprep.subr.bf16.mxu1 %v10644_v4 }
 0x54d   :  { %v9719_v57 = vpop.f32.mrf.mxu0 }
 0x54f   :  { %v9721_v0 = vpop.f32.mrf.mxu0 }
 0x551   :  { %v9726_v31 = vpop.f32.mrf.mxu0 }
 0x56d   :  { %v9731_v27 = vpop.f32.mrf.mxu0 }
 0x56f   :  { %v9733_v21 = vpop.f32.mrf.mxu0 }
 0x571   :  { %v9735_v20 = vpop.f32.mrf.mxu0 }
 0x573   :  { %v9737_v23 = vpop.f32.mrf.mxu0 }
 0x575   :  { %v9739_v37 = vpop.f32.mrf.mxu0 }
 0x577   :  { %v9741_v30 = vpop.f32.mrf.mxu0 }
 0x579   :  { %v9743_v10 = vpop.f32.mrf.mxu0 }
 0x57b   :  { %v9748_v6 = vpop.f32.mrf.mxu0 }
 0x57d   :  { %v9753_v38 = vpop.f32.mrf.mxu0 }
 0x57f   :  { %v9755_v39 = vpop.f32.mrf.mxu0 }
 0x581   :  { %v9757_v13 = vpop.f32.mrf.mxu0 }
 0x583   :  { %v9759_v40 = vpop.f32.mrf.mxu0 }
 0x585   :  { %v9761_v22 = vpop.f32.mrf.mxu0 }
 0x587   :  { %v9763_v50 = vpop.f32.mrf.mxu0 }
 0x589   :  { %v9765_v60 = vpop.f32.mrf.mxu0 }
 0x58b   :  { %v9770_v7 = vpop.f32.mrf.mxu0 }
 0x58d   :  { %v4758_v47 = vpop.f32.mrf.mxu0 }
 0x58f   :  { %v4760_v29 = vpop.f32.mrf.mxu0 }
 0x591   :  { %v4761_v8 = vpop.f32.mrf.mxu0 }
 0x593   :  { %v4763_v19 = vpop.f32.mrf.mxu0 }
 0x595   :  { %v4766_v48 = vpop.f32.mrf.mxu0 }
 0x596   :  { %v4873_v3 = vmax.f32 %v4758_v47, %v4766_v48 }
 0x597   :  { %v4768_v63 = vpop.f32.mrf.mxu0 }
 0x599   :  { %v4769_v44 = vpop.f32.mrf.mxu0 }
 0x59a   :  { %v4874_v45 = vmax.f32 %v4761_v8, %v4769_v44 }
 0x59b   :  { %v4771_v46 = vpop.f32.mrf.mxu0 }
 0x59c   :  { %v9781_v34 = vpack.c.bf16 %v4874_v45, %v4873_v3 }
 0x59d   :  { %v4774_v36 = vpop.f32.mrf.mxu0 }
 0x59f   :  { %v4776_v24 = vpop.f32.mrf.mxu0 }
 0x5a1   :  { %v4777_v16 = vpop.f32.mrf.mxu0 }
 0x5a3   :  { %v4779_v52 = vpop.f32.mrf.mxu0 }
 0x5a5   :  { %v4782_v51 = vpop.f32.mrf.mxu0 }
 0x5a6   :  { %v4875_v11 = vmax.f32 %v4774_v36, %v4782_v51  ;;  %v3770_v51 = vadd.f32 %v9711_v12, %v9227_v56 }
 0x5a7   :  { %v4784_v28 = vpop.f32.mrf.mxu0 }
 0x5a9   :  { %v4785_v32 = vpop.f32.mrf.mxu0 }
 0x5aa   :  { %v4876_v26 = vmax.f32 %v4777_v16, %v4785_v32  ;;  %v10645_v32 = vld [vmem:[#allocation9_spill] sm:$0xff] }
 0x5ab   :  { %v4787_v35 = vpop.f32.mrf.mxu0 }
 0x5ac   :  { %v4884_v1 = vpack.c.bf16 %v4876_v26, %v4875_v11  ;;  %v3772_v11 = vadd.f32 %v9713_v25, %v10645_v32  ;;  %v3774_v26 = vadd.f32 %v9715_v59, %v9227_v56 }
 0x5ad   :  { %v4790_v9 = vpop.f32.mrf.mxu0 }
 0x5ae   :  { %4889 = vrot.lane.b32.xlu0 %v4884_v1, %s6753_s19  ;;  %s6755_s19 = smov 112   ;;  %v3768_v1 = vadd.f32 %v9703_v49, %v10645_v32  ;;  %v3782_v49 = vadd.f32 %v9721_v0, %v10645_v32 }
 0x5af   :  { %v4792_v14 = vpop.f32.mrf.mxu0 }
 0x5b1   :  { %v4793_v55 = vpop.f32.mrf.mxu0 }
 0x5b3   :  { %v4795_v53 = vpop.f32.mrf.mxu0 }
 0x5b5   :  { %v4798_v2 = vpop.f32.mrf.mxu0 }
 0x5b6   :  { %v4877_v18 = vmax.f32 %v4790_v9, %v4798_v2 }
 0x5b7   :  { %v4800_v62 = vpop.f32.mrf.mxu0 }
 0x5b8   :  { %v3778_v62 = vadd.f32 %v9717_v5, %v10645_v32 }
 0x5b9   :  { %v4801_v15 = vpop.f32.mrf.mxu0 }
 0x5ba   :  { %v4878_v43 = vmax.f32 %v4793_v55, %v4801_v15 }
 0x5bb   :  { %v4803_v41 = vpop.f32.mrf.mxu0 }
 0x5bc   :  { %v4885_v47 = vpack.c.bf16 %v4878_v43, %v4877_v18  ;;  %v3784_v43 = vadd.f32 %v9726_v31, %v9227_v56 }
 0x5bd   :  { %v4806_v29 = vpop.f32.mrf.mxu0 }
 0x5be   :  { %4892 = vrot.lane.b32.xlu1 %v4885_v47, %s6744_s9 }
 0x5bf   :  { %v4808_v8 = vpop.f32.mrf.mxu0 }
 0x5c1   :  { %v4809_v19 = vpop.f32.mrf.mxu0 }
 0x5c3   :  { %v4811_v33 = vpop.f32.mrf.mxu0 }
 0x5c4   :  { %v3780_v33 = vadd.f32 %v9719_v57, %v9227_v56 }
 0x5c9   :  { %v4814_v48 = vpop.f32.mrf.mxu0 }
 0x5ca   :  { %v4879_v63 = vmax.f32 %v4806_v29, %v4814_v48 }
 0x5cb   :  { %v4816_v3 = vpop.f32.mrf.mxu0 }
 0x5cd   :  { %v4817_v58 = vpop.f32.mrf.mxu0 }
 0x5ce   :  { %v4880_v44 = vmax.f32 %v4809_v19, %v4817_v58 }
 0x5cf   :  { %v4819_v45 = vpop.f32.mrf.mxu0 }
 0x5d0   :  { %v4886_v46 = vpack.c.bf16 %v4880_v44, %v4879_v63 }
 0x5d2   :  { %4895 = vrot.lane.b32.xlu0 %v4886_v46, %s6755_s19 }
 0x5da   :  { %v4822_v36 = vpop.f32.mrf.mxu0 }
 0x5dc   :  { %v4824_v24 = vpop.f32.mrf.mxu0 }
 0x5dd   :  { %v3790_v24 = vadd.f32 %v9733_v21, %v9227_v56 }
 0x5de   :  { %v4825_v16 = vpop.f32.mrf.mxu0 }
 0x5e0   :  { %v4827_v42 = vpop.f32.mrf.mxu0 }
 0x5e1   :  { %v3960_v17 = vpop.f32.mrf.mxu1 }
 0x5e2   :  { %v9812_v61 = vadd.f32 %v3960_v17, %v3768_v1 }
 0x5e3   :  { %v3962_v52 = vpop.f32.mrf.mxu1 }
 0x5e4   :  { %v9804_v35 = vadd.f32 %v3962_v52, %v3770_v51  ;;  %v4059_v41 = vmax.f32 %v9812_v61, 0.0  ;;  %v3792_v52 = vadd.f32 %v9735_v20, %v10645_v32  ;;  %v3794_v51 = vadd.f32 %v9737_v23, %v9227_v56 }
 0x5e5   :  { %v3964_v28 = vpop.f32.mrf.mxu1 }
 0x5e6   :  { %v9808_v14 = vadd.f32 %v3964_v28, %v3772_v11  ;;  %v4060_v53 = vmax.f32 %v9804_v35, 0.0 }
 0x5e7   :  { %v3966_v9 = vpop.f32.mrf.mxu1 }
 0x5e8   :  { %v9810_v55 = vadd.f32 %v3966_v9, %v3774_v26  ;;  %v4061_v15 = vmax.f32 %v9808_v14, 0.0  ;;  %v3788_v26 = vadd.f32 %v9731_v27, %v10645_v32  ;;  %v3798_v27 = vadd.f32 %v9739_v37, %v10645_v32 }
 0x5e9   :  { %v3970_v12 = vpop.f32.mrf.mxu1  ;;  %v4830_v54 = vpop.f32.mrf.mxu0 }
 0x5ea   :  { %v4062_v25 = vmax.f32 %v9810_v55, 0.0  ;;  %v9828_v8 = vadd.f32 %v3970_v12, %v3778_v62  ;;  %v4881_v5 = vmax.f32 %v4822_v36, %v4830_v54  ;;  %v6449_v31 = vpack.i.bf16 %v4061_v15, %v4059_v41 }
 0x5eb   :  { %v3972_v2 = vpop.f32.mrf.mxu1  ;;  %v4832_v59 = vpop.f32.mrf.mxu0 }
 0x5ec   :  { %v6439_v18 = vpack.i.bf16 %v4062_v25, %v4060_v53  ;;  %v4063_v46 = vmax.f32 %v9828_v8, 0.0  ;;  %v9843_v36 = vadd.f32 %v3972_v2, %v3780_v33  ;;  %v3800_v59 = vadd.f32 %v9741_v30, %v9227_v56 }
 0x5ed   :  { %v3974_v47 = vpop.f32.mrf.mxu1  ;;  %v4833_v29 = vpop.f32.mrf.mxu0 }
 0x5ee   :  { %v9830_v19 = vadd.f32 %v3974_v47, %v3782_v49  ;;  %v4882_v0 = vmax.f32 %v4825_v16, %v4833_v29  ;;  %6440 = vrot.lane.b32.xlu0 %v6439_v18, %s6749_s18  ;;  %v4064_v28 = vmax.f32 %v9843_v36, 0.0  ;;  %v3802_v49 = vadd.f32 %v9743_v10, %v10645_v32 }
 0x5ef   :  { %v3976_v48 = vpop.f32.mrf.mxu1  ;;  %v4835_v3 = vpop.f32.mrf.mxu0  ;;  %v3804_v47 = vadd.f32 %v9748_v6, %v9227_v56 }
 0x5f0   :  { %v4065_v58 = vmax.f32 %v9830_v19, 0.0  ;;  %v4887_v63 = vpack.c.bf16 %v4882_v0, %v4881_v5  ;;  %v9840_v44 = vadd.f32 %v3976_v48, %v3784_v43 }
 0x5f1   :  { %v3980_v45 = vpop.f32.mrf.mxu1 }
 0x5f2   :  { %6450 = vrot.lane.b32.xlu0 %v6449_v31, %s6749_s18  ;;  %4898 = vrot.lane.b32.xlu1 %v4887_v63, %s6746_s15  ;;  %v6459_v16 = vpack.i.bf16 %v4065_v58, %v4063_v46  ;;  %v4066_v42 = vmax.f32 %v9840_v44, 0.0  ;;  %v9873_v12 = vadd.f32 %v3980_v45, %v3788_v26 }
 0x5f3   :  { %v3982_v57 = vpop.f32.mrf.mxu1 }
 0x5f4   :  { %v9859_v11 = vadd.f32 %v3982_v57, %v3790_v24  ;;  %v6454_v20 = vpack.i.bf16 %v4066_v42, %v4064_v28  ;;  %v4067_v37 = vmax.f32 %v9873_v12, 0.0  ;;  %v3808_v57 = vadd.f32 %v9753_v38, %v10645_v32 }
 0x5f5   :  { %v3984_v17 = vpop.f32.mrf.mxu1  ;;  %v3814_v38 = vadd.f32 %v9759_v40, %v9227_v56 }
 0x5f6   :  { %6460 = vrot.lane.b32.xlu0 %v6459_v16, %s6754_s23  ;;  %6445 = vrot.lane.b32.xlu1 %v6449_v31, %s6754_s23  ;;  %v9869_v1 = vadd.f32 %v3984_v17, %v3792_v52  ;;  %v4068_v54 = vmax.f32 %v9859_v11, 0.0  ;;  %v3812_v17 = vadd.f32 %v9757_v13, %v10645_v32 }
 0x5f7   :  { %v3986_v21 = vpop.f32.mrf.mxu1 }
 0x5f8   :  { %v9871_v23 = vadd.f32 %v3986_v21, %v3794_v51  ;;  %v4069_v18 = vmax.f32 %v9869_v1, 0.0 }
 0x5f9   :  { %v3990_v9 = vpop.f32.mrf.mxu1 }
 0x5fa   :  { %v4070_v2 = vmax.f32 %v9871_v23, 0.0  ;;  %6455 = vrot.lane.b32.xlu1 %v6454_v20, %s6749_s18  ;;  %v9892_v5 = vadd.f32 %v3990_v9, %v3798_v27  ;;  %v6479_v33 = vpack.i.bf16 %v4069_v18, %v4067_v37 }
 0x5fb   :  { %v3992_v62 = vpop.f32.mrf.mxu1 }
 0x5fc   :  { %v6469_v43 = vpack.i.bf16 %v4070_v2, %v4068_v54  ;;  %v9894_v30 = vadd.f32 %v3992_v62, %v3800_v59  ;;  %v4071_v31 = vmax.f32 %v9892_v5, 0.0 }
 0x5fd   :  { %v3994_v29 = vpop.f32.mrf.mxu1 }
 0x5fe   :  { %v9896_v0 = vadd.f32 %v3994_v29, %v3802_v49  ;;  %6470 = vrot.lane.b32.xlu0 %v6469_v43, %s6749_s18  ;;  %6465 = vrot.lane.b32.xlu1 %v6459_v16, %s6749_s18  ;;  %v4072_v63 = vmax.f32 %v9894_v30, 0.0  ;;  %v3810_v16 = vadd.f32 %v9755_v39, %v9227_v56  ;;  %v3818_v43 = vadd.f32 %v9761_v22, %v10645_v32 }
 0x5ff   :  { %v3996_v10 = vpop.f32.mrf.mxu1  ;;  %v3820_v29 = vadd.f32 %v9763_v50, %v9227_v56  ;;  %v3824_v22 = vadd.f32 %v9770_v7, %v9227_v56 }
 0x600   :  { %v4073_v6 = vmax.f32 %v9896_v0, 0.0  ;;  %v9905_v48 = vadd.f32 %v3996_v10, %v3804_v47  ;;  %v3822_v10 = vadd.f32 %v9765_v60, %v10645_v32 }
 0x601   :  { %v4000_v3 = vpop.f32.mrf.mxu1 }
 0x602   :  { %v4074_v45 = vmax.f32 %v9905_v48, 0.0  ;;  %6480 = vrot.lane.b32.xlu0 %v6479_v33, %s6749_s18  ;;  %6475 = vrot.lane.b32.xlu1 %v6479_v33, %s6754_s23  ;;  %v6489_v52 = vpack.i.bf16 %v4073_v6, %v4071_v31  ;;  %v9928_v26 = vadd.f32 %v4000_v3, %v3808_v57 }
 0x603   :  { %v4002_v24 = vpop.f32.mrf.mxu1 }
 0x604   :  { %v6484_v51 = vpack.i.bf16 %v4074_v45, %v4072_v63  ;;  %v9930_v39 = vadd.f32 %v4002_v24, %v3810_v16  ;;  %v4075_v62 = vmax.f32 %v9928_v26, 0.0 }
 0x605   :  { %v4004_v21 = vpop.f32.mrf.mxu1 }
 0x606   :  { %v9932_v20 = vadd.f32 %v4004_v21, %v3812_v17  ;;  %6490 = vrot.lane.b32.xlu0 %v6489_v52, %s6754_s23  ;;  %6485 = vrot.lane.b32.xlu1 %v6484_v51, %s6749_s18  ;;  %v4076_v40 = vmax.f32 %v9930_v39, 0.0 }
 0x607   :  { %v4006_v13 = vpop.f32.mrf.mxu1 }
 0x608   :  { %v4077_v9 = vmax.f32 %v9932_v20, 0.0  ;;  %v9937_v27 = vadd.f32 %v4006_v13, %v3814_v38 }
 0x609   :  { %v4010_v59 = vpop.f32.mrf.mxu1 }
 0x60a   :  { %v4078_v49 = vmax.f32 %v9937_v27, 0.0  ;;  %6495 = vrot.lane.b32.xlu1 %v6489_v52, %s6749_s18  ;;  %v6504_v33 = vpack.i.bf16 %v4077_v9, %v4075_v62  ;;  %v9959_v24 = vadd.f32 %v4010_v59, %v3818_v43 }
 0x60b   :  { %v4012_v47 = vpop.f32.mrf.mxu1 }
 0x60c   :  { %v6499_v3 = vpack.i.bf16 %v4078_v49, %v4076_v40  ;;  %v9961_v50 = vadd.f32 %v4012_v47, %v3820_v29  ;;  %v10398_v52 = vmax.f32 %v9959_v24, 0.0  ;;  %v6708_v47 = vld [vmem:[%s10193_s5 + $0xb8] sm:$0xff]  }
 0x60d   :  { %v4014_v57 = vpop.f32.mrf.mxu1 }
 0x60e   :  { %v9963_v16 = vadd.f32 %v4014_v57, %v3822_v10  ;;  %6500 = vrot.lane.b32.xlu0 %v6499_v3, %s6749_s18  ;;  %6505 = vrot.lane.b32.xlu1 %v6504_v33, %s6754_s23  ;;  %v4080_v56 = vmax.f32 %v9961_v50, 0.0  ;;  %v6710_v3 = vld [vmem:[%s10193_s5 + $0xa8] sm:$0xff]   ;;  %v6713_v57 = vld [vmem:[%s10193_s5 + $0x90] sm:$0xff]  }
 0x60f   :  { %v4016_v60 = vpop.f32.mrf.mxu1  ;;  %v6718_v50 = vld [vmem:[%s10194_s6 + $0x30] sm:$0xff]  }
 0x610   :  { %v10397_v32 = vmax.f32 %v9963_v16, 0.0  ;;  %v9968_v17 = vadd.f32 %v4016_v60, %v3824_v22  ;;  %v6712_v22 = vld [vmem:[%s10193_s5 + $0x98] sm:$0xff]   ;;  %v6714_v60 = vld [vmem:[%s10193_s5 + $0x88] sm:$0xff]  }
 0x612   :  { %v4082_v7 = vmax.f32 %v9968_v17, 0.0  ;;  %6510 = vrot.lane.b32.xlu0 %v6504_v33, %s6749_s18  ;;  %v6519_v51 = vpack.i.bf16 %v10397_v32, %v10398_v52  ;;  %v6709_v33 = vld [vmem:[%s10193_s5 + $0xb0] sm:$0xff]   ;;  %v6717_v17 = vld [vmem:[%s10194_s6 + $0x38] sm:$0xff]  }
 0x614   :  { %v6514_v38 = vpack.i.bf16 %v4082_v7, %v4080_v56 }
 0x616   :  { %6520 = vrot.lane.b32.xlu0 %v6519_v51, %s6754_s23  ;;  %6515 = vrot.lane.b32.xlu1 %v6514_v38, %s6749_s18  ;;  %v6715_v38 = vld [vmem:[%s10193_s5 + $0x80] sm:$0xff]  }
 0x61a   :  { %6525 = vrot.lane.b32.xlu1 %v6519_v51, %s6749_s18 }
 0x620   :  { %v4890_v21 = vpop.permute.xlu0 %4889 }
 0x621   :  { %v4902_v10 = vsel %vm3218_vm11, %v9781_v34, %v4890_v21  ;;  %v6711_v34 = vld [vmem:[%s10193_s5 + $0xa0] sm:$0xff]  }
 0x630   :  { %v4893_v13 = vpop.permute.xlu1 %4892 }
 0x631   :  { %v4905_v59 = vsel %vm448_vm0, %v4890_v21, %v4893_v13 }
 0x644   :  { %v4896_v43 = vpop.permute.xlu0 %4895 }
 0x645   :  { %v4908_v29 = vsel %vm4906_vm13, %v4905_v59, %v4896_v43 }
 0x646   :  { %5152 = vmatprep.mubr.bf16.mxu1 %v4908_v29  ;;  %v6716_v29 = vld [vmem:[%s10193_s5 + $0xc0] sm:$0xff]  }
 0x647   :  { %5153 = vmatmul.mubr.bf16.vlgmr.msra.gmra.mxu1 %v4902_v10 }
 0x648   :  { %5162 = vmatpush1.bf16.msra.mxu1 %v6708_v47 }
 0x649   :  { %5163 = vmatprep.subr.bf16.mxu1 %v10644_v4 }
 0x64c   :  { %5164 = vmatpush1.bf16.msra.mxu1 %v6709_v33 }
 0x64d   :  { %5165 = vmatprep.subr.bf16.mxu1 %v10644_v4 }
 0x650   :  { %5166 = vmatpush1.bf16.msra.mxu1 %v6710_v3 }
 0x651   :  { %5167 = vmatprep.subr.bf16.mxu1 %v10644_v4 }
 0x654   :  { %5168 = vmatpush1.bf16.msra.mxu1 %v6711_v34 }
 0x655   :  { %5169 = vmatprep.subr.bf16.mxu1 %v10644_v4 }
 0x658   :  { %5170 = vmatpush1.bf16.msra.mxu1 %v6712_v22 }
 0x659   :  { %5171 = vmatprep.subr.bf16.mxu1 %v10644_v4 }
 0x65c   :  { %5172 = vmatpush1.bf16.msra.mxu1 %v6713_v57 }
 0x65d   :  { %5173 = vmatprep.subr.bf16.mxu1 %v10644_v4 }
 0x660   :  { %v6441_v51 = vpop.permute.xlu0 %6440  ;;  %5174 = vmatpush1.bf16.msra.mxu1 %v6714_v60 }
 0x661   :  { %5175 = vmatprep.subr.bf16.mxu1 %v10644_v4  ;;  %v6443_v10 = vunpack.i.h.bf16 %v6441_v51  ;;  %v6442_v33 = vunpack.i.l.bf16 %v6441_v51 }
 0x664   :  { %v6451_v21 = vpop.permute.xlu0 %6450  ;;  %v4899_v13 = vpop.permute.xlu1 %4898  ;;  %5176 = vmatpush1.bf16.msra.mxu1 %v6715_v38 }
 0x665   :  { %v6453_v59 = vunpack.i.h.bf16 %v6451_v21  ;;  %v6452_v47 = vunpack.i.l.bf16 %v6451_v21  ;;  %5682 = vmatprep.mubr.msk.bf16.mxu1 %vm5117_vm14, %v4899_v13  ;;  %5191 = vmatprep.subr.bf16.mxu1 %v10644_v4  ;;  %v4911_v38 = vsel %vm545_vm1, %v4896_v43, %v4899_v13 }
 0x667   :  { %v4295_v3 = vsel %vm1764_vm5, %v6452_v47, %v6442_v33  ;;  %v4296_v34 = vsel %vm1764_vm5, %v6453_v59, %v6443_v10 }
 0x668   :  { %v6446_v22 = vpop.permute.xlu1 %6445  ;;  %5192 = vmatpush2.bf16.msra.mxu1 %v6716_v29  ;;  %v6461_v21 = vpop.permute.xlu0 %6460  ;;  %v4540_v32 = vmax.f32 %v4059_v41, %v4295_v3  ;;  %v4542_v52 = vmax.f32 %v4061_v15, %v4296_v34 }
 0x669   :  { %v6448_v57 = vunpack.i.h.bf16 %v6446_v22  ;;  %v6447_v60 = vunpack.i.l.bf16 %v6446_v22  ;;  %v6463_v43 = vunpack.i.h.bf16 %v6461_v21  ;;  %v6462_v13 = vunpack.i.l.bf16 %v6461_v21 }
 0x66b   :  { %v4489_v51 = vsel %vm4467_vm12, %v6443_v10, %v6448_v57  ;;  %v4488_v4 = vsel %vm4467_vm12, %v6442_v33, %v6447_v60  ;;  %5194 = vmatmul.mubr.bf16.vlgmr.msra.gmra.mxu1 %v4911_v38  ;;  %v4584_v10 = vpack.c.bf16 %v4542_v52, %v4540_v32 }
 0x66c   :  { %v4543_v59 = vmax.f32 %v4062_v25, %v4489_v51  ;;  %v4541_v47 = vmax.f32 %v4060_v53, %v4488_v4  ;;  %v6456_v29 = vpop.permute.xlu1 %6455 }
 0x66d   :  { %v6458_v22 = vunpack.i.h.bf16 %v6456_v29  ;;  %v6457_v61 = vunpack.i.l.bf16 %v6456_v29 }
 0x66e   :  { %v4585_v41 = vpack.c.bf16 %v4543_v59, %v4541_v47 }
 0x66f   :  { %v4491_v14 = vsel %vm4467_vm12, %v6458_v22, %v6463_v43  ;;  %v4490_v15 = vsel %vm4467_vm12, %v6457_v61, %v6462_v13 }
 0x670   :  { %v4547_v33 = vmax.f32 %v4066_v42, %v4491_v14  ;;  %v4545_v55 = vmax.f32 %v4064_v28, %v4490_v15  ;;  %v6471_v35 = vpop.permute.xlu0 %6470  ;;  %v6466_v53 = vpop.permute.xlu1 %6465  ;;  %5651 = vmatprep.mubr.msk.bf16.mxu0 %vm448_vm0, %v4585_v41 }
 0x671   :  { %v6468_v25 = vunpack.i.h.bf16 %v6466_v53  ;;  %v6467_v3 = vunpack.i.l.bf16 %v6466_v53  ;;  %4837 = vmatmul.mubr.bf16.gmra.mxu0 %v4584_v10  ;;  %v6473_v38 = vunpack.i.h.bf16 %v6471_v35  ;;  %v6472_v32 = vunpack.i.l.bf16 %v6471_v35 }
 0x672   :  { %v4587_v34 = vpack.c.bf16 %v4547_v33, %v4545_v55 }
 0x673   :  { %v4297_v57 = vsel %vm1764_vm5, %v6467_v3, %v6457_v61  ;;  %v4298_v60 = vsel %vm1764_vm5, %v6468_v25, %v6458_v22 }
 0x674   :  { %v4544_v44 = vmax.f32 %v4063_v46, %v4297_v57  ;;  %v4546_v36 = vmax.f32 %v4065_v58, %v4298_v60  ;;  %v6481_v42 = vpop.permute.xlu0 %6480  ;;  %v6476_v28 = vpop.permute.xlu1 %6475  ;;  %5652 = vmatprep.mubr.msk.bf16.mxu0 %vm448_vm0, %v4587_v34 }
 0x675   :  { %v6483_v52 = vunpack.i.h.bf16 %v6481_v42  ;;  %v6482_v21 = vunpack.i.l.bf16 %v6481_v42  ;;  %v6478_v51 = vunpack.i.h.bf16 %v6476_v28  ;;  %v6477_v4 = vunpack.i.l.bf16 %v6476_v28 }
 0x676   :  { %v4586_v59 = vpack.c.bf16 %v4546_v36, %v4544_v44 }
 0x677   :  { %v4493_v47 = vsel %vm4467_vm12, %v6473_v38, %v6478_v51  ;;  %v4492_v29 = vsel %vm4467_vm12, %v6472_v32, %v6477_v4  ;;  %v4299_v43 = vsel %vm1764_vm5, %v6482_v21, %v6472_v32  ;;  %v4300_v8 = vsel %vm1764_vm5, %v6483_v52, %v6473_v38 }
 0x678   :  { %v4551_v19 = vmax.f32 %v4070_v2, %v4493_v47  ;;  %v4549_v58 = vmax.f32 %v4068_v54, %v4492_v29  ;;  %v6491_v46 = vpop.permute.xlu0 %6490  ;;  %v6486_v13 = vpop.permute.xlu1 %6485  ;;  %v4548_v10 = vmax.f32 %v4067_v37, %v4299_v43  ;;  %v4550_v33 = vmax.f32 %v4069_v18, %v4300_v8 }
 0x679   :  { %v6493_v22 = vunpack.i.h.bf16 %v6491_v46  ;;  %v6492_v61 = vunpack.i.l.bf16 %v6491_v46  ;;  %v6488_v41 = vunpack.i.h.bf16 %v6486_v13  ;;  %v6487_v14 = vunpack.i.l.bf16 %v6486_v13  ;;  %4843 = vmatmul.mubr.bf16.gmra.mxu0 %v4586_v59 }
 0x67a   :  { %v4589_v15 = vpack.c.bf16 %v4551_v19, %v4549_v58  ;;  %v4588_v12 = vpack.c.bf16 %v4550_v33, %v4548_v10  ;;  %v10647_v13 = vmax.f32 %v9963_v16, 0.0  ;;  %v6722_v16 = vld [vmem:[%s10194_s6 + $0x10] sm:$0xff]   ;;  %v6724_v10 = vld [vmem:[%s10194_s6] sm:$0xff]  }
 0x67b   :  { %v4495_v23 = vsel %vm4467_vm12, %v6488_v41, %v6493_v22  ;;  %v4494_v2 = vsel %vm4467_vm12, %v6487_v14, %v6492_v61  ;;  %v6719_v61 = vld [vmem:[%s10194_s6 + $0x28] sm:$0xff]  }
 0x67c   :  { %v4555_v11 = vmax.f32 %v4074_v45, %v4495_v23  ;;  %v4553_v54 = vmax.f32 %v4072_v63, %v4494_v2  ;;  %v6496_v55 = vpop.permute.xlu1 %6495  ;;  %5653 = vmatprep.mubr.msk.bf16.mxu0 %vm448_vm0, %v4589_v15  ;;  %v6723_v15 = vld [vmem:[%s10194_s6 + $0x8] sm:$0xff]  }
 0x67d   :  { %v6498_v35 = vunpack.i.h.bf16 %v6496_v55  ;;  %v6497_v53 = vunpack.i.l.bf16 %v6496_v55 }
 0x67e   :  { %v4591_v3 = vpack.c.bf16 %v4555_v11, %v4553_v54  ;;  %v10648_v11 = vld [vmem:[#allocation2_spill] sm:$0xff] }
 0x67f   :  { %v4301_v37 = vsel %vm1764_vm5, %v6497_v53, %v6487_v14  ;;  %v4302_v1 = vsel %vm1764_vm5, %v6498_v35, %v6488_v41  ;;  %v6720_v14 = vld [vmem:[%s10194_s6 + $0x20] sm:$0xff]   ;;  %v4965_v54 = vsub.s32 2, %v10648_v11 }
 0x680   :  { %v6501_v18 = vpop.permute.xlu0 %6500  ;;  %v6506_v25 = vpop.permute.xlu1 %6505  ;;  %v4552_v30 = vmax.f32 %v4071_v31, %v4301_v37  ;;  %v4554_v63 = vmax.f32 %v4073_v6, %v4302_v1  ;;  %v10141_v53 = vld [vmem:[%s10190_s7] sm:$0x1f] }
 0x681   :  { %v6503_v34 = vunpack.i.h.bf16 %v6501_v18  ;;  %v6502_v57 = vunpack.i.l.bf16 %v6501_v18  ;;  %v6508_v48 = vunpack.i.h.bf16 %v6506_v25  ;;  %v6507_v45 = vunpack.i.l.bf16 %v6506_v25  ;;  %4849 = vmatmul.mubr.bf16.gmra.mxu0 %v4588_v12 }
 0x682   :  { %5654 = vmatprep.mubr.msk.bf16.mxu0 %vm448_vm0, %v4591_v3  ;;  %v4590_v52 = vpack.c.bf16 %v4554_v63, %v4552_v30  ;;  %v4966_v12 = vrot.slane %v10141_v53, %v4965_v54 }
 0x683   :  { %v4497_v60 = vsel %vm4467_vm12, %v6503_v34, %v6508_v48  ;;  %v4496_v38 = vsel %vm4467_vm12, %v6502_v57, %v6507_v45 }
 0x684   :  { %v4559_v32 = vmax.f32 %v4078_v49, %v4497_v60  ;;  %v4557_v44 = vmax.f32 %v4076_v40, %v4496_v38  ;;  %v6511_v36 = vpop.permute.xlu0 %6510 }
 0x685   :  { %v6513_v42 = vunpack.i.h.bf16 %v6511_v36  ;;  %v6512_v28 = vunpack.i.l.bf16 %v6511_v36 }
 0x686   :  { %v4593_v21 = vpack.c.bf16 %v4559_v32, %v4557_v44  ;;  %v6725_v32 = vld [vmem:[%s10194_s6 + $0x78] sm:$0xff]  }
 0x687   :  { %v4303_v5 = vsel %vm1764_vm5, %v6512_v28, %v6502_v57  ;;  %v4304_v31 = vsel %vm1764_vm5, %v6513_v42, %v6503_v34  ;;  %v6726_v28 = vld [vmem:[%s10194_s6 + $0x70] sm:$0xff]  }
 0x688   :  { %v6521_v0 = vpop.permute.xlu0 %6520  ;;  %v6516_v6 = vpop.permute.xlu1 %6515  ;;  %v4556_v39 = vmax.f32 %v4075_v62, %v4303_v5  ;;  %v4558_v27 = vmax.f32 %v4077_v9, %v4304_v31  ;;  %v6756_v9 = vmov 0.0   ;;  %v6727_v31 = vld [vmem:[%s10194_s6 + $0x68] sm:$0xff]  }
 0x689   :  { %v6523_v51 = vunpack.i.h.bf16 %v6521_v0  ;;  %v6522_v4 = vunpack.i.l.bf16 %v6521_v0  ;;  %v6518_v59 = vunpack.i.h.bf16 %v6516_v6  ;;  %v6517_v47 = vunpack.i.l.bf16 %v6516_v6  ;;  %4855 = vmatmul.mubr.bf16.gmra.mxu0 %v4590_v52  ;;  %5755 = vmatprep.subr.bf16.mxu1 %v6756_v9 }
 0x68a   :  { %5655 = vmatprep.mubr.msk.bf16.mxu0 %vm448_vm0, %v4593_v21  ;;  %v4592_v46 = vpack.c.bf16 %v4558_v27, %v4556_v39  ;;  %5756 = vmatpush3.bf16.msra.mxu1 %v6717_v17  ;;  %v6728_v21 = vld [vmem:[%s10194_s6 + $0x60] sm:$0xff]   ;;  %v6730_v17 = vld [vmem:[%s10194_s6 + $0x50] sm:$0xff]  }
 0x68b   :  { %v4499_v40 = vsel %vm4467_vm12, %v6518_v59, %v6523_v51  ;;  %v4498_v49 = vsel %vm4467_vm12, %v6517_v47, %v6522_v4  ;;  %5757 = vmatprep.subr.bf16.mxu1 %v6756_v9  ;;  %5771 = vmatprep.mubr.msk.bf16.mxu1 %vm6757_vm15, %v6756_v9 }
 0x68c   :  { %v4563_v29 = vmax.f32 %v4082_v7, %v4499_v40  ;;  %v4561_v43 = vmax.f32 %v4080_v56, %v4498_v49  ;;  %v6526_v8 = vpop.permute.xlu1 %6525  ;;  %v10646_v56 = vmax.f32 %v9959_v24, 0.0  ;;  %v6721_v24 = vld [vmem:[%s10194_s6 + $0x18] sm:$0xff]  }
 0x68d   :  { %v6528_v19 = vunpack.i.h.bf16 %v6526_v8  ;;  %v6527_v58 = vunpack.i.l.bf16 %v6526_v8 }
 0x68e   :  { %v4595_v20 = vpack.c.bf16 %v4563_v29, %v4561_v43  ;;  %5758 = vmatpush3.bf16.msra.mxu1 %v6718_v50  ;;  %v6731_v50 = vld [vmem:[%s10194_s6 + $0x48] sm:$0xff]  }
 0x68f   :  { %v4305_v26 = vsel %vm1764_vm5, %v6527_v58, %v6517_v47  ;;  %v4306_v62 = vsel %vm1764_vm5, %v6528_v19, %v6518_v59  ;;  %5759 = vmatprep.subr.bf16.mxu1 %v6756_v9  ;;  %v6729_v59 = vld [vmem:[%s10194_s6 + $0x58] sm:$0xff]  }
 0x690   :  { %v4560_v7 = vmax.f32 %v10646_v56, %v4305_v26  ;;  %v4562_v22 = vmax.f32 %v10647_v13, %v4306_v62  ;;  %v6732_v56 = vld [vmem:[%s10194_s6 + $0x40] sm:$0xff]  }
 0x691   :  { %4861 = vmatmul.mubr.bf16.gmra.mxu0 %v4592_v46 }
 0x692   :  { %5656 = vmatprep.mubr.msk.bf16.mxu0 %vm448_vm0, %v4595_v20  ;;  %v4594_v41 = vpack.c.bf16 %v4562_v22, %v4560_v7  ;;  %5760 = vmatpush3.bf16.msra.mxu1 %v6719_v61  ;;  %v5223_v7 = vsub.s32 3, %v10648_v11 }
 0x693   :  { %5761 = vmatprep.subr.bf16.mxu1 %v6756_v9 }
 0x694   :  { %v5224_v13 = vrot.slane %v10141_v53, %v5223_v7 }
 0x696   :  { %5762 = vmatpush3.bf16.msra.mxu1 %v6720_v14 }
 0x697   :  { %5763 = vmatprep.subr.bf16.mxu1 %v6756_v9 }
 0x699   :  { %4867 = vmatmul.mubr.bf16.gmra.mxu0 %v4594_v41 }
 0x69a   :  { %5764 = vmatpush3.bf16.msra.mxu1 %v6721_v24 }
 0x69b   :  { %5765 = vmatprep.subr.bf16.mxu1 %v6756_v9 }
 0x69e   :  { %5766 = vmatpush3.bf16.msra.mxu1 %v6722_v16 }
 0x69f   :  { %5767 = vmatprep.subr.bf16.mxu1 %v6756_v9 }
 0x6a2   :  { %5768 = vmatpush3.bf16.msra.mxu1 %v6723_v15 }
 0x6a3   :  { %5769 = vmatprep.subr.bf16.mxu1 %v6756_v9 }
 0x6a6   :  { %5770 = vmatpush3.bf16.msra.mxu1 %v6724_v10 }
 0x6a7   :  { %5775 = vmatprep.subr.bf16.mxu1 %v6756_v9 }
 0x707   :  { %v5731_v33 = vpop.f32.mrf.mxu1 }
 0x709   :  { %v5732_v23 = vpop.f32.mrf.mxu1 }
 0x70a   :  { %v5733_v35 = vadd.f32 %v5732_v23, %v5731_v33 }
 0x70b   :  { %v5734_v2 = vpop.f32.mrf.mxu1 }
 0x70c   :  { %v5155_v18 = vadd.f32 %v5733_v35, %v4966_v12 }
 0x70d   :  { %v5735_v55 = vpop.f32.mrf.mxu1 }
 0x70e   :  { %v5736_v37 = vadd.f32 %v5735_v55, %v5734_v2 }
 0x710   :  { %v5158_v34 = vadd.f32 %v5736_v37, %v4966_v12 }
 0x72b   :  { %v5195_v1 = vpop.f32.mrf.mxu1 }
 0x72c   :  { %v5196_v3 = vadd.f32 %v5195_v1, %v5155_v18 }
 0x72d   :  { %v5197_v25 = vpop.f32.mrf.mxu1 }
 0x72e   :  { %v5202_v63 = vmax.f32 %v5196_v3, 0.0 }
 0x72f   :  { %v5198_v57 = vpop.f32.mrf.mxu1 }
 0x730   :  { %v5199_v48 = vadd.f32 %v5198_v57, %v5158_v34 }
 0x731   :  { %v4838_v45 = vpop.f32.mrf.mxu0  ;;  %v5200_v30 = vpop.f32.mrf.mxu1 }
 0x732   :  { %v5203_v60 = vmax.f32 %v5199_v48, 0.0 }
 0x733   :  { %v4839_v38 = vpop.f32.mrf.mxu0 }
 0x734   :  { %v5204_v44 = vpack.c.bf16 %v5203_v60, %v5202_v63 }
 0x735   :  { %v4840_v36 = vpop.f32.mrf.mxu0 }
 0x736   :  { %5772 = vmatmul.mubr.bf16.vlgmr.msra.gmra.mxu1 %v5204_v44 }
 0x737   :  { %v4841_v42 = vpop.f32.mrf.mxu0  ;;  %5776 = vmatpush3.bf16.msra.mxu1 %v6725_v32  ;;  %5791 = vmatprep.mubr.msk.bf16.mxu1 %vm6757_vm15, %v6756_v9 }
 0x738   :  { %5777 = vmatprep.subr.bf16.mxu1 %v6756_v9 }
 0x739   :  { %v4844_v52 = vpop.f32.mrf.mxu0 }
 0x73b   :  { %v4845_v5 = vpop.f32.mrf.mxu0  ;;  %5778 = vmatpush3.bf16.msra.mxu1 %v6726_v28 }
 0x73c   :  { %5779 = vmatprep.subr.bf16.mxu1 %v6756_v9 }
 0x73d   :  { %v4846_v0 = vpop.f32.mrf.mxu0 }
 0x73f   :  { %v4847_v6 = vpop.f32.mrf.mxu0  ;;  %5780 = vmatpush3.bf16.msra.mxu1 %v6727_v31 }
 0x740   :  { %5781 = vmatprep.subr.bf16.mxu1 %v6756_v9 }
 0x741   :  { %v4850_v51 = vpop.f32.mrf.mxu0 }
 0x743   :  { %v4851_v4 = vpop.f32.mrf.mxu0  ;;  %5782 = vmatpush3.bf16.msra.mxu1 %v6728_v21 }
 0x744   :  { %5783 = vmatprep.subr.bf16.mxu1 %v6756_v9 }
 0x745   :  { %v4852_v47 = vpop.f32.mrf.mxu0 }
 0x747   :  { %v4853_v39 = vpop.f32.mrf.mxu0  ;;  %5784 = vmatpush3.bf16.msra.mxu1 %v6729_v59 }
 0x748   :  { %5785 = vmatprep.subr.bf16.mxu1 %v6756_v9 }
 0x749   :  { %v4856_v27 = vpop.f32.mrf.mxu0 }
 0x74b   :  { %v4857_v40 = vpop.f32.mrf.mxu0  ;;  %5786 = vmatpush3.bf16.msra.mxu1 %v6730_v17 }
 0x74c   :  { %5787 = vmatprep.subr.bf16.mxu1 %v6756_v9 }
 0x74d   :  { %v4858_v49 = vpop.f32.mrf.mxu0 }
 0x74f   :  { %v4859_v29 = vpop.f32.mrf.mxu0  ;;  %5788 = vmatpush3.bf16.msra.mxu1 %v6731_v50 }
 0x750   :  { %5789 = vmatprep.subr.bf16.mxu1 %v6756_v9  ;;  %v5336_v9 = vsub.s32 4, %v10648_v11 }
 0x751   :  { %v4862_v43 = vpop.f32.mrf.mxu0 }
 0x752   :  { %v5337_v23 = vrot.slane %v10141_v53, %v5336_v9 }
 0x753   :  { %v4863_v8 = vpop.f32.mrf.mxu0  ;;  %5790 = vmatpush3.bf16.msra.mxu1 %v6732_v56 }
 0x755   :  { %v4864_v19 = vpop.f32.mrf.mxu0 }
 0x757   :  { %v4865_v58 = vpop.f32.mrf.mxu0 }
 0x759   :  { %v4868_v46 = vpop.f32.mrf.mxu0 }
 0x75b   :  { %v4869_v26 = vpop.f32.mrf.mxu0 }
 0x75d   :  { %v4870_v62 = vpop.f32.mrf.mxu0 }
 0x75f   :  { %v4871_v20 = vpop.f32.mrf.mxu0 }
 0x7f6   :  { %v5307_v22 = vpop.f32.mrf.mxu1 }
 0x7f7   :  { %v5308_v41 = vadd.f32 %v5307_v22, %v5224_v13 }
 0x7f8   :  { %v5773_v61 = vpop.f32.mrf.mxu1 }
 0x7f9   :  { %v5314_v15 = vmax.f32 %v5308_v41, 0.0 }
 0x7fa   :  { %v5310_v14 = vpop.f32.mrf.mxu1 }
 0x7fb   :  { %v5311_v24 = vadd.f32 %v5310_v14, %v5224_v13 }
 0x7fc   :  { %v5774_v16 = vpop.f32.mrf.mxu1 }
 0x7fd   :  { %v5315_v10 = vmax.f32 %v5311_v24, 0.0 }
 0x7ff   :  { %v5316_v33 = vpack.c.bf16 %v5315_v10, %v5314_v15 }
 0x801   :  { %5792 = vmatmul.mubr.bf16.vlgmr.msra.gmra.mxu1 %v5316_v33 }
 0x8c1   :  { %v5420_v2 = vpop.f32.mrf.mxu1 }
 0x8c2   :  { %v5421_v54 = vadd.f32 %v5420_v2, %v5337_v23 }
 0x8c3   :  { %v5793_v55 = vpop.f32.mrf.mxu1 }
 0x8c4   :  { %5427 = vst [vmem:[%s10195_s8] sm:$0xff] %v5421_v54 }
 0x8c5   :  { %v5423_v35 = vpop.f32.mrf.mxu1 }
 0x8c6   :  { %v5424_v12 = vadd.f32 %v5423_v35, %v5337_v23 }
 0x8c7   :  { %v5794_v37 = vpop.f32.mrf.mxu1 }
 0x8c8   :  { %5428 = vst [vmem:[%s10195_s8 + $0x8] sm:$0xff] %v5424_v12 }

</bundles_post_ra>
